<compile_context>
chip_gen: v6e
topology: v6e:2x2x1
jax: 0.10.0
libtpu: 0.0.40
codegen_flags: <defaults>
</compile_context>

<pallas_src>
import functools

import jax
import jax.numpy as jnp
import numpy as np
from jax.experimental import pallas as pl
from jax.experimental.pallas import tpu as pltpu


# -----------------------------------------------------------------------------
# Fused kernel: 2-layer LSTM (time loop unrolled in-kernel) + fused heads.
# Gate order matches PyTorch nn.LSTM: [i, f, g, o].
# Row layout is time-major: row = t * B + b.
# -----------------------------------------------------------------------------
def _fused_kernel(x_ref, gpt_ref, h0_ref, c0_ref,
                  wih1_ref, whh1_ref, b1_ref,
                  wih2_ref, whh2_ref, b2_ref,
                  whl_ref, whg_ref, bhd_ref,
                  out_ref, y1_scr, y2_scr,
                  *, B, S, H, T, gamma):
    def lstm_layer(gx, whh, h, c, y_scr):
        # gx: (S*B, 4H) precomputed input projection (+ bias), hoisted out of loop.
        for t in range(S):                       # S small & static -> full unroll
            gates = gx[t * B:(t + 1) * B, :] + jnp.dot(
                h, whh, preferred_element_type=jnp.float32)      # (B, 4H)
            i_g = jax.nn.sigmoid(gates[:, 0 * H:1 * H])
            f_g = jax.nn.sigmoid(gates[:, 1 * H:2 * H])
            g_g = jnp.tanh(gates[:, 2 * H:3 * H])
            o_g = jax.nn.sigmoid(gates[:, 3 * H:4 * H])
            c = f_g * c + i_g * g_g
            h = o_g * jnp.tanh(c)
            y_scr[pl.ds(t * B, B), :] = h

    # ---------------- LSTM layer 1 ----------------
    gx1 = (jnp.dot(x_ref[...], wih1_ref[...], preferred_element_type=jnp.float32)
           + b1_ref[...])                                        # (S*B, 4H)
    lstm_layer(gx1, whh1_ref[...], h0_ref[0], c0_ref[0], y1_scr)

    # ---------------- LSTM layer 2 ----------------
    gx2 = (jnp.dot(y1_scr[...], wih2_ref[...], preferred_element_type=jnp.float32)
           + b2_ref[...])                                        # (S*B, 4H)
    lstm_layer(gx2, whh2_ref[...], h0_ref[1], c0_ref[1], y2_scr)

    # ---------------- Fused heads ----------------
    # [l_out, gpt] @ W_head done as a row-split sum (no concat materialization).
    logits = (jnp.dot(y2_scr[...], whl_ref[...], preferred_element_type=jnp.float32)
              + jnp.dot(gpt_ref[...], whg_ref[...], preferred_element_type=jnp.float32)
              + bhd_ref[...])                                    # (S*B, Wp)

    col = jax.lax.broadcasted_iota(jnp.int32, logits.shape, 1)
    ms_mask = col < 2 * T                      # mu / sigma -> scaled softplus
    h_mask = (col >= 2 * T) & (col < 3 * T)    # h          -> softmax over T cols
    da_mask = (col >= 3 * T) & (col < 3 * T + 2)  # d_act   -> raw linear

    # logistic(v) = (1/gamma) * log(1 + exp(gamma*v)), numerically stable form.
    z = gamma * logits
    soft = (jnp.maximum(z, 0.0)
            + jnp.log(1.0 + jnp.exp(-jnp.abs(z)))) * (1.0 / gamma)

    # masked softmax over the T "h" columns only (lane-reduction, no lane slicing).
    h_logits = jnp.where(h_mask, logits, jnp.float32(-1e30))
    h_max = jnp.max(h_logits, axis=-1, keepdims=True)
    h_exp = jnp.where(h_mask, jnp.exp(h_logits - h_max), 0.0)
    h_soft = h_exp / jnp.sum(h_exp, axis=-1, keepdims=True)

    out_ref[...] = jnp.where(ms_mask, soft,
                             jnp.where(h_mask, h_soft,
                                       jnp.where(da_mask, logits, 0.0)))


def _full_spec(shape):
    n = len(shape)
    return pl.BlockSpec(shape, lambda i, n=n: (0,) * n)


def _fused_forward(x_tm, gpt_tm, h0, c0,
                   w_ih1, w_hh1, b1, w_ih2, w_hh2, b2,
                   w_head_lstm, w_head_gpt, b_head,
                   *, B, S, H, T, gamma, Wp):
    SB = S * B
    out_shape = jax.ShapeDtypeStruct((SB, Wp), jnp.float32)
    args = (x_tm, gpt_tm, h0, c0, w_ih1, w_hh1, b1, w_ih2, w_hh2, b2,
            w_head_lstm, w_head_gpt, b_head)
    return pl.pallas_call(
        functools.partial(_fused_kernel, B=B, S=S, H=H, T=T, gamma=gamma),
        out_shape=out_shape,
        grid=(1,),
        in_specs=[_full_spec(a.shape) for a in args],
        out_specs=_full_spec((SB, Wp)),
        scratch_shapes=[pltpu.VMEM((SB, H), jnp.float32),
                        pltpu.VMEM((SB, H), jnp.float32)],
        compiler_params=pltpu.CompilerParams(dimension_semantics=("arbitrary",)),
    )(*args)


# -----------------------------------------------------------------------------
# Full forward (mode=0 semantics with gpt_select supplied as an input tensor).
# -----------------------------------------------------------------------------
def mode_gpt_lstm_gmm_forward(x, hidden, gpt_select, params, *, T, gamma):
    (h0_all, c0_all) = hidden
    B, S, F = x.shape
    E = gpt_select.shape[-1]
    H = params["lstm"][0][1].shape[0]
    assert params["n_layers"] == 2, "kernel is specialized to the module's 2-layer LSTM"

    # time-major flatten (row = t*B + b) so per-step slices are contiguous sublanes.
    x_tm = jnp.swapaxes(x, 0, 1).reshape(S * B, F)
    gpt_tm = jnp.swapaxes(gpt_select, 0, 1).reshape(S * B, E)

    # Pack the four heads into one lane-dense weight [D, Wp] (Wp = 128-multiple).
    W_out = 3 * T + 2
    Wp = ((W_out + 127) // 128) * 128
    w_head = jnp.concatenate(
        [params["wmu"], params["wsg"], params["wh"], params["wd"]], axis=1)
    b_head = jnp.concatenate(
        [params["bmu"], params["bsg"], params["bh"], params["bd"]], axis=1)
    w_head = jnp.pad(w_head, ((0, 0), (0, Wp - W_out)))
    b_head = jnp.pad(b_head, ((0, 0), (0, Wp - W_out)))
    w_head_lstm = w_head[:H, :]      # applies to LSTM output rows of the concat
    w_head_gpt = w_head[H:, :]       # applies to gpt_select rows of the concat

    (w_ih1, w_hh1, b1) = params["lstm"][0]
    (w_ih2, w_hh2, b2) = params["lstm"][1]

    out = _fused_forward(x_tm, gpt_tm, h0_all, c0_all,
                         w_ih1, w_hh1, b1, w_ih2, w_hh2, b2,
                         w_head_lstm, w_head_gpt, b_head,
                         B=B, S=S, H=H, T=T, gamma=gamma, Wp=Wp)

    out_bs = out.reshape(S, B, Wp).swapaxes(0, 1)      # (B, S, Wp)
    return {
        "mu": out_bs[..., 0 * T:1 * T],
        "sigma": out_bs[..., 1 * T:2 * T],
        "h": out_bs[..., 2 * T:3 * T],
        "d_act": out_bs[..., 3 * T:3 * T + 2],
    }


# -----------------------------------------------------------------------------
# Pure-JAX reference (same math, no Pallas) for correctness check.
# -----------------------------------------------------------------------------
def reference_forward(x, hidden, gpt_select, params, *, T, gamma):
    (h0_all, c0_all) = hidden
    B, S, _ = x.shape

    layer_in = x
    for layer in range(params["n_layers"]):
        w_ih, w_hh, b = params["lstm"][layer]
        H = w_hh.shape[0]
        h_t = h0_all[layer]
        c_t = c0_all[layer]
        outs = []
        for t in range(S):
            gates = layer_in[:, t, :] @ w_ih + h_t @ w_hh + b
            i_g = jax.nn.sigmoid(gates[:, 0 * H:1 * H])
            f_g = jax.nn.sigmoid(gates[:, 1 * H:2 * H])
            g_g = jnp.tanh(gates[:, 2 * H:3 * H])
            o_g = jax.nn.sigmoid(gates[:, 3 * H:4 * H])
            c_t = f_g * c_t + i_g * g_g
            h_t = o_g * jnp.tanh(c_t)
            outs.append(h_t)
        layer_in = jnp.stack(outs, axis=1)
    l_out = layer_in

    l_cat = jnp.concatenate([l_out, gpt_select], axis=2)

    def logistic(v):
        z = gamma * v
        return (jnp.maximum(z, 0.0) + jnp.log(1.0 + jnp.exp(-jnp.abs(z)))) / gamma

    mu = logistic(l_cat @ params["wmu"] + params["bmu"])
    sigma = logistic(l_cat @ params["wsg"] + params["bsg"])
    hh = l_cat @ params["wh"] + params["bh"]
    h = jax.nn.softmax(hh, axis=-1)
    da = l_cat @ params["wd"] + params["bd"]
    return {"mu": mu, "sigma": sigma, "h": h, "d_act": da}


# -----------------------------------------------------------------------------
# Deterministic parameter construction (shapes per the module __init__).
# -----------------------------------------------------------------------------
def make_params(key, n_feat, n_hidden, n_layers, gpt_embed, T):
    keys = jax.random.split(key, 4 * n_layers + 8)
    k = iter(keys)
    params = {"n_layers": n_layers, "lstm": []}

    bound_h = 1.0 / np.sqrt(n_hidden)
    for layer in range(n_layers):
        in_dim = n_feat if layer == 0 else n_hidden
        w_ih = jax.random.uniform(next(k), (in_dim, 4 * n_hidden),
                                  minval=-bound_h, maxval=bound_h, dtype=jnp.float32)
        w_hh = jax.random.uniform(next(k), (n_hidden, 4 * n_hidden),
                                  minval=-bound_h, maxval=bound_h, dtype=jnp.float32)
        b_ih = jax.random.uniform(next(k), (1, 4 * n_hidden),
                                  minval=-bound_h, maxval=bound_h, dtype=jnp.float32)
        b_hh = jax.random.uniform(next(k), (1, 4 * n_hidden),
                                  minval=-bound_h, maxval=bound_h, dtype=jnp.float32)
        params["lstm"].append((w_ih, w_hh, b_ih + b_hh))

    D = n_hidden + gpt_embed
    # all_head: xavier_uniform, stored transposed [D, 3T]; split into T-column blocks
    # (mathematically identical to slicing the output).
    xav = np.sqrt(6.0 / (D + 3 * T))
    w_all = jax.random.uniform(next(k), (D, 3 * T), minval=-xav, maxval=xav,
                               dtype=jnp.float32)
    bound_d = 1.0 / np.sqrt(D)
    b_all = jax.random.uniform(next(k), (1, 3 * T), minval=-bound_d, maxval=bound_d,
                               dtype=jnp.float32)
    params["wmu"] = w_all[:, 0 * T:1 * T]
    params["wsg"] = w_all[:, 1 * T:2 * T]
    params["wh"] = w_all[:, 2 * T:3 * T]
    params["bmu"] = b_all[:, 0 * T:1 * T]
    params["bsg"] = b_all[:, 1 * T:2 * T]
    params["bh"] = b_all[:, 2 * T:3 * T]

    params["wd"] = jax.random.uniform(next(k), (D, 2), minval=-bound_d, maxval=bound_d,
                                      dtype=jnp.float32)
    params["bd"] = jax.random.uniform(next(k), (1, 2), minval=-bound_d, maxval=bound_d,
                                      dtype=jnp.float32)
    return params


if __name__ == "__main__":
    # Small, forward-consistent shapes.
    B, S = 2, 8
    n_feat, n_hidden, n_layers = 128, 128, 2
    gpt_embed, T, gamma = 256, 40, 0.999

    key = jax.random.PRNGKey(0)
    k_x, k_g, k_h, k_c, k_p = jax.random.split(key, 5)

    x = jax.random.normal(k_x, (B, S, n_feat), dtype=jnp.float32)
    # init_hidden() would be zeros; use small random state to exercise the h0/c0 path.
    hidden = (0.1 * jax.random.normal(k_h, (n_layers, B, n_hidden), dtype=jnp.float32),
              0.1 * jax.random.normal(k_c, (n_layers, B, n_hidden), dtype=jnp.float32))
    # Stand-in for GPT-2 selected embeddings (see TODO above).
    gpt_select = jax.random.normal(k_g, (B, S, gpt_embed), dtype=jnp.float32)

    params = make_params(k_p, n_feat, n_hidden, n_layers, gpt_embed, T)

    out = mode_gpt_lstm_gmm_forward(x, hidden, gpt_select, params, T=T, gamma=gamma)
    out = jax.tree_util.tree_map(jax.block_until_ready, out)

    ref = reference_forward(x, hidden, gpt_select, params, T=T, gamma=gamma)
    for name in ("mu", "sigma", "h", "d_act"):
        np.testing.assert_allclose(np.asarray(out[name]), np.asarray(ref[name]),
                                   rtol=1e-5, atol=2e-5)

    assert out["mu"].shape == (B, S, T)
    assert out["sigma"].shape == (B, S, T)
    assert out["h"].shape == (B, S, T)
    assert out["d_act"].shape == (B, S, 2)

    print("KERNEL_OK")
</pallas_src>

<mosaic_0001>
module attributes {stable_mosaic.version = 11 : i64} {
  func.func @_fused_kernel(%arg0: i32, %arg1: memref<16x128xf32, #tpu.memory_space<vmem>>, %arg2: memref<16x256xf32, #tpu.memory_space<vmem>>, %arg3: memref<2x2x128xf32, #tpu.memory_space<vmem>>, %arg4: memref<2x2x128xf32, #tpu.memory_space<vmem>>, %arg5: memref<128x512xf32, #tpu.memory_space<vmem>>, %arg6: memref<128x512xf32, #tpu.memory_space<vmem>>, %arg7: memref<1x512xf32, #tpu.memory_space<vmem>>, %arg8: memref<128x512xf32, #tpu.memory_space<vmem>>, %arg9: memref<128x512xf32, #tpu.memory_space<vmem>>, %arg10: memref<1x512xf32, #tpu.memory_space<vmem>>, %arg11: memref<128x128xf32, #tpu.memory_space<vmem>>, %arg12: memref<256x128xf32, #tpu.memory_space<vmem>>, %arg13: memref<1x128xf32, #tpu.memory_space<vmem>>, %arg14: memref<16x128xf32, #tpu.memory_space<vmem>>, %arg15: memref<16x128xf32, #tpu.memory_space<vmem>>, %arg16: memref<16x128xf32, #tpu.memory_space<vmem>>) attributes {dimension_semantics = [#tpu.dimension_semantics<arbitrary>], iteration_bounds = array<i64: 1>, scalar_prefetch = 0 : i64, scratch_operands = 2 : i64, tpu.core_type = #tpu.core_type<tc>, window_params = [{pipeline_mode = #tpu.pipeline_mode<synchronous>, transform_indices = @transform_0, window_bounds = array<i64: 16, 128>}, {pipeline_mode = #tpu.pipeline_mode<synchronous>, transform_indices = @transform_1, window_bounds = array<i64: 16, 256>}, {pipeline_mode = #tpu.pipeline_mode<synchronous>, transform_indices = @transform_2, window_bounds = array<i64: 2, 2, 128>}, {pipeline_mode = #tpu.pipeline_mode<synchronous>, transform_indices = @transform_3, window_bounds = array<i64: 2, 2, 128>}, {pipeline_mode = #tpu.pipeline_mode<synchronous>, transform_indices = @transform_4, window_bounds = array<i64: 128, 512>}, {pipeline_mode = #tpu.pipeline_mode<synchronous>, transform_indices = @transform_5, window_bounds = array<i64: 128, 512>}, {pipeline_mode = #tpu.pipeline_mode<synchronous>, transform_indices = @transform_6, window_bounds = array<i64: 1, 512>}, {pipeline_mode = #tpu.pipeline_mode<synchronous>, transform_indices = @transform_7, window_bounds = array<i64: 128, 512>}, {pipeline_mode = #tpu.pipeline_mode<synchronous>, transform_indices = @transform_8, window_bounds = array<i64: 128, 512>}, {pipeline_mode = #tpu.pipeline_mode<synchronous>, transform_indices = @transform_9, window_bounds = array<i64: 1, 512>}, {pipeline_mode = #tpu.pipeline_mode<synchronous>, transform_indices = @transform_10, window_bounds = array<i64: 128, 128>}, {pipeline_mode = #tpu.pipeline_mode<synchronous>, transform_indices = @transform_11, window_bounds = array<i64: 256, 128>}, {pipeline_mode = #tpu.pipeline_mode<synchronous>, transform_indices = @transform_12, window_bounds = array<i64: 1, 128>}, {pipeline_mode = #tpu.pipeline_mode<synchronous>, transform_indices = @transform_13, window_bounds = array<i64: 16, 128>}]} {
    %c0 = arith.constant 0 : index
    %c0_0 = arith.constant 0 : index
    %0 = vector.load %arg1[%c0, %c0_0] : memref<16x128xf32, #tpu.memory_space<vmem>>, vector<16x128xf32>
    %c0_1 = arith.constant 0 : index
    %c0_2 = arith.constant 0 : index
    %1 = vector.load %arg5[%c0_1, %c0_2] : memref<128x512xf32, #tpu.memory_space<vmem>>, vector<128x512xf32>
    %cst = arith.constant dense<0.000000e+00> : vector<16x512xf32>
    %2 = tpu.matmul %0, %1, %cst {dimension_numbers = #tpu.dot_dimension_numbers<[1], [0], [0], [1], [0, 0, 1, 1], [], []>} : vector<16x128xf32>, vector<128x512xf32>, vector<16x512xf32> -> vector<16x512xf32>
    %c0_3 = arith.constant 0 : index
    %c0_4 = arith.constant 0 : index
    %3 = vector.load %arg7[%c0_3, %c0_4] : memref<1x512xf32, #tpu.memory_space<vmem>>, vector<1x512xf32>
    %4 = vector.broadcast %3 : vector<1x512xf32> to vector<16x512xf32>
    %5 = arith.addf %2, %4 : vector<16x512xf32>
    %c0_5 = arith.constant 0 : index
    %c0_6 = arith.constant 0 : index
    %6 = vector.load %arg6[%c0_5, %c0_6] : memref<128x512xf32, #tpu.memory_space<vmem>>, vector<128x512xf32>
    %c0_7 = arith.constant 0 : index
    %c0_8 = arith.constant 0 : index
    %c0_9 = arith.constant 0 : index
    %7 = vector.load %arg3[%c0_7, %c0_8, %c0_9] : memref<2x2x128xf32, #tpu.memory_space<vmem>>, vector<1x2x128xf32>
    %8 = vector.shape_cast %7 : vector<1x2x128xf32> to vector<2x128xf32>
    %c0_10 = arith.constant 0 : index
    %c0_11 = arith.constant 0 : index
    %c0_12 = arith.constant 0 : index
    %9 = vector.load %arg4[%c0_10, %c0_11, %c0_12] : memref<2x2x128xf32, #tpu.memory_space<vmem>>, vector<1x2x128xf32>
    %10 = vector.shape_cast %9 : vector<1x2x128xf32> to vector<2x128xf32>
    %11 = vector.extract_strided_slice %5 {offsets = [0, 0], sizes = [2, 512], strides = [1, 1]} : vector<16x512xf32> to vector<2x512xf32>
    %cst_13 = arith.constant dense<0.000000e+00> : vector<2x512xf32>
    %12 = tpu.matmul %8, %6, %cst_13 {dimension_numbers = #tpu.dot_dimension_numbers<[1], [0], [0], [1], [0, 0, 1, 1], [], []>} : vector<2x128xf32>, vector<128x512xf32>, vector<2x512xf32> -> vector<2x512xf32>
    %13 = arith.addf %11, %12 : vector<2x512xf32>
    %14 = vector.extract_strided_slice %13 {offsets = [0, 0], sizes = [2, 128], strides = [1, 1]} : vector<2x512xf32> to vector<2x128xf32>
    %15 = arith.negf %14 : vector<2x128xf32>
    %16 = math.exp %15 : vector<2x128xf32>
    %cst_14 = arith.constant 1.000000e+00 : f32
    %17 = vector.broadcast %cst_14 : f32 to vector<2x128xf32>
    %18 = arith.addf %17, %16 : vector<2x128xf32>
    %19 = arith.divf %17, %18 : vector<2x128xf32>
    %20 = vector.extract_strided_slice %13 {offsets = [0, 128], sizes = [2, 128], strides = [1, 1]} : vector<2x512xf32> to vector<2x128xf32>
    %21 = arith.negf %20 : vector<2x128xf32>
    %22 = math.exp %21 : vector<2x128xf32>
    %cst_15 = arith.constant 1.000000e+00 : f32
    %23 = vector.broadcast %cst_15 : f32 to vector<2x128xf32>
    %24 = arith.addf %23, %22 : vector<2x128xf32>
    %25 = arith.divf %23, %24 : vector<2x128xf32>
    %26 = vector.extract_strided_slice %13 {offsets = [0, 256], sizes = [2, 128], strides = [1, 1]} : vector<2x512xf32> to vector<2x128xf32>
    %27 = math.tanh %26 : vector<2x128xf32>
    %28 = vector.extract_strided_slice %13 {offsets = [0, 384], sizes = [2, 128], strides = [1, 1]} : vector<2x512xf32> to vector<2x128xf32>
    %29 = arith.negf %28 : vector<2x128xf32>
    %30 = math.exp %29 : vector<2x128xf32>
    %cst_16 = arith.constant 1.000000e+00 : f32
    %31 = vector.broadcast %cst_16 : f32 to vector<2x128xf32>
    %32 = arith.addf %31, %30 : vector<2x128xf32>
    %33 = arith.divf %31, %32 : vector<2x128xf32>
    %34 = arith.mulf %25, %10 : vector<2x128xf32>
    %35 = arith.mulf %19, %27 : vector<2x128xf32>
    %36 = arith.addf %34, %35 : vector<2x128xf32>
    %37 = math.tanh %36 : vector<2x128xf32>
    %38 = arith.mulf %33, %37 : vector<2x128xf32>
    %c0_17 = arith.constant 0 : index
    %c0_18 = arith.constant 0 : index
    %39 = vector.load %arg15[%c0_17, %c0_18] : memref<16x128xf32, #tpu.memory_space<vmem>>, vector<2x128xf32>
    tpu.vector_store %arg15[%c0_17, %c0_18], %38 {strides = array<i32>} : memref<16x128xf32, #tpu.memory_space<vmem>>, vector<2x128xf32>,
    %40 = vector.extract_strided_slice %5 {offsets = [2, 0], sizes = [2, 512], strides = [1, 1]} : vector<16x512xf32> to vector<2x512xf32>
    %cst_19 = arith.constant dense<0.000000e+00> : vector<2x512xf32>
    %41 = tpu.matmul %38, %6, %cst_19 {dimension_numbers = #tpu.dot_dimension_numbers<[1], [0], [0], [1], [0, 0, 1, 1], [], []>} : vector<2x128xf32>, vector<128x512xf32>, vector<2x512xf32> -> vector<2x512xf32>
    %42 = arith.addf %40, %41 : vector<2x512xf32>
    %43 = vector.extract_strided_slice %42 {offsets = [0, 0], sizes = [2, 128], strides = [1, 1]} : vector<2x512xf32> to vector<2x128xf32>
    %44 = arith.negf %43 : vector<2x128xf32>
    %45 = math.exp %44 : vector<2x128xf32>
    %cst_20 = arith.constant 1.000000e+00 : f32
    %46 = vector.broadcast %cst_20 : f32 to vector<2x128xf32>
    %47 = arith.addf %46, %45 : vector<2x128xf32>
    %48 = arith.divf %46, %47 : vector<2x128xf32>
    %49 = vector.extract_strided_slice %42 {offsets = [0, 128], sizes = [2, 128], strides = [1, 1]} : vector<2x512xf32> to vector<2x128xf32>
    %50 = arith.negf %49 : vector<2x128xf32>
    %51 = math.exp %50 : vector<2x128xf32>
    %cst_21 = arith.constant 1.000000e+00 : f32
    %52 = vector.broadcast %cst_21 : f32 to vector<2x128xf32>
    %53 = arith.addf %52, %51 : vector<2x128xf32>
    %54 = arith.divf %52, %53 : vector<2x128xf32>
    %55 = vector.extract_strided_slice %42 {offsets = [0, 256], sizes = [2, 128], strides = [1, 1]} : vector<2x512xf32> to vector<2x128xf32>
    %56 = math.tanh %55 : vector<2x128xf32>
    %57 = vector.extract_strided_slice %42 {offsets = [0, 384], sizes = [2, 128], strides = [1, 1]} : vector<2x512xf32> to vector<2x128xf32>
    %58 = arith.negf %57 : vector<2x128xf32>
    %59 = math.exp %58 : vector<2x128xf32>
    %cst_22 = arith.constant 1.000000e+00 : f32
    %60 = vector.broadcast %cst_22 : f32 to vector<2x128xf32>
    %61 = arith.addf %60, %59 : vector<2x128xf32>
    %62 = arith.divf %60, %61 : vector<2x128xf32>
    %63 = arith.mulf %54, %36 : vector<2x128xf32>
    %64 = arith.mulf %48, %56 : vector<2x128xf32>
    %65 = arith.addf %63, %64 : vector<2x128xf32>
    %66 = math.tanh %65 : vector<2x128xf32>
    %67 = arith.mulf %62, %66 : vector<2x128xf32>
    %c2 = arith.constant 2 : index
    %c0_23 = arith.constant 0 : index
    %68 = vector.load %arg15[%c2, %c0_23] : memref<16x128xf32, #tpu.memory_space<vmem>>, vector<2x128xf32>
    tpu.vector_store %arg15[%c2, %c0_23], %67 {strides = array<i32>} : memref<16x128xf32, #tpu.memory_space<vmem>>, vector<2x128xf32>,
    %69 = vector.extract_strided_slice %5 {offsets = [4, 0], sizes = [2, 512], strides = [1, 1]} : vector<16x512xf32> to vector<2x512xf32>
    %cst_24 = arith.constant dense<0.000000e+00> : vector<2x512xf32>
    %70 = tpu.matmul %67, %6, %cst_24 {dimension_numbers = #tpu.dot_dimension_numbers<[1], [0], [0], [1], [0, 0, 1, 1], [], []>} : vector<2x128xf32>, vector<128x512xf32>, vector<2x512xf32> -> vector<2x512xf32>
    %71 = arith.addf %69, %70 : vector<2x512xf32>
    %72 = vector.extract_strided_slice %71 {offsets = [0, 0], sizes = [2, 128], strides = [1, 1]} : vector<2x512xf32> to vector<2x128xf32>
    %73 = arith.negf %72 : vector<2x128xf32>
    %74 = math.exp %73 : vector<2x128xf32>
    %cst_25 = arith.constant 1.000000e+00 : f32
    %75 = vector.broadcast %cst_25 : f32 to vector<2x128xf32>
    %76 = arith.addf %75, %74 : vector<2x128xf32>
    %77 = arith.divf %75, %76 : vector<2x128xf32>
    %78 = vector.extract_strided_slice %71 {offsets = [0, 128], sizes = [2, 128], strides = [1, 1]} : vector<2x512xf32> to vector<2x128xf32>
    %79 = arith.negf %78 : vector<2x128xf32>
    %80 = math.exp %79 : vector<2x128xf32>
    %cst_26 = arith.constant 1.000000e+00 : f32
    %81 = vector.broadcast %cst_26 : f32 to vector<2x128xf32>
    %82 = arith.addf %81, %80 : vector<2x128xf32>
    %83 = arith.divf %81, %82 : vector<2x128xf32>
    %84 = vector.extract_strided_slice %71 {offsets = [0, 256], sizes = [2, 128], strides = [1, 1]} : vector<2x512xf32> to vector<2x128xf32>
    %85 = math.tanh %84 : vector<2x128xf32>
    %86 = vector.extract_strided_slice %71 {offsets = [0, 384], sizes = [2, 128], strides = [1, 1]} : vector<2x512xf32> to vector<2x128xf32>
    %87 = arith.negf %86 : vector<2x128xf32>
    %88 = math.exp %87 : vector<2x128xf32>
    %cst_27 = arith.constant 1.000000e+00 : f32
    %89 = vector.broadcast %cst_27 : f32 to vector<2x128xf32>
    %90 = arith.addf %89, %88 : vector<2x128xf32>
    %91 = arith.divf %89, %90 : vector<2x128xf32>
    %92 = arith.mulf %83, %65 : vector<2x128xf32>
    %93 = arith.mulf %77, %85 : vector<2x128xf32>
    %94 = arith.addf %92, %93 : vector<2x128xf32>
    %95 = math.tanh %94 : vector<2x128xf32>
    %96 = arith.mulf %91, %95 : vector<2x128xf32>
    %c4 = arith.constant 4 : index
    %c0_28 = arith.constant 0 : index
    %97 = vector.load %arg15[%c4, %c0_28] : memref<16x128xf32, #tpu.memory_space<vmem>>, vector<2x128xf32>
    tpu.vector_store %arg15[%c4, %c0_28], %96 {strides = array<i32>} : memref<16x128xf32, #tpu.memory_space<vmem>>, vector<2x128xf32>,
    %98 = vector.extract_strided_slice %5 {offsets = [6, 0], sizes = [2, 512], strides = [1, 1]} : vector<16x512xf32> to vector<2x512xf32>
    %cst_29 = arith.constant dense<0.000000e+00> : vector<2x512xf32>
    %99 = tpu.matmul %96, %6, %cst_29 {dimension_numbers = #tpu.dot_dimension_numbers<[1], [0], [0], [1], [0, 0, 1, 1], [], []>} : vector<2x128xf32>, vector<128x512xf32>, vector<2x512xf32> -> vector<2x512xf32>
    %100 = arith.addf %98, %99 : vector<2x512xf32>
    %101 = vector.extract_strided_slice %100 {offsets = [0, 0], sizes = [2, 128], strides = [1, 1]} : vector<2x512xf32> to vector<2x128xf32>
    %102 = arith.negf %101 : vector<2x128xf32>
    %103 = math.exp %102 : vector<2x128xf32>
    %cst_30 = arith.constant 1.000000e+00 : f32
    %104 = vector.broadcast %cst_30 : f32 to vector<2x128xf32>
    %105 = arith.addf %104, %103 : vector<2x128xf32>
    %106 = arith.divf %104, %105 : vector<2x128xf32>
    %107 = vector.extract_strided_slice %100 {offsets = [0, 128], sizes = [2, 128], strides = [1, 1]} : vector<2x512xf32> to vector<2x128xf32>
    %108 = arith.negf %107 : vector<2x128xf32>
    %109 = math.exp %108 : vector<2x128xf32>
    %cst_31 = arith.constant 1.000000e+00 : f32
    %110 = vector.broadcast %cst_31 : f32 to vector<2x128xf32>
    %111 = arith.addf %110, %109 : vector<2x128xf32>
    %112 = arith.divf %110, %111 : vector<2x128xf32>
    %113 = vector.extract_strided_slice %100 {offsets = [0, 256], sizes = [2, 128], strides = [1, 1]} : vector<2x512xf32> to vector<2x128xf32>
    %114 = math.tanh %113 : vector<2x128xf32>
    %115 = vector.extract_strided_slice %100 {offsets = [0, 384], sizes = [2, 128], strides = [1, 1]} : vector<2x512xf32> to vector<2x128xf32>
    %116 = arith.negf %115 : vector<2x128xf32>
    %117 = math.exp %116 : vector<2x128xf32>
    %cst_32 = arith.constant 1.000000e+00 : f32
    %118 = vector.broadcast %cst_32 : f32 to vector<2x128xf32>
    %119 = arith.addf %118, %117 : vector<2x128xf32>
    %120 = arith.divf %118, %119 : vector<2x128xf32>
    %121 = arith.mulf %112, %94 : vector<2x128xf32>
    %122 = arith.mulf %106, %114 : vector<2x128xf32>
    %123 = arith.addf %121, %122 : vector<2x128xf32>
    %124 = math.tanh %123 : vector<2x128xf32>
    %125 = arith.mulf %120, %124 : vector<2x128xf32>
    %c6 = arith.constant 6 : index
    %c0_33 = arith.constant 0 : index
    %126 = vector.load %arg15[%c6, %c0_33] : memref<16x128xf32, #tpu.memory_space<vmem>>, vector<2x128xf32>
    tpu.vector_store %arg15[%c6, %c0_33], %125 {strides = array<i32>} : memref<16x128xf32, #tpu.memory_space<vmem>>, vector<2x128xf32>,
    %127 = vector.extract_strided_slice %5 {offsets = [8, 0], sizes = [2, 512], strides = [1, 1]} : vector<16x512xf32> to vector<2x512xf32>
    %cst_34 = arith.constant dense<0.000000e+00> : vector<2x512xf32>
    %128 = tpu.matmul %125, %6, %cst_34 {dimension_numbers = #tpu.dot_dimension_numbers<[1], [0], [0], [1], [0, 0, 1, 1], [], []>} : vector<2x128xf32>, vector<128x512xf32>, vector<2x512xf32> -> vector<2x512xf32>
    %129 = arith.addf %127, %128 : vector<2x512xf32>
    %130 = vector.extract_strided_slice %129 {offsets = [0, 0], sizes = [2, 128], strides = [1, 1]} : vector<2x512xf32> to vector<2x128xf32>
    %131 = arith.negf %130 : vector<2x128xf32>
    %132 = math.exp %131 : vector<2x128xf32>
    %cst_35 = arith.constant 1.000000e+00 : f32
    %133 = vector.broadcast %cst_35 : f32 to vector<2x128xf32>
    %134 = arith.addf %133, %132 : vector<2x128xf32>
    %135 = arith.divf %133, %134 : vector<2x128xf32>
    %136 = vector.extract_strided_slice %129 {offsets = [0, 128], sizes = [2, 128], strides = [1, 1]} : vector<2x512xf32> to vector<2x128xf32>
    %137 = arith.negf %136 : vector<2x128xf32>
    %138 = math.exp %137 : vector<2x128xf32>
    %cst_36 = arith.constant 1.000000e+00 : f32
    %139 = vector.broadcast %cst_36 : f32 to vector<2x128xf32>
    %140 = arith.addf %139, %138 : vector<2x128xf32>
    %141 = arith.divf %139, %140 : vector<2x128xf32>
    %142 = vector.extract_strided_slice %129 {offsets = [0, 256], sizes = [2, 128], strides = [1, 1]} : vector<2x512xf32> to vector<2x128xf32>
    %143 = math.tanh %142 : vector<2x128xf32>
    %144 = vector.extract_strided_slice %129 {offsets = [0, 384], sizes = [2, 128], strides = [1, 1]} : vector<2x512xf32> to vector<2x128xf32>
    %145 = arith.negf %144 : vector<2x128xf32>
    %146 = math.exp %145 : vector<2x128xf32>
    %cst_37 = arith.constant 1.000000e+00 : f32
    %147 = vector.broadcast %cst_37 : f32 to vector<2x128xf32>
    %148 = arith.addf %147, %146 : vector<2x128xf32>
    %149 = arith.divf %147, %148 : vector<2x128xf32>
    %150 = arith.mulf %141, %123 : vector<2x128xf32>
    %151 = arith.mulf %135, %143 : vector<2x128xf32>
    %152 = arith.addf %150, %151 : vector<2x128xf32>
    %153 = math.tanh %152 : vector<2x128xf32>
    %154 = arith.mulf %149, %153 : vector<2x128xf32>
    %c8 = arith.constant 8 : index
    %c0_38 = arith.constant 0 : index
    %155 = vector.load %arg15[%c8, %c0_38] : memref<16x128xf32, #tpu.memory_space<vmem>>, vector<2x128xf32>
    tpu.vector_store %arg15[%c8, %c0_38], %154 {strides = array<i32>} : memref<16x128xf32, #tpu.memory_space<vmem>>, vector<2x128xf32>,
    %156 = vector.extract_strided_slice %5 {offsets = [10, 0], sizes = [2, 512], strides = [1, 1]} : vector<16x512xf32> to vector<2x512xf32>
    %cst_39 = arith.constant dense<0.000000e+00> : vector<2x512xf32>
    %157 = tpu.matmul %154, %6, %cst_39 {dimension_numbers = #tpu.dot_dimension_numbers<[1], [0], [0], [1], [0, 0, 1, 1], [], []>} : vector<2x128xf32>, vector<128x512xf32>, vector<2x512xf32> -> vector<2x512xf32>
    %158 = arith.addf %156, %157 : vector<2x512xf32>
    %159 = vector.extract_strided_slice %158 {offsets = [0, 0], sizes = [2, 128], strides = [1, 1]} : vector<2x512xf32> to vector<2x128xf32>
    %160 = arith.negf %159 : vector<2x128xf32>
    %161 = math.exp %160 : vector<2x128xf32>
    %cst_40 = arith.constant 1.000000e+00 : f32
    %162 = vector.broadcast %cst_40 : f32 to vector<2x128xf32>
    %163 = arith.addf %162, %161 : vector<2x128xf32>
    %164 = arith.divf %162, %163 : vector<2x128xf32>
    %165 = vector.extract_strided_slice %158 {offsets = [0, 128], sizes = [2, 128], strides = [1, 1]} : vector<2x512xf32> to vector<2x128xf32>
    %166 = arith.negf %165 : vector<2x128xf32>
    %167 = math.exp %166 : vector<2x128xf32>
    %cst_41 = arith.constant 1.000000e+00 : f32
    %168 = vector.broadcast %cst_41 : f32 to vector<2x128xf32>
    %169 = arith.addf %168, %167 : vector<2x128xf32>
    %170 = arith.divf %168, %169 : vector<2x128xf32>
    %171 = vector.extract_strided_slice %158 {offsets = [0, 256], sizes = [2, 128], strides = [1, 1]} : vector<2x512xf32> to vector<2x128xf32>
    %172 = math.tanh %171 : vector<2x128xf32>
    %173 = vector.extract_strided_slice %158 {offsets = [0, 384], sizes = [2, 128], strides = [1, 1]} : vector<2x512xf32> to vector<2x128xf32>
    %174 = arith.negf %173 : vector<2x128xf32>
    %175 = math.exp %174 : vector<2x128xf32>
    %cst_42 = arith.constant 1.000000e+00 : f32
    %176 = vector.broadcast %cst_42 : f32 to vector<2x128xf32>
    %177 = arith.addf %176, %175 : vector<2x128xf32>
    %178 = arith.divf %176, %177 : vector<2x128xf32>
    %179 = arith.mulf %170, %152 : vector<2x128xf32>
    %180 = arith.mulf %164, %172 : vector<2x128xf32>
    %181 = arith.addf %179, %180 : vector<2x128xf32>
    %182 = math.tanh %181 : vector<2x128xf32>
    %183 = arith.mulf %178, %182 : vector<2x128xf32>
    %c10 = arith.constant 10 : index
    %c0_43 = arith.constant 0 : index
    %184 = vector.load %arg15[%c10, %c0_43] : memref<16x128xf32, #tpu.memory_space<vmem>>, vector<2x128xf32>
    tpu.vector_store %arg15[%c10, %c0_43], %183 {strides = array<i32>} : memref<16x128xf32, #tpu.memory_space<vmem>>, vector<2x128xf32>,
    %185 = vector.extract_strided_slice %5 {offsets = [12, 0], sizes = [2, 512], strides = [1, 1]} : vector<16x512xf32> to vector<2x512xf32>
    %cst_44 = arith.constant dense<0.000000e+00> : vector<2x512xf32>
    %186 = tpu.matmul %183, %6, %cst_44 {dimension_numbers = #tpu.dot_dimension_numbers<[1], [0], [0], [1], [0, 0, 1, 1], [], []>} : vector<2x128xf32>, vector<128x512xf32>, vector<2x512xf32> -> vector<2x512xf32>
    %187 = arith.addf %185, %186 : vector<2x512xf32>
    %188 = vector.extract_strided_slice %187 {offsets = [0, 0], sizes = [2, 128], strides = [1, 1]} : vector<2x512xf32> to vector<2x128xf32>
    %189 = arith.negf %188 : vector<2x128xf32>
    %190 = math.exp %189 : vector<2x128xf32>
    %cst_45 = arith.constant 1.000000e+00 : f32
    %191 = vector.broadcast %cst_45 : f32 to vector<2x128xf32>
    %192 = arith.addf %191, %190 : vector<2x128xf32>
    %193 = arith.divf %191, %192 : vector<2x128xf32>
    %194 = vector.extract_strided_slice %187 {offsets = [0, 128], sizes = [2, 128], strides = [1, 1]} : vector<2x512xf32> to vector<2x128xf32>
    %195 = arith.negf %194 : vector<2x128xf32>
    %196 = math.exp %195 : vector<2x128xf32>
    %cst_46 = arith.constant 1.000000e+00 : f32
    %197 = vector.broadcast %cst_46 : f32 to vector<2x128xf32>
    %198 = arith.addf %197, %196 : vector<2x128xf32>
    %199 = arith.divf %197, %198 : vector<2x128xf32>
    %200 = vector.extract_strided_slice %187 {offsets = [0, 256], sizes = [2, 128], strides = [1, 1]} : vector<2x512xf32> to vector<2x128xf32>
    %201 = math.tanh %200 : vector<2x128xf32>
    %202 = vector.extract_strided_slice %187 {offsets = [0, 384], sizes = [2, 128], strides = [1, 1]} : vector<2x512xf32> to vector<2x128xf32>
    %203 = arith.negf %202 : vector<2x128xf32>
    %204 = math.exp %203 : vector<2x128xf32>
    %cst_47 = arith.constant 1.000000e+00 : f32
    %205 = vector.broadcast %cst_47 : f32 to vector<2x128xf32>
    %206 = arith.addf %205, %204 : vector<2x128xf32>
    %207 = arith.divf %205, %206 : vector<2x128xf32>
    %208 = arith.mulf %199, %181 : vector<2x128xf32>
    %209 = arith.mulf %193, %201 : vector<2x128xf32>
    %210 = arith.addf %208, %209 : vector<2x128xf32>
    %211 = math.tanh %210 : vector<2x128xf32>
    %212 = arith.mulf %207, %211 : vector<2x128xf32>
    %c12 = arith.constant 12 : index
    %c0_48 = arith.constant 0 : index
    %213 = vector.load %arg15[%c12, %c0_48] : memref<16x128xf32, #tpu.memory_space<vmem>>, vector<2x128xf32>
    tpu.vector_store %arg15[%c12, %c0_48], %212 {strides = array<i32>} : memref<16x128xf32, #tpu.memory_space<vmem>>, vector<2x128xf32>,
    %214 = vector.extract_strided_slice %5 {offsets = [14, 0], sizes = [2, 512], strides = [1, 1]} : vector<16x512xf32> to vector<2x512xf32>
    %cst_49 = arith.constant dense<0.000000e+00> : vector<2x512xf32>
    %215 = tpu.matmul %212, %6, %cst_49 {dimension_numbers = #tpu.dot_dimension_numbers<[1], [0], [0], [1], [0, 0, 1, 1], [], []>} : vector<2x128xf32>, vector<128x512xf32>, vector<2x512xf32> -> vector<2x512xf32>
    %216 = arith.addf %214, %215 : vector<2x512xf32>
    %217 = vector.extract_strided_slice %216 {offsets = [0, 0], sizes = [2, 128], strides = [1, 1]} : vector<2x512xf32> to vector<2x128xf32>
    %218 = arith.negf %217 : vector<2x128xf32>
    %219 = math.exp %218 : vector<2x128xf32>
    %cst_50 = arith.constant 1.000000e+00 : f32
    %220 = vector.broadcast %cst_50 : f32 to vector<2x128xf32>
    %221 = arith.addf %220, %219 : vector<2x128xf32>
    %222 = arith.divf %220, %221 : vector<2x128xf32>
    %223 = vector.extract_strided_slice %216 {offsets = [0, 128], sizes = [2, 128], strides = [1, 1]} : vector<2x512xf32> to vector<2x128xf32>
    %224 = arith.negf %223 : vector<2x128xf32>
    %225 = math.exp %224 : vector<2x128xf32>
    %cst_51 = arith.constant 1.000000e+00 : f32
    %226 = vector.broadcast %cst_51 : f32 to vector<2x128xf32>
    %227 = arith.addf %226, %225 : vector<2x128xf32>
    %228 = arith.divf %226, %227 : vector<2x128xf32>
    %229 = vector.extract_strided_slice %216 {offsets = [0, 256], sizes = [2, 128], strides = [1, 1]} : vector<2x512xf32> to vector<2x128xf32>
    %230 = math.tanh %229 : vector<2x128xf32>
    %231 = vector.extract_strided_slice %216 {offsets = [0, 384], sizes = [2, 128], strides = [1, 1]} : vector<2x512xf32> to vector<2x128xf32>
    %232 = arith.negf %231 : vector<2x128xf32>
    %233 = math.exp %232 : vector<2x128xf32>
    %cst_52 = arith.constant 1.000000e+00 : f32
    %234 = vector.broadcast %cst_52 : f32 to vector<2x128xf32>
    %235 = arith.addf %234, %233 : vector<2x128xf32>
    %236 = arith.divf %234, %235 : vector<2x128xf32>
    %237 = arith.mulf %228, %210 : vector<2x128xf32>
    %238 = arith.mulf %222, %230 : vector<2x128xf32>
    %239 = arith.addf %237, %238 : vector<2x128xf32>
    %240 = math.tanh %239 : vector<2x128xf32>
    %241 = arith.mulf %236, %240 : vector<2x128xf32>
    %c14 = arith.constant 14 : index
    %c0_53 = arith.constant 0 : index
    %242 = vector.load %arg15[%c14, %c0_53] : memref<16x128xf32, #tpu.memory_space<vmem>>, vector<2x128xf32>
    tpu.vector_store %arg15[%c14, %c0_53], %241 {strides = array<i32>} : memref<16x128xf32, #tpu.memory_space<vmem>>, vector<2x128xf32>,
    %c0_54 = arith.constant 0 : index
    %c0_55 = arith.constant 0 : index
    %243 = vector.load %arg15[%c0_54, %c0_55] : memref<16x128xf32, #tpu.memory_space<vmem>>, vector<16x128xf32>
    %c0_56 = arith.constant 0 : index
    %c0_57 = arith.constant 0 : index
    %244 = vector.load %arg8[%c0_56, %c0_57] : memref<128x512xf32, #tpu.memory_space<vmem>>, vector<128x512xf32>
    %cst_58 = arith.constant dense<0.000000e+00> : vector<16x512xf32>
    %245 = tpu.matmul %243, %244, %cst_58 {dimension_numbers = #tpu.dot_dimension_numbers<[1], [0], [0], [1], [0, 0, 1, 1], [], []>} : vector<16x128xf32>, vector<128x512xf32>, vector<16x512xf32> -> vector<16x512xf32>
    %c0_59 = arith.constant 0 : index
    %c0_60 = arith.constant 0 : index
    %246 = vector.load %arg10[%c0_59, %c0_60] : memref<1x512xf32, #tpu.memory_space<vmem>>, vector<1x512xf32>
    %247 = vector.broadcast %246 : vector<1x512xf32> to vector<16x512xf32>
    %248 = arith.addf %245, %247 : vector<16x512xf32>
    %c0_61 = arith.constant 0 : index
    %c0_62 = arith.constant 0 : index
    %249 = vector.load %arg9[%c0_61, %c0_62] : memref<128x512xf32, #tpu.memory_space<vmem>>, vector<128x512xf32>
    %c1 = arith.constant 1 : index
    %c0_63 = arith.constant 0 : index
    %c0_64 = arith.constant 0 : index
    %250 = vector.load %arg3[%c1, %c0_63, %c0_64] : memref<2x2x128xf32, #tpu.memory_space<vmem>>, vector<1x2x128xf32>
    %251 = vector.shape_cast %250 : vector<1x2x128xf32> to vector<2x128xf32>
    %c1_65 = arith.constant 1 : index
    %c0_66 = arith.constant 0 : index
    %c0_67 = arith.constant 0 : index
    %252 = vector.load %arg4[%c1_65, %c0_66, %c0_67] : memref<2x2x128xf32, #tpu.memory_space<vmem>>, vector<1x2x128xf32>
    %253 = vector.shape_cast %252 : vector<1x2x128xf32> to vector<2x128xf32>
    %254 = vector.extract_strided_slice %248 {offsets = [0, 0], sizes = [2, 512], strides = [1, 1]} : vector<16x512xf32> to vector<2x512xf32>
    %cst_68 = arith.constant dense<0.000000e+00> : vector<2x512xf32>
    %255 = tpu.matmul %251, %249, %cst_68 {dimension_numbers = #tpu.dot_dimension_numbers<[1], [0], [0], [1], [0, 0, 1, 1], [], []>} : vector<2x128xf32>, vector<128x512xf32>, vector<2x512xf32> -> vector<2x512xf32>
    %256 = arith.addf %254, %255 : vector<2x512xf32>
    %257 = vector.extract_strided_slice %256 {offsets = [0, 0], sizes = [2, 128], strides = [1, 1]} : vector<2x512xf32> to vector<2x128xf32>
    %258 = arith.negf %257 : vector<2x128xf32>
    %259 = math.exp %258 : vector<2x128xf32>
    %cst_69 = arith.constant 1.000000e+00 : f32
    %260 = vector.broadcast %cst_69 : f32 to vector<2x128xf32>
    %261 = arith.addf %260, %259 : vector<2x128xf32>
    %262 = arith.divf %260, %261 : vector<2x128xf32>
    %263 = vector.extract_strided_slice %256 {offsets = [0, 128], sizes = [2, 128], strides = [1, 1]} : vector<2x512xf32> to vector<2x128xf32>
    %264 = arith.negf %263 : vector<2x128xf32>
    %265 = math.exp %264 : vector<2x128xf32>
    %cst_70 = arith.constant 1.000000e+00 : f32
    %266 = vector.broadcast %cst_70 : f32 to vector<2x128xf32>
    %267 = arith.addf %266, %265 : vector<2x128xf32>
    %268 = arith.divf %266, %267 : vector<2x128xf32>
    %269 = vector.extract_strided_slice %256 {offsets = [0, 256], sizes = [2, 128], strides = [1, 1]} : vector<2x512xf32> to vector<2x128xf32>
    %270 = math.tanh %269 : vector<2x128xf32>
    %271 = vector.extract_strided_slice %256 {offsets = [0, 384], sizes = [2, 128], strides = [1, 1]} : vector<2x512xf32> to vector<2x128xf32>
    %272 = arith.negf %271 : vector<2x128xf32>
    %273 = math.exp %272 : vector<2x128xf32>
    %cst_71 = arith.constant 1.000000e+00 : f32
    %274 = vector.broadcast %cst_71 : f32 to vector<2x128xf32>
    %275 = arith.addf %274, %273 : vector<2x128xf32>
    %276 = arith.divf %274, %275 : vector<2x128xf32>
    %277 = arith.mulf %268, %253 : vector<2x128xf32>
    %278 = arith.mulf %262, %270 : vector<2x128xf32>
    %279 = arith.addf %277, %278 : vector<2x128xf32>
    %280 = math.tanh %279 : vector<2x128xf32>
    %281 = arith.mulf %276, %280 : vector<2x128xf32>
    %c0_72 = arith.constant 0 : index
    %c0_73 = arith.constant 0 : index
    %282 = vector.load %arg16[%c0_72, %c0_73] : memref<16x128xf32, #tpu.memory_space<vmem>>, vector<2x128xf32>
    tpu.vector_store %arg16[%c0_72, %c0_73], %281 {strides = array<i32>} : memref<16x128xf32, #tpu.memory_space<vmem>>, vector<2x128xf32>,
    %283 = vector.extract_strided_slice %248 {offsets = [2, 0], sizes = [2, 512], strides = [1, 1]} : vector<16x512xf32> to vector<2x512xf32>
    %cst_74 = arith.constant dense<0.000000e+00> : vector<2x512xf32>
    %284 = tpu.matmul %281, %249, %cst_74 {dimension_numbers = #tpu.dot_dimension_numbers<[1], [0], [0], [1], [0, 0, 1, 1], [], []>} : vector<2x128xf32>, vector<128x512xf32>, vector<2x512xf32> -> vector<2x512xf32>
    %285 = arith.addf %283, %284 : vector<2x512xf32>
    %286 = vector.extract_strided_slice %285 {offsets = [0, 0], sizes = [2, 128], strides = [1, 1]} : vector<2x512xf32> to vector<2x128xf32>
    %287 = arith.negf %286 : vector<2x128xf32>
    %288 = math.exp %287 : vector<2x128xf32>
    %cst_75 = arith.constant 1.000000e+00 : f32
    %289 = vector.broadcast %cst_75 : f32 to vector<2x128xf32>
    %290 = arith.addf %289, %288 : vector<2x128xf32>
    %291 = arith.divf %289, %290 : vector<2x128xf32>
    %292 = vector.extract_strided_slice %285 {offsets = [0, 128], sizes = [2, 128], strides = [1, 1]} : vector<2x512xf32> to vector<2x128xf32>
    %293 = arith.negf %292 : vector<2x128xf32>
    %294 = math.exp %293 : vector<2x128xf32>
    %cst_76 = arith.constant 1.000000e+00 : f32
    %295 = vector.broadcast %cst_76 : f32 to vector<2x128xf32>
    %296 = arith.addf %295, %294 : vector<2x128xf32>
    %297 = arith.divf %295, %296 : vector<2x128xf32>
    %298 = vector.extract_strided_slice %285 {offsets = [0, 256], sizes = [2, 128], strides = [1, 1]} : vector<2x512xf32> to vector<2x128xf32>
    %299 = math.tanh %298 : vector<2x128xf32>
    %300 = vector.extract_strided_slice %285 {offsets = [0, 384], sizes = [2, 128], strides = [1, 1]} : vector<2x512xf32> to vector<2x128xf32>
    %301 = arith.negf %300 : vector<2x128xf32>
    %302 = math.exp %301 : vector<2x128xf32>
    %cst_77 = arith.constant 1.000000e+00 : f32
    %303 = vector.broadcast %cst_77 : f32 to vector<2x128xf32>
    %304 = arith.addf %303, %302 : vector<2x128xf32>
    %305 = arith.divf %303, %304 : vector<2x128xf32>
    %306 = arith.mulf %297, %279 : vector<2x128xf32>
    %307 = arith.mulf %291, %299 : vector<2x128xf32>
    %308 = arith.addf %306, %307 : vector<2x128xf32>
    %309 = math.tanh %308 : vector<2x128xf32>
    %310 = arith.mulf %305, %309 : vector<2x128xf32>
    %c2_78 = arith.constant 2 : index
    %c0_79 = arith.constant 0 : index
    %311 = vector.load %arg16[%c2_78, %c0_79] : memref<16x128xf32, #tpu.memory_space<vmem>>, vector<2x128xf32>
    tpu.vector_store %arg16[%c2_78, %c0_79], %310 {strides = array<i32>} : memref<16x128xf32, #tpu.memory_space<vmem>>, vector<2x128xf32>,
    %312 = vector.extract_strided_slice %248 {offsets = [4, 0], sizes = [2, 512], strides = [1, 1]} : vector<16x512xf32> to vector<2x512xf32>
    %cst_80 = arith.constant dense<0.000000e+00> : vector<2x512xf32>
    %313 = tpu.matmul %310, %249, %cst_80 {dimension_numbers = #tpu.dot_dimension_numbers<[1], [0], [0], [1], [0, 0, 1, 1], [], []>} : vector<2x128xf32>, vector<128x512xf32>, vector<2x512xf32> -> vector<2x512xf32>
    %314 = arith.addf %312, %313 : vector<2x512xf32>
    %315 = vector.extract_strided_slice %314 {offsets = [0, 0], sizes = [2, 128], strides = [1, 1]} : vector<2x512xf32> to vector<2x128xf32>
    %316 = arith.negf %315 : vector<2x128xf32>
    %317 = math.exp %316 : vector<2x128xf32>
    %cst_81 = arith.constant 1.000000e+00 : f32
    %318 = vector.broadcast %cst_81 : f32 to vector<2x128xf32>
    %319 = arith.addf %318, %317 : vector<2x128xf32>
    %320 = arith.divf %318, %319 : vector<2x128xf32>
    %321 = vector.extract_strided_slice %314 {offsets = [0, 128], sizes = [2, 128], strides = [1, 1]} : vector<2x512xf32> to vector<2x128xf32>
    %322 = arith.negf %321 : vector<2x128xf32>
    %323 = math.exp %322 : vector<2x128xf32>
    %cst_82 = arith.constant 1.000000e+00 : f32
    %324 = vector.broadcast %cst_82 : f32 to vector<2x128xf32>
    %325 = arith.addf %324, %323 : vector<2x128xf32>
    %326 = arith.divf %324, %325 : vector<2x128xf32>
    %327 = vector.extract_strided_slice %314 {offsets = [0, 256], sizes = [2, 128], strides = [1, 1]} : vector<2x512xf32> to vector<2x128xf32>
    %328 = math.tanh %327 : vector<2x128xf32>
    %329 = vector.extract_strided_slice %314 {offsets = [0, 384], sizes = [2, 128], strides = [1, 1]} : vector<2x512xf32> to vector<2x128xf32>
    %330 = arith.negf %329 : vector<2x128xf32>
    %331 = math.exp %330 : vector<2x128xf32>
    %cst_83 = arith.constant 1.000000e+00 : f32
    %332 = vector.broadcast %cst_83 : f32 to vector<2x128xf32>
    %333 = arith.addf %332, %331 : vector<2x128xf32>
    %334 = arith.divf %332, %333 : vector<2x128xf32>
    %335 = arith.mulf %326, %308 : vector<2x128xf32>
    %336 = arith.mulf %320, %328 : vector<2x128xf32>
    %337 = arith.addf %335, %336 : vector<2x128xf32>
    %338 = math.tanh %337 : vector<2x128xf32>
    %339 = arith.mulf %334, %338 : vector<2x128xf32>
    %c4_84 = arith.constant 4 : index
    %c0_85 = arith.constant 0 : index
    %340 = vector.load %arg16[%c4_84, %c0_85] : memref<16x128xf32, #tpu.memory_space<vmem>>, vector<2x128xf32>
    tpu.vector_store %arg16[%c4_84, %c0_85], %339 {strides = array<i32>} : memref<16x128xf32, #tpu.memory_space<vmem>>, vector<2x128xf32>,
    %341 = vector.extract_strided_slice %248 {offsets = [6, 0], sizes = [2, 512], strides = [1, 1]} : vector<16x512xf32> to vector<2x512xf32>
    %cst_86 = arith.constant dense<0.000000e+00> : vector<2x512xf32>
    %342 = tpu.matmul %339, %249, %cst_86 {dimension_numbers = #tpu.dot_dimension_numbers<[1], [0], [0], [1], [0, 0, 1, 1], [], []>} : vector<2x128xf32>, vector<128x512xf32>, vector<2x512xf32> -> vector<2x512xf32>
    %343 = arith.addf %341, %342 : vector<2x512xf32>
    %344 = vector.extract_strided_slice %343 {offsets = [0, 0], sizes = [2, 128], strides = [1, 1]} : vector<2x512xf32> to vector<2x128xf32>
    %345 = arith.negf %344 : vector<2x128xf32>
    %346 = math.exp %345 : vector<2x128xf32>
    %cst_87 = arith.constant 1.000000e+00 : f32
    %347 = vector.broadcast %cst_87 : f32 to vector<2x128xf32>
    %348 = arith.addf %347, %346 : vector<2x128xf32>
    %349 = arith.divf %347, %348 : vector<2x128xf32>
    %350 = vector.extract_strided_slice %343 {offsets = [0, 128], sizes = [2, 128], strides = [1, 1]} : vector<2x512xf32> to vector<2x128xf32>
    %351 = arith.negf %350 : vector<2x128xf32>
    %352 = math.exp %351 : vector<2x128xf32>
    %cst_88 = arith.constant 1.000000e+00 : f32
    %353 = vector.broadcast %cst_88 : f32 to vector<2x128xf32>
    %354 = arith.addf %353, %352 : vector<2x128xf32>
    %355 = arith.divf %353, %354 : vector<2x128xf32>
    %356 = vector.extract_strided_slice %343 {offsets = [0, 256], sizes = [2, 128], strides = [1, 1]} : vector<2x512xf32> to vector<2x128xf32>
    %357 = math.tanh %356 : vector<2x128xf32>
    %358 = vector.extract_strided_slice %343 {offsets = [0, 384], sizes = [2, 128], strides = [1, 1]} : vector<2x512xf32> to vector<2x128xf32>
    %359 = arith.negf %358 : vector<2x128xf32>
    %360 = math.exp %359 : vector<2x128xf32>
    %cst_89 = arith.constant 1.000000e+00 : f32
    %361 = vector.broadcast %cst_89 : f32 to vector<2x128xf32>
    %362 = arith.addf %361, %360 : vector<2x128xf32>
    %363 = arith.divf %361, %362 : vector<2x128xf32>
    %364 = arith.mulf %355, %337 : vector<2x128xf32>
    %365 = arith.mulf %349, %357 : vector<2x128xf32>
    %366 = arith.addf %364, %365 : vector<2x128xf32>
    %367 = math.tanh %366 : vector<2x128xf32>
    %368 = arith.mulf %363, %367 : vector<2x128xf32>
    %c6_90 = arith.constant 6 : index
    %c0_91 = arith.constant 0 : index
    %369 = vector.load %arg16[%c6_90, %c0_91] : memref<16x128xf32, #tpu.memory_space<vmem>>, vector<2x128xf32>
    tpu.vector_store %arg16[%c6_90, %c0_91], %368 {strides = array<i32>} : memref<16x128xf32, #tpu.memory_space<vmem>>, vector<2x128xf32>,
    %370 = vector.extract_strided_slice %248 {offsets = [8, 0], sizes = [2, 512], strides = [1, 1]} : vector<16x512xf32> to vector<2x512xf32>
    %cst_92 = arith.constant dense<0.000000e+00> : vector<2x512xf32>
    %371 = tpu.matmul %368, %249, %cst_92 {dimension_numbers = #tpu.dot_dimension_numbers<[1], [0], [0], [1], [0, 0, 1, 1], [], []>} : vector<2x128xf32>, vector<128x512xf32>, vector<2x512xf32> -> vector<2x512xf32>
    %372 = arith.addf %370, %371 : vector<2x512xf32>
    %373 = vector.extract_strided_slice %372 {offsets = [0, 0], sizes = [2, 128], strides = [1, 1]} : vector<2x512xf32> to vector<2x128xf32>
    %374 = arith.negf %373 : vector<2x128xf32>
    %375 = math.exp %374 : vector<2x128xf32>
    %cst_93 = arith.constant 1.000000e+00 : f32
    %376 = vector.broadcast %cst_93 : f32 to vector<2x128xf32>
    %377 = arith.addf %376, %375 : vector<2x128xf32>
    %378 = arith.divf %376, %377 : vector<2x128xf32>
    %379 = vector.extract_strided_slice %372 {offsets = [0, 128], sizes = [2, 128], strides = [1, 1]} : vector<2x512xf32> to vector<2x128xf32>
    %380 = arith.negf %379 : vector<2x128xf32>
    %381 = math.exp %380 : vector<2x128xf32>
    %cst_94 = arith.constant 1.000000e+00 : f32
    %382 = vector.broadcast %cst_94 : f32 to vector<2x128xf32>
    %383 = arith.addf %382, %381 : vector<2x128xf32>
    %384 = arith.divf %382, %383 : vector<2x128xf32>
    %385 = vector.extract_strided_slice %372 {offsets = [0, 256], sizes = [2, 128], strides = [1, 1]} : vector<2x512xf32> to vector<2x128xf32>
    %386 = math.tanh %385 : vector<2x128xf32>
    %387 = vector.extract_strided_slice %372 {offsets = [0, 384], sizes = [2, 128], strides = [1, 1]} : vector<2x512xf32> to vector<2x128xf32>
    %388 = arith.negf %387 : vector<2x128xf32>
    %389 = math.exp %388 : vector<2x128xf32>
    %cst_95 = arith.constant 1.000000e+00 : f32
    %390 = vector.broadcast %cst_95 : f32 to vector<2x128xf32>
    %391 = arith.addf %390, %389 : vector<2x128xf32>
    %392 = arith.divf %390, %391 : vector<2x128xf32>
    %393 = arith.mulf %384, %366 : vector<2x128xf32>
    %394 = arith.mulf %378, %386 : vector<2x128xf32>
    %395 = arith.addf %393, %394 : vector<2x128xf32>
    %396 = math.tanh %395 : vector<2x128xf32>
    %397 = arith.mulf %392, %396 : vector<2x128xf32>
    %c8_96 = arith.constant 8 : index
    %c0_97 = arith.constant 0 : index
    %398 = vector.load %arg16[%c8_96, %c0_97] : memref<16x128xf32, #tpu.memory_space<vmem>>, vector<2x128xf32>
    tpu.vector_store %arg16[%c8_96, %c0_97], %397 {strides = array<i32>} : memref<16x128xf32, #tpu.memory_space<vmem>>, vector<2x128xf32>,
    %399 = vector.extract_strided_slice %248 {offsets = [10, 0], sizes = [2, 512], strides = [1, 1]} : vector<16x512xf32> to vector<2x512xf32>
    %cst_98 = arith.constant dense<0.000000e+00> : vector<2x512xf32>
    %400 = tpu.matmul %397, %249, %cst_98 {dimension_numbers = #tpu.dot_dimension_numbers<[1], [0], [0], [1], [0, 0, 1, 1], [], []>} : vector<2x128xf32>, vector<128x512xf32>, vector<2x512xf32> -> vector<2x512xf32>
    %401 = arith.addf %399, %400 : vector<2x512xf32>
    %402 = vector.extract_strided_slice %401 {offsets = [0, 0], sizes = [2, 128], strides = [1, 1]} : vector<2x512xf32> to vector<2x128xf32>
    %403 = arith.negf %402 : vector<2x128xf32>
    %404 = math.exp %403 : vector<2x128xf32>
    %cst_99 = arith.constant 1.000000e+00 : f32
    %405 = vector.broadcast %cst_99 : f32 to vector<2x128xf32>
    %406 = arith.addf %405, %404 : vector<2x128xf32>
    %407 = arith.divf %405, %406 : vector<2x128xf32>
    %408 = vector.extract_strided_slice %401 {offsets = [0, 128], sizes = [2, 128], strides = [1, 1]} : vector<2x512xf32> to vector<2x128xf32>
    %409 = arith.negf %408 : vector<2x128xf32>
    %410 = math.exp %409 : vector<2x128xf32>
    %cst_100 = arith.constant 1.000000e+00 : f32
    %411 = vector.broadcast %cst_100 : f32 to vector<2x128xf32>
    %412 = arith.addf %411, %410 : vector<2x128xf32>
    %413 = arith.divf %411, %412 : vector<2x128xf32>
    %414 = vector.extract_strided_slice %401 {offsets = [0, 256], sizes = [2, 128], strides = [1, 1]} : vector<2x512xf32> to vector<2x128xf32>
    %415 = math.tanh %414 : vector<2x128xf32>
    %416 = vector.extract_strided_slice %401 {offsets = [0, 384], sizes = [2, 128], strides = [1, 1]} : vector<2x512xf32> to vector<2x128xf32>
    %417 = arith.negf %416 : vector<2x128xf32>
    %418 = math.exp %417 : vector<2x128xf32>
    %cst_101 = arith.constant 1.000000e+00 : f32
    %419 = vector.broadcast %cst_101 : f32 to vector<2x128xf32>
    %420 = arith.addf %419, %418 : vector<2x128xf32>
    %421 = arith.divf %419, %420 : vector<2x128xf32>
    %422 = arith.mulf %413, %395 : vector<2x128xf32>
    %423 = arith.mulf %407, %415 : vector<2x128xf32>
    %424 = arith.addf %422, %423 : vector<2x128xf32>
    %425 = math.tanh %424 : vector<2x128xf32>
    %426 = arith.mulf %421, %425 : vector<2x128xf32>
    %c10_102 = arith.constant 10 : index
    %c0_103 = arith.constant 0 : index
    %427 = vector.load %arg16[%c10_102, %c0_103] : memref<16x128xf32, #tpu.memory_space<vmem>>, vector<2x128xf32>
    tpu.vector_store %arg16[%c10_102, %c0_103], %426 {strides = array<i32>} : memref<16x128xf32, #tpu.memory_space<vmem>>, vector<2x128xf32>,
    %428 = vector.extract_strided_slice %248 {offsets = [12, 0], sizes = [2, 512], strides = [1, 1]} : vector<16x512xf32> to vector<2x512xf32>
    %cst_104 = arith.constant dense<0.000000e+00> : vector<2x512xf32>
    %429 = tpu.matmul %426, %249, %cst_104 {dimension_numbers = #tpu.dot_dimension_numbers<[1], [0], [0], [1], [0, 0, 1, 1], [], []>} : vector<2x128xf32>, vector<128x512xf32>, vector<2x512xf32> -> vector<2x512xf32>
    %430 = arith.addf %428, %429 : vector<2x512xf32>
    %431 = vector.extract_strided_slice %430 {offsets = [0, 0], sizes = [2, 128], strides = [1, 1]} : vector<2x512xf32> to vector<2x128xf32>
    %432 = arith.negf %431 : vector<2x128xf32>
    %433 = math.exp %432 : vector<2x128xf32>
    %cst_105 = arith.constant 1.000000e+00 : f32
    %434 = vector.broadcast %cst_105 : f32 to vector<2x128xf32>
    %435 = arith.addf %434, %433 : vector<2x128xf32>
    %436 = arith.divf %434, %435 : vector<2x128xf32>
    %437 = vector.extract_strided_slice %430 {offsets = [0, 128], sizes = [2, 128], strides = [1, 1]} : vector<2x512xf32> to vector<2x128xf32>
    %438 = arith.negf %437 : vector<2x128xf32>
    %439 = math.exp %438 : vector<2x128xf32>
    %cst_106 = arith.constant 1.000000e+00 : f32
    %440 = vector.broadcast %cst_106 : f32 to vector<2x128xf32>
    %441 = arith.addf %440, %439 : vector<2x128xf32>
    %442 = arith.divf %440, %441 : vector<2x128xf32>
    %443 = vector.extract_strided_slice %430 {offsets = [0, 256], sizes = [2, 128], strides = [1, 1]} : vector<2x512xf32> to vector<2x128xf32>
    %444 = math.tanh %443 : vector<2x128xf32>
    %445 = vector.extract_strided_slice %430 {offsets = [0, 384], sizes = [2, 128], strides = [1, 1]} : vector<2x512xf32> to vector<2x128xf32>
    %446 = arith.negf %445 : vector<2x128xf32>
    %447 = math.exp %446 : vector<2x128xf32>
    %cst_107 = arith.constant 1.000000e+00 : f32
    %448 = vector.broadcast %cst_107 : f32 to vector<2x128xf32>
    %449 = arith.addf %448, %447 : vector<2x128xf32>
    %450 = arith.divf %448, %449 : vector<2x128xf32>
    %451 = arith.mulf %442, %424 : vector<2x128xf32>
    %452 = arith.mulf %436, %444 : vector<2x128xf32>
    %453 = arith.addf %451, %452 : vector<2x128xf32>
    %454 = math.tanh %453 : vector<2x128xf32>
    %455 = arith.mulf %450, %454 : vector<2x128xf32>
    %c12_108 = arith.constant 12 : index
    %c0_109 = arith.constant 0 : index
    %456 = vector.load %arg16[%c12_108, %c0_109] : memref<16x128xf32, #tpu.memory_space<vmem>>, vector<2x128xf32>
    tpu.vector_store %arg16[%c12_108, %c0_109], %455 {strides = array<i32>} : memref<16x128xf32, #tpu.memory_space<vmem>>, vector<2x128xf32>,
    %457 = vector.extract_strided_slice %248 {offsets = [14, 0], sizes = [2, 512], strides = [1, 1]} : vector<16x512xf32> to vector<2x512xf32>
    %cst_110 = arith.constant dense<0.000000e+00> : vector<2x512xf32>
    %458 = tpu.matmul %455, %249, %cst_110 {dimension_numbers = #tpu.dot_dimension_numbers<[1], [0], [0], [1], [0, 0, 1, 1], [], []>} : vector<2x128xf32>, vector<128x512xf32>, vector<2x512xf32> -> vector<2x512xf32>
    %459 = arith.addf %457, %458 : vector<2x512xf32>
    %460 = vector.extract_strided_slice %459 {offsets = [0, 0], sizes = [2, 128], strides = [1, 1]} : vector<2x512xf32> to vector<2x128xf32>
    %461 = arith.negf %460 : vector<2x128xf32>
    %462 = math.exp %461 : vector<2x128xf32>
    %cst_111 = arith.constant 1.000000e+00 : f32
    %463 = vector.broadcast %cst_111 : f32 to vector<2x128xf32>
    %464 = arith.addf %463, %462 : vector<2x128xf32>
    %465 = arith.divf %463, %464 : vector<2x128xf32>
    %466 = vector.extract_strided_slice %459 {offsets = [0, 128], sizes = [2, 128], strides = [1, 1]} : vector<2x512xf32> to vector<2x128xf32>
    %467 = arith.negf %466 : vector<2x128xf32>
    %468 = math.exp %467 : vector<2x128xf32>
    %cst_112 = arith.constant 1.000000e+00 : f32
    %469 = vector.broadcast %cst_112 : f32 to vector<2x128xf32>
    %470 = arith.addf %469, %468 : vector<2x128xf32>
    %471 = arith.divf %469, %470 : vector<2x128xf32>
    %472 = vector.extract_strided_slice %459 {offsets = [0, 256], sizes = [2, 128], strides = [1, 1]} : vector<2x512xf32> to vector<2x128xf32>
    %473 = math.tanh %472 : vector<2x128xf32>
    %474 = vector.extract_strided_slice %459 {offsets = [0, 384], sizes = [2, 128], strides = [1, 1]} : vector<2x512xf32> to vector<2x128xf32>
    %475 = arith.negf %474 : vector<2x128xf32>
    %476 = math.exp %475 : vector<2x128xf32>
    %cst_113 = arith.constant 1.000000e+00 : f32
    %477 = vector.broadcast %cst_113 : f32 to vector<2x128xf32>
    %478 = arith.addf %477, %476 : vector<2x128xf32>
    %479 = arith.divf %477, %478 : vector<2x128xf32>
    %480 = arith.mulf %471, %453 : vector<2x128xf32>
    %481 = arith.mulf %465, %473 : vector<2x128xf32>
    %482 = arith.addf %480, %481 : vector<2x128xf32>
    %483 = math.tanh %482 : vector<2x128xf32>
    %484 = arith.mulf %479, %483 : vector<2x128xf32>
    %c14_114 = arith.constant 14 : index
    %c0_115 = arith.constant 0 : index
    %485 = vector.load %arg16[%c14_114, %c0_115] : memref<16x128xf32, #tpu.memory_space<vmem>>, vector<2x128xf32>
    tpu.vector_store %arg16[%c14_114, %c0_115], %484 {strides = array<i32>} : memref<16x128xf32, #tpu.memory_space<vmem>>, vector<2x128xf32>,
    %c0_116 = arith.constant 0 : index
    %c0_117 = arith.constant 0 : index
    %486 = vector.load %arg16[%c0_116, %c0_117] : memref<16x128xf32, #tpu.memory_space<vmem>>, vector<16x128xf32>
    %c0_118 = arith.constant 0 : index
    %c0_119 = arith.constant 0 : index
    %487 = vector.load %arg11[%c0_118, %c0_119] : memref<128x128xf32, #tpu.memory_space<vmem>>, vector<128x128xf32>
    %cst_120 = arith.constant dense<0.000000e+00> : vector<16x128xf32>
    %488 = tpu.matmul %486, %487, %cst_120 {dimension_numbers = #tpu.dot_dimension_numbers<[1], [0], [0], [1], [0, 0, 1, 1], [], []>} : vector<16x128xf32>, vector<128x128xf32>, vector<16x128xf32> -> vector<16x128xf32>
    %c0_121 = arith.constant 0 : index
    %c0_122 = arith.constant 0 : index
    %489 = vector.load %arg2[%c0_121, %c0_122] : memref<16x256xf32, #tpu.memory_space<vmem>>, vector<16x256xf32>
    %c0_123 = arith.constant 0 : index
    %c0_124 = arith.constant 0 : index
    %490 = vector.load %arg12[%c0_123, %c0_124] : memref<256x128xf32, #tpu.memory_space<vmem>>, vector<256x128xf32>
    %cst_125 = arith.constant dense<0.000000e+00> : vector<16x128xf32>
    %491 = tpu.matmul %489, %490, %cst_125 {dimension_numbers = #tpu.dot_dimension_numbers<[1], [0], [0], [1], [0, 0, 1, 1], [], []>} : vector<16x256xf32>, vector<256x128xf32>, vector<16x128xf32> -> vector<16x128xf32>
    %492 = arith.addf %488, %491 : vector<16x128xf32>
    %c0_126 = arith.constant 0 : index
    %c0_127 = arith.constant 0 : index
    %493 = vector.load %arg13[%c0_126, %c0_127] : memref<1x128xf32, #tpu.memory_space<vmem>>, vector<1x128xf32>
    %494 = vector.broadcast %493 : vector<1x128xf32> to vector<16x128xf32>
    %495 = arith.addf %492, %494 : vector<16x128xf32>
    %496 = tpu.iota {dimensions = array<i32: 1>} : vector<16x128xi32>
    %c80_i32 = arith.constant 80 : i32
    %497 = vector.broadcast %c80_i32 : i32 to vector<16x128xi32>
    %498 = arith.cmpi slt, %496, %497 : vector<16x128xi32>
    %c80_i32_128 = arith.constant 80 : i32
    %499 = vector.broadcast %c80_i32_128 : i32 to vector<16x128xi32>
    %500 = arith.cmpi sge, %496, %499 : vector<16x128xi32>
    %c120_i32 = arith.constant 120 : i32
    %501 = vector.broadcast %c120_i32 : i32 to vector<16x128xi32>
    %502 = arith.cmpi slt, %496, %501 : vector<16x128xi32>
    %503 = arith.andi %500, %502 : vector<16x128xi1>
    %c120_i32_129 = arith.constant 120 : i32
    %504 = vector.broadcast %c120_i32_129 : i32 to vector<16x128xi32>
    %505 = arith.cmpi sge, %496, %504 : vector<16x128xi32>
    %c122_i32 = arith.constant 122 : i32
    %506 = vector.broadcast %c122_i32 : i32 to vector<16x128xi32>
    %507 = arith.cmpi slt, %496, %506 : vector<16x128xi32>
    %508 = arith.andi %505, %507 : vector<16x128xi1>
    %cst_130 = arith.constant 9.990000e-01 : f32
    %509 = vector.broadcast %cst_130 : f32 to vector<16x128xf32>
    %510 = arith.mulf %509, %495 : vector<16x128xf32>
    %cst_131 = arith.constant 0.000000e+00 : f32
    %511 = vector.broadcast %cst_131 : f32 to vector<16x128xf32>
    %512 = arith.maximumf %510, %511 : vector<16x128xf32>
    %513 = math.absf %510 : vector<16x128xf32>
    %cst_132 = arith.constant 0.000000e+00 : f32
    %514 = vector.broadcast %cst_132 : f32 to vector<16x128xf32>
    %515 = arith.subf %514, %513 : vector<16x128xf32>
    %516 = math.exp %515 : vector<16x128xf32>
    %cst_133 = arith.constant 1.000000e+00 : f32
    %517 = vector.broadcast %cst_133 : f32 to vector<16x128xf32>
    %518 = arith.addf %517, %516 : vector<16x128xf32>
    %519 = math.log %518 : vector<16x128xf32>
    %520 = arith.addf %512, %519 : vector<16x128xf32>
    %cst_134 = arith.constant 1.001001 : f32
    %521 = vector.broadcast %cst_134 : f32 to vector<16x128xf32>
    %522 = arith.mulf %520, %521 : vector<16x128xf32>
    %cst_135 = arith.constant -1.000000e+30 : f32
    %523 = vector.broadcast %cst_135 : f32 to vector<16x128xf32>
    %524 = arith.select %503, %495, %523 : vector<16x128xi1>, vector<16x128xf32>
    %cst_136 = arith.constant dense<0xFF800000> : vector<16xf32>
    %525 = vector.multi_reduction <maximumf>, %524, %cst_136 [1] : vector<16x128xf32> to vector<16xf32>
    %526 = vector.shape_cast %525 : vector<16xf32> to vector<16x1xf32>
    %527 = vector.broadcast %526 : vector<16x1xf32> to vector<16x128xf32>
    %528 = arith.subf %524, %527 : vector<16x128xf32>
    %529 = math.exp %528 : vector<16x128xf32>
    %cst_137 = arith.constant 0.000000e+00 : f32
    %530 = vector.broadcast %cst_137 : f32 to vector<16x128xf32>
    %531 = arith.select %503, %529, %530 : vector<16x128xi1>, vector<16x128xf32>
    %cst_138 = arith.constant dense<0.000000e+00> : vector<16xf32>
    %532 = vector.multi_reduction <add>, %531, %cst_138 [1] : vector<16x128xf32> to vector<16xf32>
    %533 = vector.shape_cast %532 : vector<16xf32> to vector<16x1xf32>
    %534 = vector.broadcast %533 : vector<16x1xf32> to vector<16x128xf32>
    %535 = arith.divf %531, %534 : vector<16x128xf32>
    %cst_139 = arith.constant 0.000000e+00 : f32
    %536 = vector.broadcast %cst_139 : f32 to vector<16x128xf32>
    %537 = arith.select %508, %495, %536 : vector<16x128xi1>, vector<16x128xf32>
    %538 = arith.select %503, %535, %537 : vector<16x128xi1>, vector<16x128xf32>
    %539 = arith.select %498, %522, %538 : vector<16x128xi1>, vector<16x128xf32>
    %c0_140 = arith.constant 0 : index
    %c0_141 = arith.constant 0 : index
    %540 = vector.load %arg14[%c0_140, %c0_141] : memref<16x128xf32, #tpu.memory_space<vmem>>, vector<16x128xf32>
    tpu.vector_store %arg14[%c0_140, %c0_141], %539 {strides = array<i32>} : memref<16x128xf32, #tpu.memory_space<vmem>>, vector<16x128xf32>,
    return
  }
  func.func @transform_0(%arg0: i32) -> (i32, i32) {
    %c0_i32 = arith.constant 0 : i32
    %c0_i32_0 = arith.constant 0 : i32
    %c0_i32_1 = arith.constant 0 : i32
    return %c0_i32, %c0_i32_0 : i32, i32
  }
  func.func @transform_1(%arg0: i32) -> (i32, i32) {
    %c0_i32 = arith.constant 0 : i32
    %c0_i32_0 = arith.constant 0 : i32
    %c0_i32_1 = arith.constant 0 : i32
    return %c0_i32, %c0_i32_0 : i32, i32
  }
  func.func @transform_2(%arg0: i32) -> (i32, i32, i32) {
    %c0_i32 = arith.constant 0 : i32
    %c0_i32_0 = arith.constant 0 : i32
    %c0_i32_1 = arith.constant 0 : i32
    %c0_i32_2 = arith.constant 0 : i32
    return %c0_i32, %c0_i32_0, %c0_i32_1 : i32, i32, i32
  }
  func.func @transform_3(%arg0: i32) -> (i32, i32, i32) {
    %c0_i32 = arith.constant 0 : i32
    %c0_i32_0 = arith.constant 0 : i32
    %c0_i32_1 = arith.constant 0 : i32
    %c0_i32_2 = arith.constant 0 : i32
    return %c0_i32, %c0_i32_0, %c0_i32_1 : i32, i32, i32
  }
  func.func @transform_4(%arg0: i32) -> (i32, i32) {
    %c0_i32 = arith.constant 0 : i32
    %c0_i32_0 = arith.constant 0 : i32
    %c0_i32_1 = arith.constant 0 : i32
    return %c0_i32, %c0_i32_0 : i32, i32
  }
  func.func @transform_5(%arg0: i32) -> (i32, i32) {
    %c0_i32 = arith.constant 0 : i32
    %c0_i32_0 = arith.constant 0 : i32
    %c0_i32_1 = arith.constant 0 : i32
    return %c0_i32, %c0_i32_0 : i32, i32
  }
  func.func @transform_6(%arg0: i32) -> (i32, i32) {
    %c0_i32 = arith.constant 0 : i32
    %c0_i32_0 = arith.constant 0 : i32
    %c0_i32_1 = arith.constant 0 : i32
    return %c0_i32, %c0_i32_0 : i32, i32
  }
  func.func @transform_7(%arg0: i32) -> (i32, i32) {
    %c0_i32 = arith.constant 0 : i32
    %c0_i32_0 = arith.constant 0 : i32
    %c0_i32_1 = arith.constant 0 : i32
    return %c0_i32, %c0_i32_0 : i32, i32
  }
  func.func @transform_8(%arg0: i32) -> (i32, i32) {
    %c0_i32 = arith.constant 0 : i32
    %c0_i32_0 = arith.constant 0 : i32
    %c0_i32_1 = arith.constant 0 : i32
    return %c0_i32, %c0_i32_0 : i32, i32
  }
  func.func @transform_9(%arg0: i32) -> (i32, i32) {
    %c0_i32 = arith.constant 0 : i32
    %c0_i32_0 = arith.constant 0 : i32
    %c0_i32_1 = arith.constant 0 : i32
    return %c0_i32, %c0_i32_0 : i32, i32
  }
  func.func @transform_10(%arg0: i32) -> (i32, i32) {
    %c0_i32 = arith.constant 0 : i32
    %c0_i32_0 = arith.constant 0 : i32
    %c0_i32_1 = arith.constant 0 : i32
    return %c0_i32, %c0_i32_0 : i32, i32
  }
  func.func @transform_11(%arg0: i32) -> (i32, i32) {
    %c0_i32 = arith.constant 0 : i32
    %c0_i32_0 = arith.constant 0 : i32
    %c0_i32_1 = arith.constant 0 : i32
    return %c0_i32, %c0_i32_0 : i32, i32
  }
  func.func @transform_12(%arg0: i32) -> (i32, i32) {
    %c0_i32 = arith.constant 0 : i32
    %c0_i32_0 = arith.constant 0 : i32
    %c0_i32_1 = arith.constant 0 : i32
    return %c0_i32, %c0_i32_0 : i32, i32
  }
  func.func @transform_13(%arg0: i32) -> (i32, i32) {
    %c0_i32 = arith.constant 0 : i32
    %c0_i32_0 = arith.constant 0 : i32
    %c0_i32_1 = arith.constant 0 : i32
    return %c0_i32, %c0_i32_0 : i32, i32
  }
}

</mosaic_0001>

<bundles_post_ra>
// kernel: tpu_custom_call.1
= control target key start
LH: loop header
LB: loop body
LE: loop exit
PB: predicated region body
PF: predicated region fallthrough
CT: control target
= control target key end

     0   :  { %18 = vsyncpa [#allocation5], 0  ;;  %s6782_s0 = inlined_call_operand.hbm [shape: f32[16,128], index: 0, kind: input, shape index: {}]   ;;  %s6783_s1 = inlined_call_operand.hbm [shape: f32[16,256], index: 1, kind: input, shape index: {}]   ;;  %s6784_s2 = inlined_call_operand.hbm [shape: f32[2,2,128], index: 2, kind: input, shape index: {}]   ;;  %s6785_s3 = inlined_call_operand.vmem [shape: f32[2,2,128], index: 3, kind: input, shape index: {}]   ;;  %s6786_s4 = inlined_call_operand.hbm [shape: f32[128,512], index: 4, kind: input, shape index: {}]   ;;  %s6787_s5 = inlined_call_operand.hbm [shape: f32[128,512], index: 5, kind: input, shape index: {}]   ;;  %s6788_s6 = inlined_call_operand.vmem [shape: f32[1,512], index: 6, kind: input, shape index: {}]   ;;  %s6789_s7 = inlined_call_operand.hbm [shape: f32[128,512], index: 7, kind: input, shape index: {}]   ;;  %s6790_s8 = inlined_call_operand.hbm [shape: f32[128,512], index: 8, kind: input, shape index: {}]   ;;  %s6791_s9 = inlined_call_operand.vmem [shape: f32[1,512], index: 9, kind: input, shape index: {}]   ;;  %s6792_s10 = inlined_call_operand.hbm [shape: f32[128,128], index: 10, kind: input, shape index: {}]   ;;  %s6793_s11 = inlined_call_operand.hbm [shape: f32[256,128], index: 11, kind: input, shape index: {}]   ;;  %s6794_s12 = inlined_call_operand.vmem [shape: f32[1,128], index: 12, kind: input, shape index: {}]   ;;  %s6795_s13 = inlined_call_operand.hbm [shape: f32[16,128], index: 13, kind: output, shape index: {}]  }
   0x1   :  { %19 = vsyncpa [#allocation8], 0 }
   0x2   :  { %20 = vsyncpa [#allocation11], 0 }
   0x3   :  { %21 = vsyncpa [#allocation14], 0 }
   0x4   :  { %22 = vsyncpa [#allocation17], 0 }
   0x5   :  { %23 = vsyncpa [#allocation6], 0  ;;  %s4803_s25 = smov [#allocation7]  }
   0x6   :  { %s41_s26 = sshll.u32 %s4803_s25, 4  ;;  %s42_s26 = int_to_ptr.vmem [resolvable:$true] %s41_s26 }
   0x7   :  { %s4599_s27 = scalar_lea.vmem %s42_s26, 512  ;;  %p4604_p1 = scmp.lt.s32.totalorder %s42_s26, %s42_s26 }
   0x8   :  { %p4600_p0 = scmp.ne.s32.totalorder %s42_s26, %s4599_s27  ;;  %p4605_p2 = scmp.lt.s32.totalorder %s4599_s27, %s4599_s27 }
   0xa   :  { %p4606_p3 = por %p4605_p2, %p4604_p1 }
   0xc   :  { %p4607_p4 = pnand %p4606_p3, %p4600_p0 }
   0xe   :  { %4610 = shalt.err (!%p4607_p4)
}
   0xf   :  { %s4804_s28 = smov 256   ;;  %s4805_s29 = smov 16  }
  0x10   :  { %47 = dma.hbm_to_vmem [thread:$0]  %s6783_s1, 512, %s42_s26, [#allocation8], %s4804_s28, %s4804_s28, %s4805_s29  }
  0x11   :  { %s4806_s15 = smov [#allocation10]   ;;  %s4807_s17 = smov [#allocation13]  }
  0x12   :  { %s67_s16 = sshll.u32 %s4806_s15, 4  ;;  %s93_s18 = sshll.u32 %s4807_s17, 4  ;;  %s68_s16 = int_to_ptr.vmem [resolvable:$true] %s67_s16  ;;  %s94_s18 = int_to_ptr.vmem [resolvable:$true] %s93_s18 }
  0x13   :  { %s4619_s19 = scalar_lea.vmem %s68_s16, 8192  ;;  %p4624_p6 = scmp.lt.s32.totalorder %s68_s16, %s68_s16 }
  0x14   :  { %p4620_p5 = scmp.ne.s32.totalorder %s68_s16, %s4619_s19  ;;  %p4625_p7 = scmp.lt.s32.totalorder %s4619_s19, %s4619_s19 }
  0x16   :  { %p4626_p8 = por %p4625_p7, %p4624_p6 }
  0x18   :  { %p4627_p9 = pnand %p4626_p8, %p4620_p5 }
  0x1a   :  { %4630 = shalt.err (!%p4627_p9)
}
  0x1b   :  { %s4808_s20 = smov 512   ;;  %s4809_s21 = smov 32  }
  0x1c   :  { %73 = dma.hbm_to_vmem [thread:$0]  %s6786_s4, 8192, %s68_s16, [#allocation11], %s4808_s20, %s4808_s20, %s4809_s21  }
  0x1d   :  { %s4639_s1 = scalar_lea.vmem %s94_s18, 8192  ;;  %p4644_p11 = scmp.lt.s32.totalorder %s94_s18, %s94_s18 }
  0x1e   :  { %p4640_p10 = scmp.ne.s32.totalorder %s94_s18, %s4639_s1  ;;  %p4645_p12 = scmp.lt.s32.totalorder %s4639_s1, %s4639_s1 }
  0x20   :  { %p4646_p13 = por %p4645_p12, %p4644_p11 }
  0x22   :  { %p4647_p0 = pnand %p4646_p13, %p4640_p10 }
  0x24   :  { %4650 = shalt.err (!%p4647_p0)
}
  0x25   :  { %99 = dma.hbm_to_vmem [thread:$0]  %s6789_s7, 8192, %s94_s18, [#allocation14], %s4808_s20, %s4808_s20, %s4809_s21  }
  0x26   :  { %s4810_s26 = smov [#allocation16]   ;;  %s4811_s28 = smov [#allocation4]  }
  0x27   :  { %s119_s27 = sshll.u32 %s4810_s26, 4  ;;  %s29_s4 = sshll.u32 %s4811_s28, 4  ;;  %s120_s27 = int_to_ptr.vmem [resolvable:$true] %s119_s27  ;;  %s30_s4 = int_to_ptr.vmem [resolvable:$true] %s29_s4 }
  0x28   :  { %s4659_s29 = scalar_lea.vmem %s120_s27, 2048  ;;  %p4664_p2 = scmp.lt.s32.totalorder %s120_s27, %s120_s27 }
  0x29   :  { %p4660_p1 = scmp.ne.s32.totalorder %s120_s27, %s4659_s29  ;;  %p4665_p3 = scmp.lt.s32.totalorder %s4659_s29, %s4659_s29 }
  0x2b   :  { %p4666_p4 = por %p4665_p3, %p4664_p2 }
  0x2d   :  { %p4667_p5 = pnand %p4666_p4, %p4660_p1 }
  0x2f   :  { %4670 = shalt.err (!%p4667_p5)
}
  0x30   :  { %s4812_s30 = smov 128   ;;  %s4813_s14 = smov 8  }
  0x31   :  { %125 = dma.hbm_to_vmem [thread:$0]  %s6792_s10, 2048, %s120_s27, [#allocation17], %s4812_s30, %s4812_s30, %s4813_s14  }
  0x32   :  { %s4679_s7 = scalar_lea.vmem %s30_s4, 256  ;;  %p4684_p7 = scmp.lt.s32.totalorder %s30_s4, %s30_s4 }
  0x33   :  { %p4680_p6 = scmp.ne.s32.totalorder %s30_s4, %s4679_s7  ;;  %p4685_p8 = scmp.lt.s32.totalorder %s4679_s7, %s4679_s7 }
  0x35   :  { %p4686_p9 = por %p4685_p8, %p4684_p7 }
  0x37   :  { %p4687_p10 = pnand %p4686_p9, %p4680_p6 }
  0x39   :  { %4690 = shalt.err (!%p4687_p10)
}
  0x3a   :  { %35 = dma.hbm_to_vmem [thread:$0]  %s6782_s0, 256, %s30_s4, [#allocation5], %s4812_s30, %s4812_s30, %s4813_s14  }
  0x3b   :  { %s4814_s19 = smov [#allocation9]  }
  0x3c   :  { %s53_s22 = sshll.u32 %s4814_s19, 4  ;;  %s54_s22 = int_to_ptr.vmem [resolvable:$true] %s53_s22 }
  0x3d   :  { %s4699_s23 = scalar_lea.vmem %s54_s22, 64  ;;  %p4704_p12 = scmp.lt.s32.totalorder %s54_s22, %s54_s22 }
  0x3e   :  { %p4700_p11 = scmp.ne.s32.totalorder %s54_s22, %s4699_s23  ;;  %p4705_p13 = scmp.lt.s32.totalorder %s4699_s23, %s4699_s23 }
  0x40   :  { %p4706_p0 = por %p4705_p13, %p4704_p12 }
  0x42   :  { %p4707_p1 = pnand %p4706_p0, %p4700_p11 }
  0x44   :  { %4710 = shalt.err (!%p4707_p1)
}
  0x45   :  { %s4815_s10 = smov 2   ;;  %s4816_s25 = smov [#allocation12]  }
  0x46   :  { %59 = dma.hbm_to_vmem [thread:$0]  %s6784_s2, 64, %s54_s22, [#allocation8], %s4809_s21, %s4809_s21, %s4815_s10  }
  0x47   :  { %s79_s26 = sshll.u32 %s4816_s25, 4  ;;  %s4817_s0 = smov [#allocation15]   ;;  %s80_s26 = int_to_ptr.vmem [resolvable:$true] %s79_s26 }
  0x48   :  { %s105_s27 = sshll.u32 %s4817_s0, 4  ;;  %s4719_s28 = scalar_lea.vmem %s80_s26, 8192  ;;  %s106_s27 = int_to_ptr.vmem [resolvable:$true] %s105_s27 }
  0x49   :  { %p4720_p2 = scmp.ne.s32.totalorder %s80_s26, %s4719_s28  ;;  %p4724_p3 = scmp.lt.s32.totalorder %s80_s26, %s80_s26 }
  0x4a   :  { %p4725_p4 = scmp.lt.s32.totalorder %s4719_s28, %s4719_s28 }
  0x4c   :  { %p4726_p5 = por %p4725_p4, %p4724_p3 }
  0x4e   :  { %p4727_p6 = pnand %p4726_p5, %p4720_p2 }
  0x50   :  { %4730 = shalt.err (!%p4727_p6)
}
  0x51   :  { %85 = dma.hbm_to_vmem [thread:$0]  %s6787_s5, 8192, %s80_s26, [#allocation11], %s4808_s20, %s4808_s20, %s4809_s21  }
  0x52   :  { %s4739_s2 = scalar_lea.vmem %s106_s27, 8192  ;;  %p4744_p8 = scmp.lt.s32.totalorder %s106_s27, %s106_s27 }
  0x53   :  { %p4740_p7 = scmp.ne.s32.totalorder %s106_s27, %s4739_s2  ;;  %p4745_p9 = scmp.lt.s32.totalorder %s4739_s2, %s4739_s2 }
  0x55   :  { %p4746_p10 = por %p4745_p9, %p4744_p8 }
  0x57   :  { %p4747_p11 = pnand %p4746_p10, %p4740_p7 }
  0x59   :  { %4750 = shalt.err (!%p4747_p11)
}
  0x5a   :  { %111 = dma.hbm_to_vmem [thread:$0]  %s6790_s8, 8192, %s106_s27, [#allocation14], %s4808_s20, %s4808_s20, %s4809_s21  }
  0x5b   :  { %s4818_s7 = smov [#allocation18]  }
  0x5c   :  { %s131_s17 = sshll.u32 %s4818_s7, 4  ;;  %s132_s17 = int_to_ptr.vmem [resolvable:$true] %s131_s17 }
  0x5d   :  { %s4759_s18 = scalar_lea.vmem %s132_s17, 4096  ;;  %p4764_p13 = scmp.lt.s32.totalorder %s132_s17, %s132_s17 }
  0x5e   :  { %p4760_p12 = scmp.ne.s32.totalorder %s132_s17, %s4759_s18  ;;  %p4765_p0 = scmp.lt.s32.totalorder %s4759_s18, %s4759_s18 }
  0x60   :  { %p4766_p1 = por %p4765_p0, %p4764_p13 }
  0x62   :  { %p4767_p2 = pnand %p4766_p1, %p4760_p12 }
  0x64   :  { %4770 = shalt.err (!%p4767_p2)
}
  0x65   :  { %137 = dma.hbm_to_vmem [thread:$0]  %s6793_s11, 4096, %s132_s17, [#allocation17], %s4812_s30, %s4812_s30, %s4813_s14  }
  0x66   :  { %4791 = dma.done.wait [#allocation5], 256  }
  0x67   :  { %4792 = vsyncadd [#allocation5], 4294967040 }
  0x68   :  { %4793 = dma.done.wait [#allocation8], 576  }
  0x69   :  { %4794 = vsyncadd [#allocation8], 4294966720 }
  0x6a   :  { %4795 = dma.done.wait [#allocation11], 16384  }
  0x6b   :  { %4796 = vsyncadd [#allocation11], 4294950912 }
  0x6c   :  { %4797 = dma.done.wait [#allocation14], 16384  }
  0x6d   :  { %4798 = vsyncadd [#allocation14], 4294950912 }
  0x6e   :  { %4799 = dma.done.wait [#allocation17], 6144  }
  0x6f   :  { %4800 = vsyncadd [#allocation17], 4294961152  ;;  %v6798_v0 = vmov 0.0   ;;  %v230_v1 = vld [vmem:[#allocation10 + $0x1e8] sm:$0xff]  ;;  %v232_v2 = vld [vmem:[#allocation10 + $0x1f8] sm:$0xff] }
  0x70   :  { %319 = vmatprep.mubr.f32.mxu0 %v6798_v0  ;;  %396 = vmatprep.mubr.f32.mxu1 %v6798_v0  ;;  %v229_v3 = vld [vmem:[#allocation10 + $0x1e0] sm:$0xff]  ;;  %v231_v4 = vld [vmem:[#allocation10 + $0x1f0] sm:$0xff]  ;;  %v226_v5 = vld [vmem:[#allocation10 + $0x1c8] sm:$0xff] }
  0x71   :  { %255 = vmatprep.subr.mxu0 %v230_v1  ;;  %332 = vmatprep.subr.mxu1 %v232_v2  ;;  %v228_v6 = vld [vmem:[#allocation10 + $0x1d8] sm:$0xff]  ;;  %v225_v7 = vld [vmem:[#allocation10 + $0x1c0] sm:$0xff]  ;;  %v227_v8 = vld [vmem:[#allocation10 + $0x1d0] sm:$0xff] }
  0x72   :  { %256 = vmatpush1.msra.mxu0 %v229_v3  ;;  %333 = vmatpush1.msra.mxu1 %v231_v4  ;;  %v222_v9 = vld [vmem:[#allocation10 + $0x1a8] sm:$0xff]  ;;  %v224_v10 = vld [vmem:[#allocation10 + $0x1b8] sm:$0xff]  ;;  %v221_v11 = vld [vmem:[#allocation10 + $0x1a0] sm:$0xff] }
  0x73   :  { %257 = vmatprep.subr.mxu0 %v226_v5  ;;  %334 = vmatprep.subr.mxu1 %v228_v6  ;;  %v223_v12 = vld [vmem:[#allocation10 + $0x1b0] sm:$0xff]  ;;  %v218_v13 = vld [vmem:[#allocation10 + $0x188] sm:$0xff]  ;;  %v220_v14 = vld [vmem:[#allocation10 + $0x198] sm:$0xff] }
  0x74   :  { %258 = vmatpush1.msra.mxu0 %v225_v7  ;;  %335 = vmatpush1.msra.mxu1 %v227_v8  ;;  %v217_v15 = vld [vmem:[#allocation10 + $0x180] sm:$0xff]  ;;  %v219_v16 = vld [vmem:[#allocation10 + $0x190] sm:$0xff]  ;;  %v214_v17 = vld [vmem:[#allocation10 + $0x168] sm:$0xff] }
  0x75   :  { %259 = vmatprep.subr.mxu0 %v222_v9  ;;  %336 = vmatprep.subr.mxu1 %v224_v10  ;;  %v216_v18 = vld [vmem:[#allocation10 + $0x178] sm:$0xff]  ;;  %v213_v19 = vld [vmem:[#allocation10 + $0x160] sm:$0xff]  ;;  %v215_v20 = vld [vmem:[#allocation10 + $0x170] sm:$0xff] }
  0x76   :  { %260 = vmatpush1.msra.mxu0 %v221_v11  ;;  %337 = vmatpush1.msra.mxu1 %v223_v12  ;;  %v210_v21 = vld [vmem:[#allocation10 + $0x148] sm:$0xff]  ;;  %v212_v22 = vld [vmem:[#allocation10 + $0x158] sm:$0xff]  ;;  %v209_v23 = vld [vmem:[#allocation10 + $0x140] sm:$0xff] }
  0x77   :  { %261 = vmatprep.subr.mxu0 %v218_v13  ;;  %338 = vmatprep.subr.mxu1 %v220_v14  ;;  %v211_v24 = vld [vmem:[#allocation10 + $0x150] sm:$0xff]  ;;  %v206_v25 = vld [vmem:[#allocation10 + $0x128] sm:$0xff]  ;;  %v208_v26 = vld [vmem:[#allocation10 + $0x138] sm:$0xff] }
  0x78   :  { %262 = vmatpush1.msra.mxu0 %v217_v15  ;;  %339 = vmatpush1.msra.mxu1 %v219_v16  ;;  %v205_v27 = vld [vmem:[#allocation10 + $0x120] sm:$0xff]  ;;  %v207_v28 = vld [vmem:[#allocation10 + $0x130] sm:$0xff]  ;;  %v202_v29 = vld [vmem:[#allocation10 + $0x108] sm:$0xff] }
  0x79   :  { %263 = vmatprep.subr.mxu0 %v214_v17  ;;  %340 = vmatprep.subr.mxu1 %v216_v18  ;;  %v204_v30 = vld [vmem:[#allocation10 + $0x118] sm:$0xff]  ;;  %v201_v31 = vld [vmem:[#allocation10 + $0x100] sm:$0xff]  ;;  %v203_v32 = vld [vmem:[#allocation10 + $0x110] sm:$0xff] }
  0x7a   :  { %264 = vmatpush1.msra.mxu0 %v213_v19  ;;  %341 = vmatpush1.msra.mxu1 %v215_v20  ;;  %v198_v33 = vld [vmem:[#allocation10 + $0xe8] sm:$0xff]  ;;  %v200_v34 = vld [vmem:[#allocation10 + $0xf8] sm:$0xff]  ;;  %v197_v35 = vld [vmem:[#allocation10 + $0xe0] sm:$0xff] }
  0x7b   :  { %265 = vmatprep.subr.mxu0 %v210_v21  ;;  %342 = vmatprep.subr.mxu1 %v212_v22  ;;  %v199_v36 = vld [vmem:[#allocation10 + $0xf0] sm:$0xff]  ;;  %v194_v37 = vld [vmem:[#allocation10 + $0xc8] sm:$0xff]  ;;  %v196_v38 = vld [vmem:[#allocation10 + $0xd8] sm:$0xff] }
  0x7c   :  { %266 = vmatpush1.msra.mxu0 %v209_v23  ;;  %343 = vmatpush1.msra.mxu1 %v211_v24  ;;  %v193_v39 = vld [vmem:[#allocation10 + $0xc0] sm:$0xff]  ;;  %v195_v40 = vld [vmem:[#allocation10 + $0xd0] sm:$0xff]  ;;  %v190_v41 = vld [vmem:[#allocation10 + $0xa8] sm:$0xff] }
  0x7d   :  { %267 = vmatprep.subr.mxu0 %v206_v25  ;;  %344 = vmatprep.subr.mxu1 %v208_v26  ;;  %v192_v42 = vld [vmem:[#allocation10 + $0xb8] sm:$0xff]  ;;  %v189_v43 = vld [vmem:[#allocation10 + $0xa0] sm:$0xff]  ;;  %v191_v44 = vld [vmem:[#allocation10 + $0xb0] sm:$0xff] }
  0x7e   :  { %268 = vmatpush1.msra.mxu0 %v205_v27  ;;  %345 = vmatpush1.msra.mxu1 %v207_v28  ;;  %v186_v45 = vld [vmem:[#allocation10 + $0x88] sm:$0xff]  ;;  %v188_v46 = vld [vmem:[#allocation10 + $0x98] sm:$0xff]  ;;  %v185_v47 = vld [vmem:[#allocation10 + $0x80] sm:$0xff] }
  0x7f   :  { %269 = vmatprep.subr.mxu0 %v202_v29  ;;  %346 = vmatprep.subr.mxu1 %v204_v30  ;;  %v187_v48 = vld [vmem:[#allocation10 + $0x90] sm:$0xff]  ;;  %v182_v49 = vld [vmem:[#allocation10 + $0x68] sm:$0xff]  ;;  %v184_v50 = vld [vmem:[#allocation10 + $0x78] sm:$0xff] }
  0x80   :  { %270 = vmatpush1.msra.mxu0 %v201_v31  ;;  %347 = vmatpush1.msra.mxu1 %v203_v32  ;;  %v181_v51 = vld [vmem:[#allocation10 + $0x60] sm:$0xff]  ;;  %v183_v52 = vld [vmem:[#allocation10 + $0x70] sm:$0xff]  ;;  %v178_v53 = vld [vmem:[#allocation10 + $0x48] sm:$0xff] }
  0x81   :  { %271 = vmatprep.subr.mxu0 %v198_v33  ;;  %348 = vmatprep.subr.mxu1 %v200_v34  ;;  %v180_v54 = vld [vmem:[#allocation10 + $0x58] sm:$0xff]  ;;  %v177_v55 = vld [vmem:[#allocation10 + $0x40] sm:$0xff]  ;;  %v179_v56 = vld [vmem:[#allocation10 + $0x50] sm:$0xff] }
  0x82   :  { %272 = vmatpush1.msra.mxu0 %v197_v35  ;;  %349 = vmatpush1.msra.mxu1 %v199_v36  ;;  %v174_v57 = vld [vmem:[#allocation10 + $0x28] sm:$0xff]  ;;  %v176_v58 = vld [vmem:[#allocation10 + $0x38] sm:$0xff]  ;;  %v173_v59 = vld [vmem:[#allocation10 + $0x20] sm:$0xff] }
  0x83   :  { %273 = vmatprep.subr.mxu0 %v194_v37  ;;  %350 = vmatprep.subr.mxu1 %v196_v38  ;;  %v175_v60 = vld [vmem:[#allocation10 + $0x30] sm:$0xff]  ;;  %v170_v61 = vld [vmem:[#allocation10 + $0x8] sm:$0xff]  ;;  %v172_v62 = vld [vmem:[#allocation10 + $0x18] sm:$0xff] }
  0x84   :  { %274 = vmatpush1.msra.mxu0 %v193_v39  ;;  %351 = vmatpush1.msra.mxu1 %v195_v40  ;;  %v169_v63 = vld [vmem:[#allocation10] sm:$0xff]  ;;  %v171_v1 = vld [vmem:[#allocation10 + $0x10] sm:$0xff]  ;;  %v4943_v3 = vld [vmem:[#allocation12 + $0x1e8] sm:$0xff] }
  0x85   :  { %275 = vmatprep.subr.mxu0 %v190_v41  ;;  %352 = vmatprep.subr.mxu1 %v192_v42  ;;  %v167_v2 = vld [vmem:[#allocation4] sm:$0xff]  ;;  %7000 = vst [vmem:[#allocation26_spill] sm:$0xff] %v4943_v3  ;;  %v4945_v4 = vld [vmem:[#allocation12 + $0x1f8] sm:$0xff]  ;;  %v4947_v5 = vld [vmem:[#allocation12 + $0x1e0] sm:$0xff] }
  0x86   :  { %276 = vmatpush1.msra.mxu0 %v189_v43  ;;  %353 = vmatpush1.msra.mxu1 %v191_v44  ;;  %7001 = vst [vmem:[#allocation27_spill] sm:$0xff] %v4945_v4  ;;  %v4949_v6 = vld [vmem:[#allocation12 + $0x1f0] sm:$0xff]  ;;  %v4952_v7 = vld [vmem:[#allocation12 + $0x1c8] sm:$0xff]  ;;  %v4954_v8 = vld [vmem:[#allocation12 + $0x1d8] sm:$0xff] }
  0x87   :  { %277 = vmatprep.subr.mxu0 %v186_v45  ;;  %354 = vmatprep.subr.mxu1 %v188_v46  ;;  %v4957_v9 = vld [vmem:[#allocation12 + $0x1c0] sm:$0xff]  ;;  %v4959_v10 = vld [vmem:[#allocation12 + $0x1d0] sm:$0xff]  ;;  %v4963_v11 = vld [vmem:[#allocation12 + $0x1a8] sm:$0xff] }
  0x88   :  { %278 = vmatpush1.msra.mxu0 %v185_v47  ;;  %355 = vmatpush1.msra.mxu1 %v187_v48  ;;  %v4965_v12 = vld [vmem:[#allocation12 + $0x1b8] sm:$0xff]  ;;  %v4969_v13 = vld [vmem:[#allocation12 + $0x1a0] sm:$0xff]  ;;  %v4971_v14 = vld [vmem:[#allocation12 + $0x1b0] sm:$0xff] }
  0x89   :  { %279 = vmatprep.subr.mxu0 %v182_v49  ;;  %356 = vmatprep.subr.mxu1 %v184_v50  ;;  %v4975_v15 = vld [vmem:[#allocation12 + $0x188] sm:$0xff]  ;;  %v4977_v16 = vld [vmem:[#allocation12 + $0x198] sm:$0xff]  ;;  %v4981_v17 = vld [vmem:[#allocation12 + $0x180] sm:$0xff] }
  0x8a   :  { %280 = vmatpush1.msra.mxu0 %v181_v51  ;;  %357 = vmatpush1.msra.mxu1 %v183_v52  ;;  %v4983_v18 = vld [vmem:[#allocation12 + $0x190] sm:$0xff]  ;;  %v4987_v19 = vld [vmem:[#allocation12 + $0x168] sm:$0xff]  ;;  %v4989_v20 = vld [vmem:[#allocation12 + $0x178] sm:$0xff] }
  0x8b   :  { %281 = vmatprep.subr.mxu0 %v178_v53  ;;  %358 = vmatprep.subr.mxu1 %v180_v54  ;;  %v4993_v21 = vld [vmem:[#allocation12 + $0x160] sm:$0xff]  ;;  %v4995_v22 = vld [vmem:[#allocation12 + $0x170] sm:$0xff]  ;;  %v4999_v23 = vld [vmem:[#allocation12 + $0x148] sm:$0xff] }
  0x8c   :  { %282 = vmatpush1.msra.mxu0 %v177_v55  ;;  %359 = vmatpush1.msra.mxu1 %v179_v56  ;;  %v5001_v24 = vld [vmem:[#allocation12 + $0x158] sm:$0xff]  ;;  %v5005_v25 = vld [vmem:[#allocation12 + $0x140] sm:$0xff]  ;;  %v5007_v26 = vld [vmem:[#allocation12 + $0x150] sm:$0xff] }
  0x8d   :  { %283 = vmatprep.subr.mxu0 %v174_v57  ;;  %360 = vmatprep.subr.mxu1 %v176_v58  ;;  %v5011_v27 = vld [vmem:[#allocation12 + $0x128] sm:$0xff]  ;;  %v5013_v28 = vld [vmem:[#allocation12 + $0x138] sm:$0xff]  ;;  %v5017_v29 = vld [vmem:[#allocation12 + $0x120] sm:$0xff] }
  0x8e   :  { %284 = vmatpush1.msra.mxu0 %v173_v59  ;;  %361 = vmatpush1.msra.mxu1 %v175_v60  ;;  %v5019_v30 = vld [vmem:[#allocation12 + $0x130] sm:$0xff]  ;;  %v5023_v31 = vld [vmem:[#allocation12 + $0x108] sm:$0xff]  ;;  %v5025_v32 = vld [vmem:[#allocation12 + $0x118] sm:$0xff] }
  0x8f   :  { %285 = vmatprep.subr.mxu0 %v170_v61  ;;  %362 = vmatprep.subr.mxu1 %v172_v62  ;;  %v5029_v33 = vld [vmem:[#allocation12 + $0x100] sm:$0xff]  ;;  %v5031_v34 = vld [vmem:[#allocation12 + $0x110] sm:$0xff]  ;;  %v5035_v35 = vld [vmem:[#allocation12 + $0xe8] sm:$0xff] }
  0x90   :  { %286 = vmatpush1.msra.mxu0 %v169_v63  ;;  %363 = vmatpush1.msra.mxu1 %v171_v1  ;;  %v5037_v36 = vld [vmem:[#allocation12 + $0xf8] sm:$0xff]  ;;  %v5041_v37 = vld [vmem:[#allocation12 + $0xe0] sm:$0xff]  ;;  %v5043_v38 = vld [vmem:[#allocation12 + $0xf0] sm:$0xff] }
  0x91   :  { %320 = vmatmul.mubr.f32.vlgmr.msra.gmra.mxu0 %v167_v2  ;;  %475 = vmatprep.subr.mxu0 %v4943_v3  ;;  %v5047_v39 = vld [vmem:[#allocation12 + $0xc8] sm:$0xff]  ;;  %v5049_v40 = vld [vmem:[#allocation12 + $0xd8] sm:$0xff]  ;;  %v5053_v41 = vld [vmem:[#allocation12 + $0xc0] sm:$0xff] }
  0x92   :  { %546 = vmatprep.subr.mxu1 %v4945_v4  ;;  %397 = vmatmul.mubr.f32.vlgmr.msra.gmra.mxu1 %v167_v2  ;;  %v5055_v42 = vld [vmem:[#allocation12 + $0xd0] sm:$0xff]  ;;  %v5059_v43 = vld [vmem:[#allocation12 + $0xa8] sm:$0xff]  ;;  %v5061_v44 = vld [vmem:[#allocation12 + $0xb8] sm:$0xff] }
  0x93   :  { %476 = vmatpush1.msra.mxu0 %v4947_v5  ;;  %547 = vmatpush1.msra.mxu1 %v4949_v6  ;;  %v5065_v45 = vld [vmem:[#allocation12 + $0xa0] sm:$0xff]  ;;  %v5067_v46 = vld [vmem:[#allocation12 + $0xb0] sm:$0xff]  ;;  %v5071_v47 = vld [vmem:[#allocation12 + $0x88] sm:$0xff] }
  0x94   :  { %477 = vmatprep.subr.mxu0 %v4952_v7  ;;  %548 = vmatprep.subr.mxu1 %v4954_v8  ;;  %7002 = vst [vmem:[#allocation28_spill] sm:$0xff] %v5067_v46  ;;  %7003 = vst [vmem:[#allocation29_spill] sm:$0xff] %v5071_v47  ;;  %v5073_v48 = vld [vmem:[#allocation12 + $0x98] sm:$0xff]  ;;  %v5077_v49 = vld [vmem:[#allocation12 + $0x80] sm:$0xff] }
  0x95   :  { %478 = vmatpush1.msra.mxu0 %v4957_v9  ;;  %549 = vmatpush1.msra.mxu1 %v4959_v10  ;;  %7004 = vst [vmem:[#allocation30_spill] sm:$0xff] %v5073_v48  ;;  %7005 = vst [vmem:[#allocation31_spill] sm:$0xff] %v5077_v49  ;;  %v5079_v50 = vld [vmem:[#allocation12 + $0x90] sm:$0xff]  ;;  %v5083_v51 = vld [vmem:[#allocation12 + $0x68] sm:$0xff] }
  0x96   :  { %479 = vmatprep.subr.mxu0 %v4963_v11  ;;  %550 = vmatprep.subr.mxu1 %v4965_v12  ;;  %7006 = vst [vmem:[#allocation32_spill] sm:$0xff] %v5079_v50  ;;  %7007 = vst [vmem:[#allocation33_spill] sm:$0xff] %v5083_v51  ;;  %v5085_v52 = vld [vmem:[#allocation12 + $0x78] sm:$0xff]  ;;  %v5089_v53 = vld [vmem:[#allocation12 + $0x60] sm:$0xff] }
  0x97   :  { %480 = vmatpush1.msra.mxu0 %v4969_v13  ;;  %551 = vmatpush1.msra.mxu1 %v4971_v14  ;;  %7008 = vst [vmem:[#allocation34_spill] sm:$0xff] %v5085_v52  ;;  %7009 = vst [vmem:[#allocation35_spill] sm:$0xff] %v5089_v53  ;;  %v5093_v54 = vld [vmem:[#allocation12 + $0x70] sm:$0xff]  ;;  %v5097_v56 = vld [vmem:[#allocation12 + $0x48] sm:$0xff] }
  0x98   :  { %481 = vmatprep.subr.mxu0 %v4975_v15  ;;  %552 = vmatprep.subr.mxu1 %v4977_v16  ;;  %7010 = vst [vmem:[#allocation36_spill] sm:$0xff] %v5093_v54  ;;  %v168_v55 = vld [vmem:[#allocation4 + $0x8] sm:$0xff]  ;;  %7011 = vst [vmem:[#allocation37_spill] sm:$0xff] %v5097_v56  ;;  %v5103_v58 = vld [vmem:[#allocation12 + $0x40] sm:$0xff] }
  0x99   :  { %482 = vmatpush1.msra.mxu0 %v4981_v17  ;;  %553 = vmatpush1.msra.mxu1 %v4983_v18  ;;  %v5099_v57 = vld [vmem:[#allocation12 + $0x58] sm:$0xff]  ;;  %7013 = vst [vmem:[#allocation39_spill] sm:$0xff] %v5103_v58  ;;  %v5106_v59 = vld [vmem:[#allocation12 + $0x50] sm:$0xff]  ;;  %v5108_v60 = vld [vmem:[#allocation12 + $0x28] sm:$0xff] }
  0x9a   :  { %483 = vmatprep.subr.mxu0 %v4987_v19  ;;  %554 = vmatprep.subr.mxu1 %v4989_v20  ;;  %7012 = vst [vmem:[#allocation38_spill] sm:$0xff] %v5099_v57  ;;  %7014 = vst [vmem:[#allocation40_spill] sm:$0xff] %v5106_v59  ;;  %v5112_v61 = vld [vmem:[#allocation12 + $0x38] sm:$0xff]  ;;  %v5116_v62 = vld [vmem:[#allocation12 + $0x20] sm:$0xff] }
  0x9b   :  { %484 = vmatpush1.msra.mxu0 %v4993_v21  ;;  %555 = vmatpush1.msra.mxu1 %v4995_v22  ;;  %7015 = vst [vmem:[#allocation41_spill] sm:$0xff] %v5108_v60  ;;  %7016 = vst [vmem:[#allocation42_spill] sm:$0xff] %v5112_v61  ;;  %v5118_v63 = vld [vmem:[#allocation12 + $0x30] sm:$0xff]  ;;  %v5122_v1 = vld [vmem:[#allocation12 + $0x8] sm:$0xff] }
  0x9c   :  { %485 = vmatprep.subr.mxu0 %v4999_v23  ;;  %556 = vmatprep.subr.mxu1 %v5001_v24  ;;  %7017 = vst [vmem:[#allocation43_spill] sm:$0xff] %v5116_v62  ;;  %7018 = vst [vmem:[#allocation44_spill] sm:$0xff] %v5118_v63  ;;  %v5124_v2 = vld [vmem:[#allocation12 + $0x18] sm:$0xff] }
  0x9d   :  { %486 = vmatpush1.msra.mxu0 %v5005_v25  ;;  %557 = vmatpush1.msra.mxu1 %v5007_v26  ;;  %7019 = vst [vmem:[#allocation45_spill] sm:$0xff] %v5122_v1  ;;  %7020 = vst [vmem:[#allocation46_spill] sm:$0xff] %v5124_v2 }
  0x9e   :  { %487 = vmatprep.subr.mxu0 %v5011_v27  ;;  %558 = vmatprep.subr.mxu1 %v5013_v28 }
  0x9f   :  { %488 = vmatpush1.msra.mxu0 %v5017_v29  ;;  %559 = vmatpush1.msra.mxu1 %v5019_v30 }
  0xa0   :  { %489 = vmatprep.subr.mxu0 %v5023_v31  ;;  %560 = vmatprep.subr.mxu1 %v5025_v32 }
  0xa1   :  { %490 = vmatpush1.msra.mxu0 %v5029_v33  ;;  %561 = vmatpush1.msra.mxu1 %v5031_v34 }
  0xa2   :  { %491 = vmatprep.subr.mxu0 %v5035_v35  ;;  %562 = vmatprep.subr.mxu1 %v5037_v36 }
  0xa3   :  { %492 = vmatpush1.msra.mxu0 %v5041_v37  ;;  %563 = vmatpush1.msra.mxu1 %v5043_v38 }
  0xa4   :  { %493 = vmatprep.subr.mxu0 %v5047_v39  ;;  %564 = vmatprep.subr.mxu1 %v5049_v40 }
  0xa5   :  { %494 = vmatpush1.msra.mxu0 %v5053_v41  ;;  %565 = vmatpush1.msra.mxu1 %v5055_v42 }
  0xa6   :  { %495 = vmatprep.subr.mxu0 %v5059_v43  ;;  %566 = vmatprep.subr.mxu1 %v5061_v44 }
  0xa7   :  { %496 = vmatpush1.msra.mxu0 %v5065_v45  ;;  %567 = vmatpush1.msra.mxu1 %v5067_v46 }
  0xa8   :  { %497 = vmatprep.subr.mxu0 %v5071_v47  ;;  %568 = vmatprep.subr.mxu1 %v5073_v48 }
  0xa9   :  { %498 = vmatpush1.msra.mxu0 %v5077_v49  ;;  %569 = vmatpush1.msra.mxu1 %v5079_v50 }
  0xaa   :  { %499 = vmatprep.subr.mxu0 %v5083_v51  ;;  %570 = vmatprep.subr.mxu1 %v5085_v52 }
  0xab   :  { %325 = vmatprep.mubr.f32.mxu0 %v6798_v0  ;;  %500 = vmatpush1.msra.mxu0 %v5089_v53 }
  0xac   :  { %571 = vmatpush1.msra.mxu1 %v5093_v54  ;;  %326 = vmatmul.mubr.f32.gmra.mxu0 %v168_v55 }
  0xad   :  { %501 = vmatprep.subr.mxu0 %v5097_v56  ;;  %572 = vmatprep.subr.mxu1 %v5099_v57  ;;  %v5127_v57 = vld [vmem:[#allocation12] sm:$0xff] }
  0xae   :  { %402 = vmatprep.mubr.f32.mxu1 %v6798_v0  ;;  %502 = vmatpush1.msra.mxu0 %v5103_v58  ;;  %7021 = vst [vmem:[#allocation47_spill] sm:$0xff] %v5127_v57  ;;  %v5131_v0 = vld [vmem:[#allocation12 + $0x10] sm:$0xff] }
  0xaf   :  { %573 = vmatpush1.msra.mxu1 %v5106_v59  ;;  %503 = vmatprep.subr.mxu0 %v5108_v60  ;;  %7022 = vst [vmem:[#allocation48_spill] sm:$0xff] %v5131_v0  ;;  %v473_v60 = vld [vmem:[#allocation9] sm:$0x3]  ;;  %v7023_v59 = vmov 0.0  }
  0xb0   :  { %403 = vmatmul.mubr.f32.gmra.mxu1 %v168_v55  ;;  %574 = vmatprep.subr.mxu1 %v5112_v61  ;;  %v7024_v55 = vld [vmem:[#allocation38_spill] sm:$0xff] }
  0xb1   :  { %504 = vmatpush1.msra.mxu0 %v5116_v62  ;;  %575 = vmatpush1.msra.mxu1 %v5118_v63 }
  0xb2   :  { %505 = vmatprep.subr.mxu0 %v5122_v1  ;;  %576 = vmatprep.subr.mxu1 %v5124_v2 }
  0xb3   :  { %506 = vmatpush1.msra.mxu0 %v5127_v57  ;;  %539 = vmatprep.mubr.f32.mxu0 %v7023_v59 }
  0xb4   :  { %577 = vmatpush1.msra.mxu1 %v5131_v0  ;;  %610 = vmatprep.mubr.f32.mxu1 %v7023_v59 }
  0xb5   :  { %540 = vmatmul.mubr.f32.vlgmr.msra.gmra.mxu0 %v473_v60  ;;  %611 = vmatmul.mubr.f32.vlgmr.msra.gmra.mxu1 %v473_v60  ;;  %v7025_v60 = vld [vmem:[#allocation40_spill] sm:$0xff] }
  0xb6   :  { %646 = vmatprep.subr.mxu0 %v4943_v3  ;;  %717 = vmatprep.subr.mxu1 %v4945_v4 }
  0xb7   :  { %647 = vmatpush1.msra.mxu0 %v4947_v5  ;;  %718 = vmatpush1.msra.mxu1 %v4949_v6 }
  0xb8   :  { %648 = vmatprep.subr.mxu0 %v4952_v7  ;;  %719 = vmatprep.subr.mxu1 %v4954_v8 }
  0xb9   :  { %649 = vmatpush1.msra.mxu0 %v4957_v9  ;;  %720 = vmatpush1.msra.mxu1 %v4959_v10 }
  0xba   :  { %650 = vmatprep.subr.mxu0 %v4963_v11  ;;  %721 = vmatprep.subr.mxu1 %v4965_v12 }
  0xbb   :  { %651 = vmatpush1.msra.mxu0 %v4969_v13  ;;  %722 = vmatpush1.msra.mxu1 %v4971_v14 }
  0xbc   :  { %652 = vmatprep.subr.mxu0 %v4975_v15  ;;  %723 = vmatprep.subr.mxu1 %v4977_v16 }
  0xbd   :  { %653 = vmatpush1.msra.mxu0 %v4981_v17  ;;  %724 = vmatpush1.msra.mxu1 %v4983_v18 }
  0xbe   :  { %654 = vmatprep.subr.mxu0 %v4987_v19  ;;  %725 = vmatprep.subr.mxu1 %v4989_v20 }
  0xbf   :  { %655 = vmatpush1.msra.mxu0 %v4993_v21  ;;  %726 = vmatpush1.msra.mxu1 %v4995_v22 }
  0xc0   :  { %656 = vmatprep.subr.mxu0 %v4999_v23  ;;  %727 = vmatprep.subr.mxu1 %v5001_v24 }
  0xc1   :  { %657 = vmatpush1.msra.mxu0 %v5005_v25  ;;  %728 = vmatpush1.msra.mxu1 %v5007_v26 }
  0xc2   :  { %658 = vmatprep.subr.mxu0 %v5011_v27  ;;  %729 = vmatprep.subr.mxu1 %v5013_v28 }
  0xc3   :  { %659 = vmatpush1.msra.mxu0 %v5017_v29  ;;  %730 = vmatpush1.msra.mxu1 %v5019_v30 }
  0xc4   :  { %660 = vmatprep.subr.mxu0 %v5023_v31  ;;  %731 = vmatprep.subr.mxu1 %v5025_v32 }
  0xc5   :  { %661 = vmatpush1.msra.mxu0 %v5029_v33  ;;  %732 = vmatpush1.msra.mxu1 %v5031_v34 }
  0xc6   :  { %662 = vmatprep.subr.mxu0 %v5035_v35  ;;  %733 = vmatprep.subr.mxu1 %v5037_v36 }
  0xc7   :  { %663 = vmatpush1.msra.mxu0 %v5041_v37  ;;  %734 = vmatpush1.msra.mxu1 %v5043_v38 }
  0xc8   :  { %664 = vmatprep.subr.mxu0 %v5047_v39  ;;  %735 = vmatprep.subr.mxu1 %v5049_v40 }
  0xc9   :  { %665 = vmatpush1.msra.mxu0 %v5053_v41  ;;  %736 = vmatpush1.msra.mxu1 %v5055_v42 }
  0xca   :  { %666 = vmatprep.subr.mxu0 %v5059_v43  ;;  %737 = vmatprep.subr.mxu1 %v5061_v44 }
  0xcb   :  { %667 = vmatpush1.msra.mxu0 %v5065_v45  ;;  %738 = vmatpush1.msra.mxu1 %v5067_v46 }
  0xcc   :  { %668 = vmatprep.subr.mxu0 %v5071_v47  ;;  %739 = vmatprep.subr.mxu1 %v5073_v48  ;;  %v7026_v48 = vld [vmem:[#allocation41_spill] sm:$0xff] }
  0xcd   :  { %669 = vmatpush1.msra.mxu0 %v5077_v49  ;;  %740 = vmatpush1.msra.mxu1 %v5079_v50 }
  0xce   :  { %670 = vmatprep.subr.mxu0 %v5083_v51  ;;  %741 = vmatprep.subr.mxu1 %v5085_v52 }
  0xcf   :  { %671 = vmatpush1.msra.mxu0 %v5089_v53  ;;  %742 = vmatpush1.msra.mxu1 %v5093_v54 }
  0xd0   :  { %672 = vmatprep.subr.mxu0 %v5097_v56  ;;  %743 = vmatprep.subr.mxu1 %v7024_v55 }
  0xd1   :  { %673 = vmatpush1.msra.mxu0 %v5103_v58  ;;  %744 = vmatpush1.msra.mxu1 %v7025_v60 }
  0xd2   :  { %674 = vmatprep.subr.mxu0 %v7026_v48  ;;  %745 = vmatprep.subr.mxu1 %v5112_v61  ;;  %v6825_v61 = vlaneseq }
  0xd3   :  { %675 = vmatpush1.msra.mxu0 %v5116_v62  ;;  %746 = vmatpush1.msra.mxu1 %v5118_v63 }
  0xd4   :  { %676 = vmatprep.subr.mxu0 %v5122_v1  ;;  %747 = vmatprep.subr.mxu1 %v5124_v2  ;;  %v5208_v62 = vshrl.u32 %v6825_v61, 7 }
  0xd5   :  { %677 = vmatpush1.msra.mxu0 %v5127_v57  ;;  %710 = vmatprep.mubr.f32.mxu0 %v7023_v59  ;;  %v233_v57 = vld [vmem:[%s6788_s6] sm:$0xf] }
  0xd6   :  { %748 = vmatpush1.msra.mxu1 %v5131_v0  ;;  %781 = vmatprep.mubr.f32.mxu1 %v7023_v59  ;;  %7027 = vst [vmem:[#allocation49_spill] sm:$0xff] %v5208_v62  ;;  %v6836_v1 = vsub.s32 0, %v5208_v62  ;;  %v6843_v2 = vsub.s32 1, %v5208_v62  ;;  %v6853_v60 = vsub.s32 3, %v5208_v62 }
  0xd7   :  { %835 = vmatprep.subr.mxu0 %v4943_v3  ;;  %906 = vmatprep.subr.mxu1 %v4945_v4  ;;  %v6849_v4 = vsub.s32 2, %v5208_v62 }
  0xd8   :  { %v238_v3 = vrot.slane %v233_v57, %v6836_v1  ;;  %v242_v61 = vrot.slane %v233_v57, %v6843_v2  ;;  %v250_v1 = vrot.slane %v233_v57, %v6853_v60 }
  0xd9   :  { %v246_v54 = vrot.slane %v233_v57, %v6849_v4 }
 0x151   :  { %v321_v63 = vpop.f32.mrf.mxu0 }
 0x152   :  { %v398_v48 = vpop.f32.mrf.mxu1  ;;  %v5233_v2 = vadd.f32 %v321_v63, %v238_v3 }
 0x153   :  { %v323_v0 = vpop.f32.mrf.mxu0 }
 0x154   :  { %v400_v55 = vpop.f32.mrf.mxu1 }
 0x155   :  { %v5239_v57 = vadd.f32 %v400_v55, %v250_v1 }
 0x16c   :  { %v327_v59 = vpop.f32.mrf.mxu0 }
 0x16d   :  { %v5221_v58 = vadd.f32 %v327_v59, %v238_v3  ;;  %v5242_v3 = vadd.f32 %v398_v48, %v246_v54 }
 0x16e   :  { %v329_v56 = vpop.f32.mrf.mxu0 }
 0x16f   :  { %7028 = vst [vmem:[#allocation50_spill] sm:$0xff] %v5221_v58  ;;  %v5225_v53 = vadd.f32 %v329_v56, %v242_v61  ;;  %v5235_v58 = vadd.f32 %v323_v0, %v242_v61 }
 0x170   :  { %v404_v52 = vpop.f32.mrf.mxu1 }
 0x171   :  { %7029 = vst [vmem:[#allocation51_spill] sm:$0xff] %v5225_v53  ;;  %v5229_v51 = vadd.f32 %v404_v52, %v246_v54 }
 0x172   :  { %v406_v50 = vpop.f32.mrf.mxu1 }
 0x173   :  { %7030 = vst [vmem:[#allocation52_spill] sm:$0xff] %v5229_v51  ;;  %v5231_v49 = vadd.f32 %v406_v50, %v250_v1  ;;  %v7048_v51 = vld [vmem:[#allocation44_spill] sm:$0xff] }
 0x175   :  { %7031 = vst [vmem:[#allocation53_spill] sm:$0xff] %v5231_v49  ;;  %v541_v59 = vpop.f32.mrf.mxu0  ;;  %v612_v53 = vpop.f32.mrf.mxu1  ;;  %v7049_v49 = vld [vmem:[#allocation45_spill] sm:$0xff] }
 0x176   :  { %v617_v47 = vadd.f32 %v541_v59, %v5233_v2  ;;  %v619_v61 = vadd.f32 %v612_v53, %v5242_v3 }
 0x177   :  { %v543_v46 = vpop.f32.mrf.mxu0  ;;  %v614_v52 = vpop.f32.mrf.mxu1 }
 0x178   :  { %v4032_v4 = vmul.f32 -1.442695, %v617_v47  ;;  %v618_v56 = vadd.f32 %v543_v46, %v5235_v58  ;;  %v620_v50 = vadd.f32 %v614_v52, %v5239_v57 }
 0x17a   :  { %4191 = vpow2.f32 %v4032_v4  ;;  %v4033_v62 = vmul.f32 -1.442695, %v618_v56  ;;  %v4034_v63 = vmul.f32 -1.442695, %v620_v50 }
 0x17c   :  { %4193 = vpow2.f32 %v4033_v62  ;;  %v474_v62 = vld [vmem:[%s6785_s3] sm:$0x3] }
 0x17d   :  { %4195 = vpow2.f32 %v4034_v63  ;;  %v7032_v63 = vld [vmem:[#allocation28_spill] sm:$0xff] }
 0x187   :  { %v4192_v0 = vpop.eup %4191 }
 0x188   :  { %v624_v59 = vadd.f32 1.0, %v4192_v0  ;;  %v7033_v0 = vld [vmem:[#allocation29_spill] sm:$0xff] }
 0x189   :  { %v4194_v60 = vpop.eup %4193 }
 0x18a   :  { %4197 = vrcp.f32 %v624_v59  ;;  %v630_v46 = vadd.f32 1.0, %v4194_v60  ;;  %v4196_v4 = vpop.eup %4195  ;;  %v7035_v59 = vld [vmem:[#allocation31_spill] sm:$0xff] }
 0x18b   :  { %4199 = vtanh.f32 %v619_v61  ;;  %v637_v54 = vadd.f32 1.0, %v4196_v4  ;;  %v7034_v61 = vld [vmem:[#allocation30_spill] sm:$0xff]  ;;  %v7037_v4 = vld [vmem:[#allocation33_spill] sm:$0xff] }
 0x18c   :  { %4201 = vrcp.f32 %v630_v46  ;;  %v7036_v46 = vld [vmem:[#allocation32_spill] sm:$0xff] }
 0x18d   :  { %4203 = vrcp.f32 %v637_v54  ;;  %v7042_v54 = vld [vmem:[#allocation38_spill] sm:$0xff] }
 0x197   :  { %v4198_v47 = vpop.eup %4197 }
 0x198   :  { %v4200_v1 = vpop.eup %4199 }
 0x199   :  { %v4202_v48 = vpop.eup %4201  ;;  %v641_v55 = vmul.f32 %v4200_v1, %v4198_v47  ;;  %v7038_v47 = vld [vmem:[#allocation34_spill] sm:$0xff]  ;;  %v7040_v1 = vld [vmem:[#allocation36_spill] sm:$0xff] }
 0x19a   :  { %v640_v56 = vmul.f32 %v4202_v48, %v474_v62  ;;  %v4204_v53 = vpop.eup %4203  ;;  %v7039_v62 = vld [vmem:[#allocation35_spill] sm:$0xff]  ;;  %v7041_v48 = vld [vmem:[#allocation37_spill] sm:$0xff] }
 0x19c   :  { %v5248_v52 = vadd.f32 %v641_v55, %v640_v56  ;;  %v7043_v55 = vld [vmem:[#allocation39_spill] sm:$0xff]  ;;  %v7044_v56 = vld [vmem:[#allocation40_spill] sm:$0xff] }
 0x19e   :  { %4205 = vtanh.f32 %v5248_v52 }
 0x1ab   :  { %v4206_v60 = vpop.eup %4205 }
 0x1ac   :  { %v644_v50 = vmul.f32 %v4206_v60, %v4204_v53  ;;  %v7045_v53 = vld [vmem:[#allocation41_spill] sm:$0xff]  ;;  %v7046_v60 = vld [vmem:[#allocation42_spill] sm:$0xff] }
 0x1ae   :  { %645 = vst [vmem:[#allocation2] sm:$0x3] %v644_v50  ;;  %711 = vmatmul.mubr.f32.vlgmr.msra.gmra.mxu0 %v644_v50  ;;  %782 = vmatmul.mubr.f32.vlgmr.msra.gmra.mxu1 %v644_v50  ;;  %v7047_v50 = vld [vmem:[#allocation43_spill] sm:$0xff] }
 0x1af   :  { %836 = vmatpush1.msra.mxu0 %v4947_v5  ;;  %907 = vmatpush1.msra.mxu1 %v4949_v6 }
 0x1b0   :  { %837 = vmatprep.subr.mxu0 %v4952_v7  ;;  %908 = vmatprep.subr.mxu1 %v4954_v8 }
 0x1b1   :  { %838 = vmatpush1.msra.mxu0 %v4957_v9  ;;  %909 = vmatpush1.msra.mxu1 %v4959_v10 }
 0x1b2   :  { %839 = vmatprep.subr.mxu0 %v4963_v11  ;;  %910 = vmatprep.subr.mxu1 %v4965_v12 }
 0x1b3   :  { %840 = vmatpush1.msra.mxu0 %v4969_v13  ;;  %911 = vmatpush1.msra.mxu1 %v4971_v14 }
 0x1b4   :  { %841 = vmatprep.subr.mxu0 %v4975_v15  ;;  %912 = vmatprep.subr.mxu1 %v4977_v16 }
 0x1b5   :  { %842 = vmatpush1.msra.mxu0 %v4981_v17  ;;  %913 = vmatpush1.msra.mxu1 %v4983_v18 }
 0x1b6   :  { %843 = vmatprep.subr.mxu0 %v4987_v19  ;;  %914 = vmatprep.subr.mxu1 %v4989_v20 }
 0x1b7   :  { %844 = vmatpush1.msra.mxu0 %v4993_v21  ;;  %915 = vmatpush1.msra.mxu1 %v4995_v22 }
 0x1b8   :  { %845 = vmatprep.subr.mxu0 %v4999_v23  ;;  %916 = vmatprep.subr.mxu1 %v5001_v24 }
 0x1b9   :  { %846 = vmatpush1.msra.mxu0 %v5005_v25  ;;  %917 = vmatpush1.msra.mxu1 %v5007_v26 }
 0x1ba   :  { %847 = vmatprep.subr.mxu0 %v5011_v27  ;;  %918 = vmatprep.subr.mxu1 %v5013_v28 }
 0x1bb   :  { %848 = vmatpush1.msra.mxu0 %v5017_v29  ;;  %919 = vmatpush1.msra.mxu1 %v5019_v30 }
 0x1bc   :  { %849 = vmatprep.subr.mxu0 %v5023_v31  ;;  %920 = vmatprep.subr.mxu1 %v5025_v32 }
 0x1bd   :  { %850 = vmatpush1.msra.mxu0 %v5029_v33  ;;  %921 = vmatpush1.msra.mxu1 %v5031_v34 }
 0x1be   :  { %851 = vmatprep.subr.mxu0 %v5035_v35  ;;  %922 = vmatprep.subr.mxu1 %v5037_v36 }
 0x1bf   :  { %852 = vmatpush1.msra.mxu0 %v5041_v37  ;;  %923 = vmatpush1.msra.mxu1 %v5043_v38 }
 0x1c0   :  { %853 = vmatprep.subr.mxu0 %v5047_v39  ;;  %924 = vmatprep.subr.mxu1 %v5049_v40 }
 0x1c1   :  { %854 = vmatpush1.msra.mxu0 %v5053_v41  ;;  %925 = vmatpush1.msra.mxu1 %v5055_v42 }
 0x1c2   :  { %855 = vmatprep.subr.mxu0 %v5059_v43  ;;  %926 = vmatprep.subr.mxu1 %v5061_v44 }
 0x1c3   :  { %856 = vmatpush1.msra.mxu0 %v5065_v45  ;;  %927 = vmatpush1.msra.mxu1 %v7032_v63 }
 0x1c4   :  { %857 = vmatprep.subr.mxu0 %v7033_v0  ;;  %928 = vmatprep.subr.mxu1 %v7034_v61 }
 0x1c5   :  { %858 = vmatpush1.msra.mxu0 %v7035_v59  ;;  %929 = vmatpush1.msra.mxu1 %v7036_v46 }
 0x1c6   :  { %859 = vmatprep.subr.mxu0 %v7037_v4  ;;  %930 = vmatprep.subr.mxu1 %v7038_v47 }
 0x1c7   :  { %860 = vmatpush1.msra.mxu0 %v7039_v62  ;;  %931 = vmatpush1.msra.mxu1 %v7040_v1  ;;  %v7050_v62 = vld [vmem:[#allocation46_spill] sm:$0xff]  ;;  %v7051_v1 = vld [vmem:[#allocation47_spill] sm:$0xff] }
 0x1c8   :  { %861 = vmatprep.subr.mxu0 %v7041_v48  ;;  %932 = vmatprep.subr.mxu1 %v7042_v54  ;;  %v7052_v48 = vmov 0.0   ;;  %v7053_v54 = vld [vmem:[#allocation48_spill] sm:$0xff] }
 0x1c9   :  { %862 = vmatpush1.msra.mxu0 %v7043_v55  ;;  %933 = vmatpush1.msra.mxu1 %v7044_v56  ;;  %v7054_v56 = vld [vmem:[#allocation26_spill] sm:$0xff] }
 0x1ca   :  { %863 = vmatprep.subr.mxu0 %v7045_v53  ;;  %934 = vmatprep.subr.mxu1 %v7046_v60  ;;  %v7055_v53 = vld [vmem:[#allocation27_spill] sm:$0xff] }
 0x1cb   :  { %864 = vmatpush1.msra.mxu0 %v7047_v50  ;;  %935 = vmatpush1.msra.mxu1 %v7048_v51 }
 0x1cc   :  { %865 = vmatprep.subr.mxu0 %v7049_v49  ;;  %936 = vmatprep.subr.mxu1 %v7050_v62 }
 0x1cd   :  { %866 = vmatpush1.msra.mxu0 %v7051_v1  ;;  %899 = vmatprep.mubr.f32.mxu0 %v7052_v48 }
 0x1ce   :  { %937 = vmatpush1.msra.mxu1 %v7053_v54  ;;  %970 = vmatprep.mubr.f32.mxu1 %v7052_v48 }
 0x1cf   :  { %1024 = vmatprep.subr.mxu0 %v7054_v56  ;;  %1095 = vmatprep.subr.mxu1 %v7055_v53 }
 0x26e   :  { %v712_v60 = vpop.f32.mrf.mxu0  ;;  %v783_v49 = vpop.f32.mrf.mxu1 }
 0x26f   :  { %v792_v50 = vrot.slane %v712_v60, 6  ;;  %v794_v56 = vrot.slane %v783_v49, 6 }
 0x270   :  { %v714_v55 = vpop.f32.mrf.mxu0  ;;  %v785_v46 = vpop.f32.mrf.mxu1 }
 0x271   :  { %v800_v51 = vadd.f32 %v792_v50, %v5233_v2  ;;  %v793_v47 = vrot.slane %v714_v55, 6  ;;  %v795_v54 = vrot.slane %v785_v46, 6  ;;  %v802_v60 = vadd.f32 %v794_v56, %v5242_v3  ;;  %v7058_v50 = vld [vmem:[#allocation31_spill] sm:$0xff] }
 0x273   :  { %v4035_v62 = vmul.f32 -1.442695, %v800_v51  ;;  %v801_v1 = vadd.f32 %v793_v47, %v5235_v58  ;;  %v803_v48 = vadd.f32 %v795_v54, %v5239_v57 }
 0x275   :  { %4207 = vpow2.f32 %v4035_v62  ;;  %v4036_v4 = vmul.f32 -1.442695, %v801_v1  ;;  %v4037_v59 = vmul.f32 -1.442695, %v803_v48 }
 0x277   :  { %4209 = vpow2.f32 %v4036_v4  ;;  %v824_v4 = vrot.slane %v5248_v52, 6  ;;  %v7056_v52 = vld [vmem:[#allocation29_spill] sm:$0xff] }
 0x278   :  { %4211 = vpow2.f32 %v4037_v59 }
 0x282   :  { %v4208_v53 = vpop.eup %4207 }
 0x283   :  { %v807_v61 = vadd.f32 1.0, %v4208_v53  ;;  %v7057_v53 = vld [vmem:[#allocation30_spill] sm:$0xff] }
 0x284   :  { %v4210_v0 = vpop.eup %4209 }
 0x285   :  { %4213 = vrcp.f32 %v807_v61  ;;  %v813_v55 = vadd.f32 1.0, %v4210_v0  ;;  %v4212_v51 = vpop.eup %4211 }
 0x286   :  { %4215 = vtanh.f32 %v802_v60  ;;  %v820_v1 = vadd.f32 1.0, %v4212_v51  ;;  %v7059_v60 = vld [vmem:[#allocation32_spill] sm:$0xff]  ;;  %v7061_v51 = vld [vmem:[#allocation34_spill] sm:$0xff] }
 0x287   :  { %4217 = vrcp.f32 %v813_v55  ;;  %v7060_v55 = vld [vmem:[#allocation33_spill] sm:$0xff] }
 0x288   :  { %4219 = vrcp.f32 %v820_v1  ;;  %v7066_v1 = vld [vmem:[#allocation39_spill] sm:$0xff] }
 0x292   :  { %v4214_v47 = vpop.eup %4213 }
 0x293   :  { %v4216_v62 = vpop.eup %4215 }
 0x294   :  { %v4218_v46 = vpop.eup %4217  ;;  %v827_v54 = vmul.f32 %v4216_v62, %v4214_v47  ;;  %v7062_v47 = vld [vmem:[#allocation35_spill] sm:$0xff]  ;;  %v7063_v62 = vld [vmem:[#allocation36_spill] sm:$0xff] }
 0x295   :  { %v826_v49 = vmul.f32 %v4218_v46, %v824_v4  ;;  %v4220_v56 = vpop.eup %4219  ;;  %v7064_v4 = vld [vmem:[#allocation37_spill] sm:$0xff]  ;;  %v7065_v46 = vld [vmem:[#allocation38_spill] sm:$0xff] }
 0x297   :  { %v5322_v48 = vadd.f32 %v827_v54, %v826_v49  ;;  %v7067_v54 = vld [vmem:[#allocation40_spill] sm:$0xff]  ;;  %v7068_v49 = vld [vmem:[#allocation41_spill] sm:$0xff] }
 0x299   :  { %4221 = vtanh.f32 %v5322_v48 }
 0x2a6   :  { %v4222_v59 = vpop.eup %4221 }
 0x2a7   :  { %v830_v61 = vmul.f32 %v4222_v59, %v4220_v56  ;;  %v7069_v56 = vld [vmem:[#allocation42_spill] sm:$0xff]  ;;  %v7070_v59 = vld [vmem:[#allocation43_spill] sm:$0xff] }
 0x2a9   :  { %831 = vst [vmem:[#allocation2] sm:$0xc] %v830_v61  ;;  %v833_v0 = vrot.slane %v830_v61, 2  ;;  %v7071_v61 = vld [vmem:[#allocation44_spill] sm:$0xff] }
 0x2ab   :  { %900 = vmatmul.mubr.f32.vlgmr.msra.gmra.mxu0 %v833_v0  ;;  %971 = vmatmul.mubr.f32.vlgmr.msra.gmra.mxu1 %v833_v0  ;;  %v7072_v0 = vld [vmem:[#allocation45_spill] sm:$0xff] }
 0x2ac   :  { %1025 = vmatpush1.msra.mxu0 %v4947_v5  ;;  %1096 = vmatpush1.msra.mxu1 %v4949_v6 }
 0x2ad   :  { %1026 = vmatprep.subr.mxu0 %v4952_v7  ;;  %1097 = vmatprep.subr.mxu1 %v4954_v8 }
 0x2ae   :  { %1027 = vmatpush1.msra.mxu0 %v4957_v9  ;;  %1098 = vmatpush1.msra.mxu1 %v4959_v10 }
 0x2af   :  { %1028 = vmatprep.subr.mxu0 %v4963_v11  ;;  %1099 = vmatprep.subr.mxu1 %v4965_v12 }
 0x2b0   :  { %1029 = vmatpush1.msra.mxu0 %v4969_v13  ;;  %1100 = vmatpush1.msra.mxu1 %v4971_v14 }
 0x2b1   :  { %1030 = vmatprep.subr.mxu0 %v4975_v15  ;;  %1101 = vmatprep.subr.mxu1 %v4977_v16 }
 0x2b2   :  { %1031 = vmatpush1.msra.mxu0 %v4981_v17  ;;  %1102 = vmatpush1.msra.mxu1 %v4983_v18 }
 0x2b3   :  { %1032 = vmatprep.subr.mxu0 %v4987_v19  ;;  %1103 = vmatprep.subr.mxu1 %v4989_v20 }
 0x2b4   :  { %1033 = vmatpush1.msra.mxu0 %v4993_v21  ;;  %1104 = vmatpush1.msra.mxu1 %v4995_v22 }
 0x2b5   :  { %1034 = vmatprep.subr.mxu0 %v4999_v23  ;;  %1105 = vmatprep.subr.mxu1 %v5001_v24 }
 0x2b6   :  { %1035 = vmatpush1.msra.mxu0 %v5005_v25  ;;  %1106 = vmatpush1.msra.mxu1 %v5007_v26 }
 0x2b7   :  { %1036 = vmatprep.subr.mxu0 %v5011_v27  ;;  %1107 = vmatprep.subr.mxu1 %v5013_v28 }
 0x2b8   :  { %1037 = vmatpush1.msra.mxu0 %v5017_v29  ;;  %1108 = vmatpush1.msra.mxu1 %v5019_v30 }
 0x2b9   :  { %1038 = vmatprep.subr.mxu0 %v5023_v31  ;;  %1109 = vmatprep.subr.mxu1 %v5025_v32 }
 0x2ba   :  { %1039 = vmatpush1.msra.mxu0 %v5029_v33  ;;  %1110 = vmatpush1.msra.mxu1 %v5031_v34 }
 0x2bb   :  { %1040 = vmatprep.subr.mxu0 %v5035_v35  ;;  %1111 = vmatprep.subr.mxu1 %v5037_v36 }
 0x2bc   :  { %1041 = vmatpush1.msra.mxu0 %v5041_v37  ;;  %1112 = vmatpush1.msra.mxu1 %v5043_v38 }
 0x2bd   :  { %1042 = vmatprep.subr.mxu0 %v5047_v39  ;;  %1113 = vmatprep.subr.mxu1 %v5049_v40 }
 0x2be   :  { %1043 = vmatpush1.msra.mxu0 %v5053_v41  ;;  %1114 = vmatpush1.msra.mxu1 %v5055_v42 }
 0x2bf   :  { %1044 = vmatprep.subr.mxu0 %v5059_v43  ;;  %1115 = vmatprep.subr.mxu1 %v5061_v44 }
 0x2c0   :  { %1045 = vmatpush1.msra.mxu0 %v5065_v45  ;;  %1116 = vmatpush1.msra.mxu1 %v7032_v63 }
 0x2c1   :  { %1046 = vmatprep.subr.mxu0 %v7056_v52  ;;  %1117 = vmatprep.subr.mxu1 %v7057_v53 }
 0x2c2   :  { %1047 = vmatpush1.msra.mxu0 %v7058_v50  ;;  %1118 = vmatpush1.msra.mxu1 %v7059_v60 }
 0x2c3   :  { %1048 = vmatprep.subr.mxu0 %v7060_v55  ;;  %1119 = vmatprep.subr.mxu1 %v7061_v51 }
 0x2c4   :  { %1049 = vmatpush1.msra.mxu0 %v7062_v47  ;;  %1120 = vmatpush1.msra.mxu1 %v7063_v62  ;;  %v7073_v47 = vld [vmem:[#allocation46_spill] sm:$0xff]  ;;  %v7074_v62 = vld [vmem:[#allocation47_spill] sm:$0xff] }
 0x2c5   :  { %1050 = vmatprep.subr.mxu0 %v7064_v4  ;;  %1121 = vmatprep.subr.mxu1 %v7065_v46  ;;  %v7075_v4 = vmov 0.0   ;;  %v7076_v46 = vld [vmem:[#allocation48_spill] sm:$0xff] }
 0x2c6   :  { %1051 = vmatpush1.msra.mxu0 %v7066_v1  ;;  %1122 = vmatpush1.msra.mxu1 %v7067_v54  ;;  %v7077_v54 = vld [vmem:[#allocation26_spill] sm:$0xff] }
 0x2c7   :  { %1052 = vmatprep.subr.mxu0 %v7068_v49  ;;  %1123 = vmatprep.subr.mxu1 %v7069_v56  ;;  %v7078_v49 = vld [vmem:[#allocation27_spill] sm:$0xff] }
 0x2c8   :  { %1053 = vmatpush1.msra.mxu0 %v7070_v59  ;;  %1124 = vmatpush1.msra.mxu1 %v7071_v61 }
 0x2c9   :  { %1054 = vmatprep.subr.mxu0 %v7072_v0  ;;  %1125 = vmatprep.subr.mxu1 %v7073_v47 }
 0x2ca   :  { %1055 = vmatpush1.msra.mxu0 %v7074_v62  ;;  %1088 = vmatprep.mubr.f32.mxu0 %v7075_v4 }
 0x2cb   :  { %1126 = vmatpush1.msra.mxu1 %v7076_v46  ;;  %1159 = vmatprep.mubr.f32.mxu1 %v7075_v4 }
 0x2cc   :  { %1213 = vmatprep.subr.mxu0 %v7077_v54  ;;  %1284 = vmatprep.subr.mxu1 %v7078_v49 }
 0x36b   :  { %v901_v56 = vpop.f32.mrf.mxu0  ;;  %v972_v0 = vpop.f32.mrf.mxu1 }
 0x36c   :  { %v981_v59 = vrot.slane %v901_v56, 4  ;;  %v983_v54 = vrot.slane %v972_v0, 4 }
 0x36d   :  { %v903_v1 = vpop.f32.mrf.mxu0  ;;  %v974_v60 = vpop.f32.mrf.mxu1 }
 0x36e   :  { %v989_v61 = vadd.f32 %v981_v59, %v5233_v2  ;;  %v982_v51 = vrot.slane %v903_v1, 4  ;;  %v984_v46 = vrot.slane %v974_v60, 4  ;;  %v991_v56 = vadd.f32 %v983_v54, %v5242_v3 }
 0x370   :  { %v4038_v47 = vmul.f32 -1.442695, %v989_v61  ;;  %v990_v62 = vadd.f32 %v982_v51, %v5235_v58  ;;  %v992_v4 = vadd.f32 %v984_v46, %v5239_v57 }
 0x372   :  { %4223 = vpow2.f32 %v4038_v47  ;;  %v4039_v55 = vmul.f32 -1.442695, %v990_v62  ;;  %v4040_v50 = vmul.f32 -1.442695, %v992_v4 }
 0x374   :  { %4225 = vpow2.f32 %v4039_v55  ;;  %v1013_v55 = vrot.slane %v5322_v48, 6 }
 0x375   :  { %4227 = vpow2.f32 %v4040_v50 }
 0x37f   :  { %v4224_v49 = vpop.eup %4223 }
 0x380   :  { %v996_v53 = vadd.f32 1.0, %v4224_v49 }
 0x381   :  { %v4226_v52 = vpop.eup %4225 }
 0x382   :  { %4229 = vrcp.f32 %v996_v53  ;;  %v1002_v1 = vadd.f32 1.0, %v4226_v52  ;;  %v4228_v51 = vpop.eup %4227 }
 0x383   :  { %4231 = vtanh.f32 %v991_v56  ;;  %v1009_v59 = vadd.f32 1.0, %v4228_v51 }
 0x384   :  { %4233 = vrcp.f32 %v1002_v1 }
 0x385   :  { %4235 = vrcp.f32 %v1009_v59  ;;  %v5480_v59 = vld [vmem:[#allocation12 + $0x1f0] sm:$0xff] }
 0x38f   :  { %v4230_v47 = vpop.eup %4229 }
 0x390   :  { %v4232_v62 = vpop.eup %4231 }
 0x391   :  { %v4234_v60 = vpop.eup %4233  ;;  %v1016_v46 = vmul.f32 %v4232_v62, %v4230_v47 }
 0x392   :  { %v1015_v61 = vmul.f32 %v4234_v60, %v1013_v55  ;;  %v4236_v0 = vpop.eup %4235  ;;  %v5477_v60 = vld [vmem:[#allocation12 + $0x1e0] sm:$0xff] }
 0x394   :  { %v5396_v4 = vadd.f32 %v1016_v46, %v1015_v61  ;;  %v5483_v46 = vld [vmem:[#allocation12 + $0x1c8] sm:$0xff]  ;;  %v5486_v61 = vld [vmem:[#allocation12 + $0x1d8] sm:$0xff] }
 0x396   :  { %4237 = vtanh.f32 %v5396_v4  ;;  %v1202_v54 = vrot.slane %v5396_v4, 6  ;;  %v5489_v4 = vld [vmem:[#allocation12 + $0x1c0] sm:$0xff] }
 0x3a3   :  { %v4238_v50 = vpop.eup %4237 }
 0x3a4   :  { %v1019_v53 = vmul.f32 %v4238_v50, %v4236_v0  ;;  %v5492_v0 = vld [vmem:[#allocation12 + $0x1d0] sm:$0xff]  ;;  %v5495_v50 = vld [vmem:[#allocation12 + $0x1a8] sm:$0xff] }
 0x3a6   :  { %1020 = vst [vmem:[#allocation2] sm:$0x30] %v1019_v53  ;;  %v1022_v52 = vrot.slane %v1019_v53, 4  ;;  %v5498_v53 = vld [vmem:[#allocation12 + $0x1b8] sm:$0xff] }
 0x3a8   :  { %1089 = vmatmul.mubr.f32.vlgmr.msra.gmra.mxu0 %v1022_v52  ;;  %1160 = vmatmul.mubr.f32.vlgmr.msra.gmra.mxu1 %v1022_v52  ;;  %v5501_v52 = vld [vmem:[#allocation12 + $0x1a0] sm:$0xff] }
 0x3a9   :  { %1214 = vmatpush1.msra.mxu0 %v4947_v5  ;;  %1285 = vmatpush1.msra.mxu1 %v4949_v6  ;;  %v7079_v5 = vld [vmem:[#allocation29_spill] sm:$0xff]  ;;  %v7080_v6 = vld [vmem:[#allocation30_spill] sm:$0xff] }
 0x3aa   :  { %1215 = vmatprep.subr.mxu0 %v4952_v7  ;;  %1286 = vmatprep.subr.mxu1 %v4954_v8  ;;  %v7081_v7 = vld [vmem:[#allocation31_spill] sm:$0xff]  ;;  %v7082_v8 = vld [vmem:[#allocation32_spill] sm:$0xff] }
 0x3ab   :  { %1216 = vmatpush1.msra.mxu0 %v4957_v9  ;;  %1287 = vmatpush1.msra.mxu1 %v4959_v10  ;;  %v7083_v9 = vld [vmem:[#allocation33_spill] sm:$0xff]  ;;  %v7084_v10 = vld [vmem:[#allocation34_spill] sm:$0xff] }
 0x3ac   :  { %1217 = vmatprep.subr.mxu0 %v4963_v11  ;;  %1288 = vmatprep.subr.mxu1 %v4965_v12  ;;  %v7085_v11 = vld [vmem:[#allocation35_spill] sm:$0xff]  ;;  %v7086_v12 = vld [vmem:[#allocation36_spill] sm:$0xff] }
 0x3ad   :  { %1218 = vmatpush1.msra.mxu0 %v4969_v13  ;;  %1289 = vmatpush1.msra.mxu1 %v4971_v14  ;;  %v7087_v13 = vld [vmem:[#allocation37_spill] sm:$0xff]  ;;  %v7088_v14 = vld [vmem:[#allocation38_spill] sm:$0xff] }
 0x3ae   :  { %1219 = vmatprep.subr.mxu0 %v4975_v15  ;;  %1290 = vmatprep.subr.mxu1 %v4977_v16  ;;  %v7089_v15 = vld [vmem:[#allocation39_spill] sm:$0xff]  ;;  %v7090_v16 = vld [vmem:[#allocation40_spill] sm:$0xff] }
 0x3af   :  { %1220 = vmatpush1.msra.mxu0 %v4981_v17  ;;  %1291 = vmatpush1.msra.mxu1 %v4983_v18  ;;  %v7091_v17 = vld [vmem:[#allocation41_spill] sm:$0xff]  ;;  %v7092_v18 = vld [vmem:[#allocation42_spill] sm:$0xff] }
 0x3b0   :  { %1221 = vmatprep.subr.mxu0 %v4987_v19  ;;  %1292 = vmatprep.subr.mxu1 %v4989_v20  ;;  %v7093_v19 = vld [vmem:[#allocation43_spill] sm:$0xff]  ;;  %v7094_v20 = vld [vmem:[#allocation44_spill] sm:$0xff] }
 0x3b1   :  { %1222 = vmatpush1.msra.mxu0 %v4993_v21  ;;  %1293 = vmatpush1.msra.mxu1 %v4995_v22  ;;  %v7095_v21 = vld [vmem:[#allocation45_spill] sm:$0xff]  ;;  %v7096_v22 = vld [vmem:[#allocation46_spill] sm:$0xff] }
 0x3b2   :  { %1223 = vmatprep.subr.mxu0 %v4999_v23  ;;  %1294 = vmatprep.subr.mxu1 %v5001_v24  ;;  %v7097_v23 = vld [vmem:[#allocation47_spill] sm:$0xff]  ;;  %v7098_v24 = vmov 0.0  }
 0x3b3   :  { %1224 = vmatpush1.msra.mxu0 %v5005_v25  ;;  %1295 = vmatpush1.msra.mxu1 %v5007_v26  ;;  %v7099_v25 = vld [vmem:[#allocation48_spill] sm:$0xff]  ;;  %v5463_v26 = vld [vmem:[#allocation12 + $0x1e8] sm:$0xff] }
 0x3b4   :  { %1225 = vmatprep.subr.mxu0 %v5011_v27  ;;  %1296 = vmatprep.subr.mxu1 %v5013_v28  ;;  %7100 = vst [vmem:[#allocation28_spill] sm:$0xff] %v5463_v26  ;;  %v5466_v27 = vld [vmem:[#allocation12 + $0x1f8] sm:$0xff] }
 0x3b5   :  { %1226 = vmatpush1.msra.mxu0 %v5017_v29  ;;  %1297 = vmatpush1.msra.mxu1 %v5019_v30  ;;  %7101 = vst [vmem:[#allocation26_spill] sm:$0xff] %v5466_v27 }
 0x3b6   :  { %1227 = vmatprep.subr.mxu0 %v5023_v31  ;;  %1298 = vmatprep.subr.mxu1 %v5025_v32 }
 0x3b7   :  { %1228 = vmatpush1.msra.mxu0 %v5029_v33  ;;  %1299 = vmatpush1.msra.mxu1 %v5031_v34 }
 0x3b8   :  { %1229 = vmatprep.subr.mxu0 %v5035_v35  ;;  %1300 = vmatprep.subr.mxu1 %v5037_v36 }
 0x3b9   :  { %1230 = vmatpush1.msra.mxu0 %v5041_v37  ;;  %1301 = vmatpush1.msra.mxu1 %v5043_v38 }
 0x3ba   :  { %1231 = vmatprep.subr.mxu0 %v5047_v39  ;;  %1302 = vmatprep.subr.mxu1 %v5049_v40 }
 0x3bb   :  { %1232 = vmatpush1.msra.mxu0 %v5053_v41  ;;  %1303 = vmatpush1.msra.mxu1 %v5055_v42 }
 0x3bc   :  { %1233 = vmatprep.subr.mxu0 %v5059_v43  ;;  %1304 = vmatprep.subr.mxu1 %v5061_v44 }
 0x3bd   :  { %1234 = vmatpush1.msra.mxu0 %v5065_v45  ;;  %1305 = vmatpush1.msra.mxu1 %v7032_v63 }
 0x3be   :  { %1235 = vmatprep.subr.mxu0 %v7079_v5  ;;  %1306 = vmatprep.subr.mxu1 %v7080_v6  ;;  %v5504_v5 = vld [vmem:[#allocation12 + $0x1b0] sm:$0xff]  ;;  %v5507_v6 = vld [vmem:[#allocation12 + $0x188] sm:$0xff] }
 0x3bf   :  { %1236 = vmatpush1.msra.mxu0 %v7081_v7  ;;  %1307 = vmatpush1.msra.mxu1 %v7082_v8  ;;  %v5510_v7 = vld [vmem:[#allocation12 + $0x198] sm:$0xff]  ;;  %v5513_v8 = vld [vmem:[#allocation12 + $0x180] sm:$0xff] }
 0x3c0   :  { %1237 = vmatprep.subr.mxu0 %v7083_v9  ;;  %1308 = vmatprep.subr.mxu1 %v7084_v10  ;;  %v5516_v9 = vld [vmem:[#allocation12 + $0x190] sm:$0xff]  ;;  %v5519_v10 = vld [vmem:[#allocation12 + $0x168] sm:$0xff] }
 0x3c1   :  { %1238 = vmatpush1.msra.mxu0 %v7085_v11  ;;  %1309 = vmatpush1.msra.mxu1 %v7086_v12  ;;  %v5522_v11 = vld [vmem:[#allocation12 + $0x178] sm:$0xff]  ;;  %v5525_v12 = vld [vmem:[#allocation12 + $0x160] sm:$0xff] }
 0x3c2   :  { %1239 = vmatprep.subr.mxu0 %v7087_v13  ;;  %1310 = vmatprep.subr.mxu1 %v7088_v14  ;;  %v5528_v13 = vld [vmem:[#allocation12 + $0x170] sm:$0xff]  ;;  %v5531_v14 = vld [vmem:[#allocation12 + $0x148] sm:$0xff] }
 0x3c3   :  { %1240 = vmatpush1.msra.mxu0 %v7089_v15  ;;  %1311 = vmatpush1.msra.mxu1 %v7090_v16  ;;  %v5534_v15 = vld [vmem:[#allocation12 + $0x158] sm:$0xff]  ;;  %v5537_v16 = vld [vmem:[#allocation12 + $0x140] sm:$0xff] }
 0x3c4   :  { %1241 = vmatprep.subr.mxu0 %v7091_v17  ;;  %1312 = vmatprep.subr.mxu1 %v7092_v18  ;;  %v5540_v17 = vld [vmem:[#allocation12 + $0x150] sm:$0xff]  ;;  %v5543_v18 = vld [vmem:[#allocation12 + $0x128] sm:$0xff] }
 0x3c5   :  { %1242 = vmatpush1.msra.mxu0 %v7093_v19  ;;  %1313 = vmatpush1.msra.mxu1 %v7094_v20  ;;  %v5546_v19 = vld [vmem:[#allocation12 + $0x138] sm:$0xff]  ;;  %v5549_v20 = vld [vmem:[#allocation12 + $0x120] sm:$0xff] }
 0x3c6   :  { %1243 = vmatprep.subr.mxu0 %v7095_v21  ;;  %1314 = vmatprep.subr.mxu1 %v7096_v22  ;;  %v5552_v21 = vld [vmem:[#allocation12 + $0x130] sm:$0xff]  ;;  %v5555_v22 = vld [vmem:[#allocation12 + $0x108] sm:$0xff] }
 0x3c7   :  { %1244 = vmatpush1.msra.mxu0 %v7097_v23  ;;  %1277 = vmatprep.mubr.f32.mxu0 %v7098_v24  ;;  %v5558_v23 = vld [vmem:[#allocation12 + $0x118] sm:$0xff] }
 0x3c8   :  { %1315 = vmatpush1.msra.mxu1 %v7099_v25  ;;  %1348 = vmatprep.mubr.f32.mxu1 %v7098_v24  ;;  %v5561_v25 = vld [vmem:[#allocation12 + $0x100] sm:$0xff] }
 0x3c9   :  { %1387 = vmatprep.subr.mxu0 %v5463_v26  ;;  %1458 = vmatprep.subr.mxu1 %v5466_v27 }
 0x468   :  { %v1090_v28 = vpop.f32.mrf.mxu0  ;;  %v1161_v32 = vpop.f32.mrf.mxu1 }
 0x469   :  { %v1170_v29 = vrot.slane %v1090_v28, 2  ;;  %v1172_v40 = vrot.slane %v1161_v32, 2  ;;  %v5564_v28 = vld [vmem:[#allocation12 + $0x110] sm:$0xff] }
 0x46a   :  { %v1092_v30 = vpop.f32.mrf.mxu0  ;;  %v1163_v37 = vpop.f32.mrf.mxu1  ;;  %v5576_v32 = vld [vmem:[#allocation12 + $0xf0] sm:$0xff] }
 0x46b   :  { %v1178_v31 = vadd.f32 %v1170_v29, %v5233_v2  ;;  %v1171_v33 = vrot.slane %v1092_v30, 2  ;;  %v1173_v38 = vrot.slane %v1163_v37, 2  ;;  %v1180_v43 = vadd.f32 %v1172_v40, %v5242_v3  ;;  %v5567_v29 = vld [vmem:[#allocation12 + $0xe8] sm:$0xff]  ;;  %v5570_v30 = vld [vmem:[#allocation12 + $0xf8] sm:$0xff]  ;;  %v5600_v40 = vld [vmem:[#allocation12 + $0xb0] sm:$0xff] }
 0x46c   :  { %v5591_v37 = vld [vmem:[#allocation12 + $0xa8] sm:$0xff] }
 0x46d   :  { %v4041_v34 = vmul.f32 -1.442695, %v1178_v31  ;;  %v1179_v35 = vadd.f32 %v1171_v33, %v5235_v58  ;;  %v1181_v39 = vadd.f32 %v1173_v38, %v5239_v57  ;;  %v5573_v31 = vld [vmem:[#allocation12 + $0xe0] sm:$0xff]  ;;  %v5579_v33 = vld [vmem:[#allocation12 + $0xc8] sm:$0xff]  ;;  %v5594_v38 = vld [vmem:[#allocation12 + $0xb8] sm:$0xff] }
 0x46f   :  { %4239 = vpow2.f32 %v4041_v34  ;;  %v4042_v36 = vmul.f32 -1.442695, %v1179_v35  ;;  %v4043_v41 = vmul.f32 -1.442695, %v1181_v39  ;;  %v5582_v34 = vld [vmem:[#allocation12 + $0xd8] sm:$0xff]  ;;  %v5585_v35 = vld [vmem:[#allocation12 + $0xc0] sm:$0xff] }
 0x470   :  { %v5597_v39 = vld [vmem:[#allocation12 + $0xa0] sm:$0xff] }
 0x471   :  { %4241 = vpow2.f32 %v4042_v36  ;;  %v5588_v36 = vld [vmem:[#allocation12 + $0xd0] sm:$0xff] }
 0x472   :  { %4243 = vpow2.f32 %v4043_v41  ;;  %v5603_v41 = vld [vmem:[#allocation12 + $0x88] sm:$0xff] }
 0x473   :  { %7102 = vst [vmem:[#allocation27_spill] sm:$0xff] %v5603_v41 }
 0x47c   :  { %v4240_v42 = vpop.eup %4239 }
 0x47d   :  { %v1185_v44 = vadd.f32 1.0, %v4240_v42  ;;  %v5606_v42 = vld [vmem:[#allocation12 + $0x98] sm:$0xff] }
 0x47e   :  { %v4242_v45 = vpop.eup %4241  ;;  %7103 = vst [vmem:[#allocation29_spill] sm:$0xff] %v5606_v42 }
 0x47f   :  { %4245 = vrcp.f32 %v1185_v44  ;;  %v1191_v2 = vadd.f32 1.0, %v4242_v45  ;;  %v4244_v58 = vpop.eup %4243  ;;  %v5612_v44 = vld [vmem:[#allocation12 + $0x90] sm:$0xff]  ;;  %v5615_v45 = vld [vmem:[#allocation12 + $0x68] sm:$0xff] }
 0x480   :  { %4247 = vtanh.f32 %v1180_v43  ;;  %v1198_v56 = vadd.f32 1.0, %v4244_v58  ;;  %v5609_v43 = vld [vmem:[#allocation12 + $0x80] sm:$0xff]  ;;  %7105 = vst [vmem:[#allocation31_spill] sm:$0xff] %v5612_v44  ;;  %7106 = vst [vmem:[#allocation32_spill] sm:$0xff] %v5615_v45 }
 0x481   :  { %4249 = vrcp.f32 %v1191_v2  ;;  %7104 = vst [vmem:[#allocation30_spill] sm:$0xff] %v5609_v43  ;;  %v5618_v2 = vld [vmem:[#allocation12 + $0x78] sm:$0xff]  ;;  %v5621_v58 = vld [vmem:[#allocation12 + $0x60] sm:$0xff] }
 0x482   :  { %4251 = vrcp.f32 %v1198_v56  ;;  %7107 = vst [vmem:[#allocation33_spill] sm:$0xff] %v5618_v2  ;;  %7108 = vst [vmem:[#allocation34_spill] sm:$0xff] %v5621_v58  ;;  %v5636_v56 = vld [vmem:[#allocation12 + $0x50] sm:$0xff] }
 0x483   :  { %7113 = vst [vmem:[#allocation39_spill] sm:$0xff] %v5636_v56 }
 0x48c   :  { %v4246_v63 = vpop.eup %4245 }
 0x48d   :  { %v4248_v48 = vpop.eup %4247 }
 0x48e   :  { %v4250_v49 = vpop.eup %4249  ;;  %v1205_v57 = vmul.f32 %v4248_v48, %v4246_v63  ;;  %v5624_v63 = vld [vmem:[#allocation12 + $0x70] sm:$0xff]  ;;  %v5627_v48 = vld [vmem:[#allocation12 + $0x48] sm:$0xff] }
 0x48f   :  { %v1204_v1 = vmul.f32 %v4250_v49, %v1202_v54  ;;  %v4252_v3 = vpop.eup %4251  ;;  %7109 = vst [vmem:[#allocation35_spill] sm:$0xff] %v5624_v63  ;;  %7110 = vst [vmem:[#allocation36_spill] sm:$0xff] %v5627_v48  ;;  %v5630_v54 = vld [vmem:[#allocation12 + $0x58] sm:$0xff]  ;;  %v5633_v49 = vld [vmem:[#allocation12 + $0x40] sm:$0xff] }
 0x490   :  { %7111 = vst [vmem:[#allocation37_spill] sm:$0xff] %v5630_v54  ;;  %7112 = vst [vmem:[#allocation38_spill] sm:$0xff] %v5633_v49 }
 0x491   :  { %v5474_v51 = vadd.f32 %v1205_v57, %v1204_v1  ;;  %v5639_v57 = vld [vmem:[#allocation12 + $0x28] sm:$0xff]  ;;  %v5642_v1 = vld [vmem:[#allocation12 + $0x38] sm:$0xff] }
 0x492   :  { %7114 = vst [vmem:[#allocation40_spill] sm:$0xff] %v5639_v57  ;;  %7115 = vst [vmem:[#allocation41_spill] sm:$0xff] %v5642_v1 }
 0x493   :  { %4253 = vtanh.f32 %v5474_v51 }
 0x4a0   :  { %v4254_v47 = vpop.eup %4253 }
 0x4a1   :  { %v1208_v62 = vmul.f32 %v4254_v47, %v4252_v3  ;;  %v5645_v3 = vld [vmem:[#allocation12 + $0x20] sm:$0xff]  ;;  %v5648_v47 = vld [vmem:[#allocation12 + $0x30] sm:$0xff] }
 0x4a2   :  { %7116 = vst [vmem:[#allocation42_spill] sm:$0xff] %v5645_v3  ;;  %7117 = vst [vmem:[#allocation43_spill] sm:$0xff] %v5648_v47 }
 0x4a3   :  { %1209 = vst [vmem:[#allocation2] sm:$0xc0] %v1208_v62  ;;  %v1211_v55 = vrot.slane %v1208_v62, 6  ;;  %v5651_v62 = vld [vmem:[#allocation12 + $0x8] sm:$0xff] }
 0x4a4   :  { %7118 = vst [vmem:[#allocation44_spill] sm:$0xff] %v5651_v62 }
 0x4a5   :  { %1278 = vmatmul.mubr.f32.vlgmr.msra.gmra.mxu0 %v1211_v55  ;;  %1349 = vmatmul.mubr.f32.vlgmr.msra.gmra.mxu1 %v1211_v55  ;;  %v5654_v55 = vld [vmem:[#allocation12 + $0x18] sm:$0xff] }
 0x4a6   :  { %1388 = vmatpush1.msra.mxu0 %v5477_v60  ;;  %1459 = vmatpush1.msra.mxu1 %v5480_v59  ;;  %7119 = vst [vmem:[#allocation45_spill] sm:$0xff] %v5654_v55 }
 0x4a7   :  { %1389 = vmatprep.subr.mxu0 %v5483_v46  ;;  %1460 = vmatprep.subr.mxu1 %v5486_v61 }
 0x4a8   :  { %1390 = vmatpush1.msra.mxu0 %v5489_v4  ;;  %1461 = vmatpush1.msra.mxu1 %v5492_v0 }
 0x4a9   :  { %1391 = vmatprep.subr.mxu0 %v5495_v50  ;;  %1462 = vmatprep.subr.mxu1 %v5498_v53 }
 0x4aa   :  { %1392 = vmatpush1.msra.mxu0 %v5501_v52  ;;  %1463 = vmatpush1.msra.mxu1 %v5504_v5 }
 0x4ab   :  { %1393 = vmatprep.subr.mxu0 %v5507_v6  ;;  %1464 = vmatprep.subr.mxu1 %v5510_v7 }
 0x4ac   :  { %1394 = vmatpush1.msra.mxu0 %v5513_v8  ;;  %1465 = vmatpush1.msra.mxu1 %v5516_v9 }
 0x4ad   :  { %1395 = vmatprep.subr.mxu0 %v5519_v10  ;;  %1466 = vmatprep.subr.mxu1 %v5522_v11 }
 0x4ae   :  { %1396 = vmatpush1.msra.mxu0 %v5525_v12  ;;  %1467 = vmatpush1.msra.mxu1 %v5528_v13 }
 0x4af   :  { %1397 = vmatprep.subr.mxu0 %v5531_v14  ;;  %1468 = vmatprep.subr.mxu1 %v5534_v15 }
 0x4b0   :  { %1398 = vmatpush1.msra.mxu0 %v5537_v16  ;;  %1469 = vmatpush1.msra.mxu1 %v5540_v17 }
 0x4b1   :  { %1399 = vmatprep.subr.mxu0 %v5543_v18  ;;  %1470 = vmatprep.subr.mxu1 %v5546_v19 }
 0x4b2   :  { %1400 = vmatpush1.msra.mxu0 %v5549_v20  ;;  %1471 = vmatpush1.msra.mxu1 %v5552_v21 }
 0x4b3   :  { %1401 = vmatprep.subr.mxu0 %v5555_v22  ;;  %1472 = vmatprep.subr.mxu1 %v5558_v23 }
 0x4b4   :  { %1402 = vmatpush1.msra.mxu0 %v5561_v25  ;;  %1473 = vmatpush1.msra.mxu1 %v5564_v28 }
 0x4b5   :  { %1403 = vmatprep.subr.mxu0 %v5567_v29  ;;  %1474 = vmatprep.subr.mxu1 %v5570_v30 }
 0x4b6   :  { %1404 = vmatpush1.msra.mxu0 %v5573_v31  ;;  %1475 = vmatpush1.msra.mxu1 %v5576_v32 }
 0x4b7   :  { %1405 = vmatprep.subr.mxu0 %v5579_v33  ;;  %1476 = vmatprep.subr.mxu1 %v5582_v34 }
 0x4b8   :  { %1406 = vmatpush1.msra.mxu0 %v5585_v35  ;;  %1477 = vmatpush1.msra.mxu1 %v5588_v36 }
 0x4b9   :  { %1407 = vmatprep.subr.mxu0 %v5591_v37  ;;  %1478 = vmatprep.subr.mxu1 %v5594_v38 }
 0x4ba   :  { %1408 = vmatpush1.msra.mxu0 %v5597_v39  ;;  %1479 = vmatpush1.msra.mxu1 %v5600_v40 }
 0x4bb   :  { %1409 = vmatprep.subr.mxu0 %v5603_v41  ;;  %1480 = vmatprep.subr.mxu1 %v5606_v42 }
 0x4bc   :  { %1410 = vmatpush1.msra.mxu0 %v5609_v43  ;;  %1481 = vmatpush1.msra.mxu1 %v5612_v44 }
 0x4bd   :  { %1411 = vmatprep.subr.mxu0 %v5615_v45  ;;  %1482 = vmatprep.subr.mxu1 %v5618_v2  ;;  %v7125_v45 = vld [vmem:[#allocation52_spill] sm:$0xff] }
 0x4be   :  { %1412 = vmatpush1.msra.mxu0 %v5621_v58  ;;  %1483 = vmatpush1.msra.mxu1 %v5624_v63  ;;  %v7124_v58 = vld [vmem:[#allocation53_spill] sm:$0xff] }
 0x4bf   :  { %1413 = vmatprep.subr.mxu0 %v5627_v48  ;;  %1484 = vmatprep.subr.mxu1 %v5630_v54 }
 0x4c0   :  { %1414 = vmatpush1.msra.mxu0 %v5633_v49  ;;  %1485 = vmatpush1.msra.mxu1 %v5636_v56  ;;  %v7123_v49 = vld [vmem:[#allocation51_spill] sm:$0xff] }
 0x4c1   :  { %1415 = vmatprep.subr.mxu0 %v5639_v57  ;;  %1486 = vmatprep.subr.mxu1 %v5642_v1  ;;  %v5657_v57 = vld [vmem:[#allocation12] sm:$0xff]  ;;  %v5661_v1 = vld [vmem:[#allocation12 + $0x10] sm:$0xff] }
 0x4c2   :  { %1416 = vmatpush1.msra.mxu0 %v5645_v3  ;;  %1487 = vmatpush1.msra.mxu1 %v5648_v47  ;;  %7120 = vst [vmem:[#allocation46_spill] sm:$0xff] %v5657_v57  ;;  %7121 = vst [vmem:[#allocation47_spill] sm:$0xff] %v5661_v1  ;;  %v7122_v47 = vld [vmem:[#allocation50_spill] sm:$0xff] }
 0x4c3   :  { %1417 = vmatprep.subr.mxu0 %v5651_v62  ;;  %1488 = vmatprep.subr.mxu1 %v5654_v55 }
 0x4c4   :  { %1418 = vmatpush1.msra.mxu0 %v5657_v57  ;;  %1451 = vmatprep.mubr.f32.mxu0 %v7098_v24 }
 0x4c5   :  { %1489 = vmatpush1.msra.mxu1 %v5661_v1  ;;  %1522 = vmatprep.mubr.f32.mxu1 %v7098_v24 }
 0x4c6   :  { %1576 = vmatprep.subr.mxu0 %v5463_v26  ;;  %1647 = vmatprep.subr.mxu1 %v5466_v27 }
 0x565   :  { %v1279_v62 = vpop.f32.mrf.mxu0  ;;  %v1350_v57 = vpop.f32.mrf.mxu1 }
 0x566   :  { %v1355_v3 = vadd.f32 %v1279_v62, %v7122_v47  ;;  %v1357_v26 = vadd.f32 %v1350_v57, %v7125_v45  ;;  %v7130_v57 = vld [vmem:[#allocation35_spill] sm:$0xff] }
 0x567   :  { %v1281_v55 = vpop.f32.mrf.mxu0  ;;  %v1352_v63 = vpop.f32.mrf.mxu1 }
 0x568   :  { %v4044_v56 = vmul.f32 -1.442695, %v1355_v3  ;;  %v1356_v54 = vadd.f32 %v1281_v55, %v7123_v49  ;;  %v1358_v1 = vadd.f32 %v1352_v63, %v7124_v58 }
 0x56a   :  { %4255 = vpow2.f32 %v4044_v56  ;;  %v4045_v48 = vmul.f32 -1.442695, %v1356_v54  ;;  %v4046_v2 = vmul.f32 -1.442695, %v1358_v1  ;;  %v1379_v54 = vrot.slane %v5474_v51, 6  ;;  %v7128_v51 = vld [vmem:[#allocation33_spill] sm:$0xff] }
 0x56c   :  { %4257 = vpow2.f32 %v4045_v48 }
 0x56d   :  { %4259 = vpow2.f32 %v4046_v2 }
 0x577   :  { %v4256_v24 = vpop.eup %4255 }
 0x578   :  { %v1362_v44 = vadd.f32 1.0, %v4256_v24 }
 0x579   :  { %v4258_v27 = vpop.eup %4257 }
 0x57a   :  { %4261 = vrcp.f32 %v1362_v44  ;;  %v1368_v62 = vadd.f32 1.0, %v4258_v27  ;;  %v4260_v3 = vpop.eup %4259  ;;  %v7127_v27 = vld [vmem:[#allocation32_spill] sm:$0xff] }
 0x57b   :  { %4263 = vtanh.f32 %v1357_v26  ;;  %v1375_v49 = vadd.f32 1.0, %v4260_v3  ;;  %v7126_v26 = vld [vmem:[#allocation31_spill] sm:$0xff]  ;;  %v7133_v3 = vld [vmem:[#allocation38_spill] sm:$0xff] }
 0x57c   :  { %4265 = vrcp.f32 %v1368_v62  ;;  %v7132_v62 = vld [vmem:[#allocation37_spill] sm:$0xff] }
 0x57d   :  { %4267 = vrcp.f32 %v1375_v49  ;;  %v7129_v49 = vld [vmem:[#allocation34_spill] sm:$0xff] }
 0x587   :  { %v4262_v55 = vpop.eup %4261 }
 0x588   :  { %v4264_v56 = vpop.eup %4263 }
 0x589   :  { %v4266_v48 = vpop.eup %4265  ;;  %v1382_v47 = vmul.f32 %v4264_v56, %v4262_v55  ;;  %v7134_v55 = vld [vmem:[#allocation39_spill] sm:$0xff]  ;;  %v7135_v56 = vld [vmem:[#allocation40_spill] sm:$0xff] }
 0x58a   :  { %v1381_v63 = vmul.f32 %v4266_v48, %v1379_v54  ;;  %v4268_v24 = vpop.eup %4267  ;;  %v7136_v54 = vld [vmem:[#allocation41_spill] sm:$0xff]  ;;  %v7137_v48 = vld [vmem:[#allocation42_spill] sm:$0xff] }
 0x58c   :  { %v5672_v1 = vadd.f32 %v1382_v47, %v1381_v63  ;;  %v7131_v47 = vld [vmem:[#allocation36_spill] sm:$0xff]  ;;  %v7138_v63 = vld [vmem:[#allocation43_spill] sm:$0xff] }
 0x58e   :  { %4269 = vtanh.f32 %v5672_v1 }
 0x59b   :  { %v4270_v2 = vpop.eup %4269 }
 0x59c   :  { %v1385_v44 = vmul.f32 %v4270_v2, %v4268_v24  ;;  %v7139_v24 = vld [vmem:[#allocation44_spill] sm:$0xff]  ;;  %v7140_v2 = vld [vmem:[#allocation45_spill] sm:$0xff] }
 0x59e   :  { %1386 = vst [vmem:[#allocation2 + $0x8] sm:$0x3] %v1385_v44  ;;  %1452 = vmatmul.mubr.f32.vlgmr.msra.gmra.mxu0 %v1385_v44  ;;  %1523 = vmatmul.mubr.f32.vlgmr.msra.gmra.mxu1 %v1385_v44  ;;  %v7141_v44 = vld [vmem:[#allocation46_spill] sm:$0xff] }
 0x59f   :  { %1577 = vmatpush1.msra.mxu0 %v5477_v60  ;;  %1648 = vmatpush1.msra.mxu1 %v5480_v59 }
 0x5a0   :  { %1578 = vmatprep.subr.mxu0 %v5483_v46  ;;  %1649 = vmatprep.subr.mxu1 %v5486_v61 }
 0x5a1   :  { %1579 = vmatpush1.msra.mxu0 %v5489_v4  ;;  %1650 = vmatpush1.msra.mxu1 %v5492_v0 }
 0x5a2   :  { %1580 = vmatprep.subr.mxu0 %v5495_v50  ;;  %1651 = vmatprep.subr.mxu1 %v5498_v53 }
 0x5a3   :  { %1581 = vmatpush1.msra.mxu0 %v5501_v52  ;;  %1652 = vmatpush1.msra.mxu1 %v5504_v5 }
 0x5a4   :  { %1582 = vmatprep.subr.mxu0 %v5507_v6  ;;  %1653 = vmatprep.subr.mxu1 %v5510_v7 }
 0x5a5   :  { %1583 = vmatpush1.msra.mxu0 %v5513_v8  ;;  %1654 = vmatpush1.msra.mxu1 %v5516_v9 }
 0x5a6   :  { %1584 = vmatprep.subr.mxu0 %v5519_v10  ;;  %1655 = vmatprep.subr.mxu1 %v5522_v11 }
 0x5a7   :  { %1585 = vmatpush1.msra.mxu0 %v5525_v12  ;;  %1656 = vmatpush1.msra.mxu1 %v5528_v13 }
 0x5a8   :  { %1586 = vmatprep.subr.mxu0 %v5531_v14  ;;  %1657 = vmatprep.subr.mxu1 %v5534_v15 }
 0x5a9   :  { %1587 = vmatpush1.msra.mxu0 %v5537_v16  ;;  %1658 = vmatpush1.msra.mxu1 %v5540_v17 }
 0x5aa   :  { %1588 = vmatprep.subr.mxu0 %v5543_v18  ;;  %1659 = vmatprep.subr.mxu1 %v5546_v19 }
 0x5ab   :  { %1589 = vmatpush1.msra.mxu0 %v5549_v20  ;;  %1660 = vmatpush1.msra.mxu1 %v5552_v21 }
 0x5ac   :  { %1590 = vmatprep.subr.mxu0 %v5555_v22  ;;  %1661 = vmatprep.subr.mxu1 %v5558_v23 }
 0x5ad   :  { %1591 = vmatpush1.msra.mxu0 %v5561_v25  ;;  %1662 = vmatpush1.msra.mxu1 %v5564_v28 }
 0x5ae   :  { %1592 = vmatprep.subr.mxu0 %v5567_v29  ;;  %1663 = vmatprep.subr.mxu1 %v5570_v30 }
 0x5af   :  { %1593 = vmatpush1.msra.mxu0 %v5573_v31  ;;  %1664 = vmatpush1.msra.mxu1 %v5576_v32 }
 0x5b0   :  { %1594 = vmatprep.subr.mxu0 %v5579_v33  ;;  %1665 = vmatprep.subr.mxu1 %v5582_v34 }
 0x5b1   :  { %1595 = vmatpush1.msra.mxu0 %v5585_v35  ;;  %1666 = vmatpush1.msra.mxu1 %v5588_v36 }
 0x5b2   :  { %1596 = vmatprep.subr.mxu0 %v5591_v37  ;;  %1667 = vmatprep.subr.mxu1 %v5594_v38 }
 0x5b3   :  { %1597 = vmatpush1.msra.mxu0 %v5597_v39  ;;  %1668 = vmatpush1.msra.mxu1 %v5600_v40 }
 0x5b4   :  { %1598 = vmatprep.subr.mxu0 %v5603_v41  ;;  %1669 = vmatprep.subr.mxu1 %v5606_v42 }
 0x5b5   :  { %1599 = vmatpush1.msra.mxu0 %v5609_v43  ;;  %1670 = vmatpush1.msra.mxu1 %v7126_v26 }
 0x5b6   :  { %1600 = vmatprep.subr.mxu0 %v7127_v27  ;;  %1671 = vmatprep.subr.mxu1 %v7128_v51  ;;  %v7147_v51 = vld [vmem:[#allocation51_spill] sm:$0xff] }
 0x5b7   :  { %1601 = vmatpush1.msra.mxu0 %v7129_v49  ;;  %1672 = vmatpush1.msra.mxu1 %v7130_v57 }
 0x5b8   :  { %1602 = vmatprep.subr.mxu0 %v7131_v47  ;;  %1673 = vmatprep.subr.mxu1 %v7132_v62  ;;  %v7142_v47 = vmov 0.0   ;;  %v7143_v62 = vld [vmem:[#allocation47_spill] sm:$0xff] }
 0x5b9   :  { %1603 = vmatpush1.msra.mxu0 %v7133_v3  ;;  %1674 = vmatpush1.msra.mxu1 %v7134_v55  ;;  %v7144_v55 = vld [vmem:[#allocation28_spill] sm:$0xff] }
 0x5ba   :  { %1604 = vmatprep.subr.mxu0 %v7135_v56  ;;  %1675 = vmatprep.subr.mxu1 %v7136_v54  ;;  %v7145_v56 = vld [vmem:[#allocation26_spill] sm:$0xff] }
 0x5bb   :  { %1605 = vmatpush1.msra.mxu0 %v7137_v48  ;;  %1676 = vmatpush1.msra.mxu1 %v7138_v63  ;;  %v7146_v63 = vld [vmem:[#allocation50_spill] sm:$0xff] }
 0x5bc   :  { %1606 = vmatprep.subr.mxu0 %v7139_v24  ;;  %1677 = vmatprep.subr.mxu1 %v7140_v2 }
 0x5bd   :  { %1607 = vmatpush1.msra.mxu0 %v7141_v44  ;;  %1640 = vmatprep.mubr.f32.mxu0 %v7142_v47 }
 0x5be   :  { %1678 = vmatpush1.msra.mxu1 %v7143_v62  ;;  %1711 = vmatprep.mubr.f32.mxu1 %v7142_v47 }
 0x5bf   :  { %1765 = vmatprep.subr.mxu0 %v7144_v55  ;;  %1836 = vmatprep.subr.mxu1 %v7145_v56 }
 0x65e   :  { %v1453_v54 = vpop.f32.mrf.mxu0  ;;  %v1524_v24 = vpop.f32.mrf.mxu1 }
 0x65f   :  { %v1533_v48 = vrot.slane %v1453_v54, 6  ;;  %v1535_v55 = vrot.slane %v1524_v24, 6 }
 0x660   :  { %v1455_v3 = vpop.f32.mrf.mxu0  ;;  %v1526_v26 = vpop.f32.mrf.mxu1 }
 0x661   :  { %v1541_v57 = vadd.f32 %v1533_v48, %v7146_v63  ;;  %v1534_v49 = vrot.slane %v1455_v3, 6  ;;  %v1536_v62 = vrot.slane %v1526_v26, 6  ;;  %v1543_v54 = vadd.f32 %v1535_v55, %v7125_v45 }
 0x663   :  { %v4047_v2 = vmul.f32 -1.442695, %v1541_v57  ;;  %v1542_v44 = vadd.f32 %v1534_v49, %v7147_v51  ;;  %v1544_v47 = vadd.f32 %v1536_v62, %v7124_v58 }
 0x665   :  { %4271 = vpow2.f32 %v4047_v2  ;;  %v4048_v27 = vmul.f32 -1.442695, %v1542_v44  ;;  %v4049_v43 = vmul.f32 -1.442695, %v1544_v47 }
 0x667   :  { %4273 = vpow2.f32 %v4048_v27  ;;  %v1565_v27 = vrot.slane %v5672_v1, 6 }
 0x668   :  { %4275 = vpow2.f32 %v4049_v43 }
 0x672   :  { %v4272_v56 = vpop.eup %4271 }
 0x673   :  { %v1548_v42 = vadd.f32 1.0, %v4272_v56 }
 0x674   :  { %v4274_v41 = vpop.eup %4273 }
 0x675   :  { %4277 = vrcp.f32 %v1548_v42  ;;  %v1554_v3 = vadd.f32 1.0, %v4274_v41  ;;  %v4276_v49 = vpop.eup %4275 }
 0x676   :  { %4279 = vtanh.f32 %v1543_v54  ;;  %v1561_v2 = vadd.f32 1.0, %v4276_v49 }
 0x677   :  { %4281 = vrcp.f32 %v1554_v3 }
 0x678   :  { %4283 = vrcp.f32 %v1561_v2 }
 0x682   :  { %v4278_v57 = vpop.eup %4277 }
 0x683   :  { %v4280_v48 = vpop.eup %4279 }
 0x684   :  { %v4282_v26 = vpop.eup %4281  ;;  %v1568_v62 = vmul.f32 %v4280_v48, %v4278_v57 }
 0x685   :  { %v1567_v24 = vmul.f32 %v4282_v26, %v1565_v27  ;;  %v4284_v44 = vpop.eup %4283 }
 0x687   :  { %v5746_v47 = vadd.f32 %v1568_v62, %v1567_v24 }
 0x689   :  { %4285 = vtanh.f32 %v5746_v47  ;;  %v1754_v54 = vrot.slane %v5746_v47, 6  ;;  %v2009_v47 = vld [vmem:[#allocation13 + $0x1c0] sm:$0xff] }
 0x696   :  { %v4286_v43 = vpop.eup %4285 }
 0x697   :  { %v1571_v42 = vmul.f32 %v4286_v43, %v4284_v44  ;;  %v2013_v44 = vld [vmem:[#allocation13 + $0x1e0] sm:$0xff]  ;;  %v2015_v43 = vld [vmem:[#allocation13 + $0x1f0] sm:$0xff] }
 0x699   :  { %1572 = vst [vmem:[#allocation2 + $0x8] sm:$0xc] %v1571_v42  ;;  %v1574_v41 = vrot.slane %v1571_v42, 2  ;;  %v2010_v42 = vld [vmem:[#allocation13 + $0x1c8] sm:$0xff] }
 0x69b   :  { %1641 = vmatmul.mubr.f32.vlgmr.msra.gmra.mxu0 %v1574_v41  ;;  %1712 = vmatmul.mubr.f32.vlgmr.msra.gmra.mxu1 %v1574_v41  ;;  %v2012_v41 = vld [vmem:[#allocation13 + $0x1d8] sm:$0xff] }
 0x69c   :  { %1766 = vmatpush1.msra.mxu0 %v5477_v60  ;;  %1837 = vmatpush1.msra.mxu1 %v5480_v59  ;;  %v7148_v60 = vld [vmem:[#allocation27_spill] sm:$0xff]  ;;  %v7149_v59 = vld [vmem:[#allocation29_spill] sm:$0xff] }
 0x69d   :  { %1767 = vmatprep.subr.mxu0 %v5483_v46  ;;  %1838 = vmatprep.subr.mxu1 %v5486_v61  ;;  %v7150_v46 = vld [vmem:[#allocation30_spill] sm:$0xff]  ;;  %v7151_v61 = vld [vmem:[#allocation31_spill] sm:$0xff] }
 0x69e   :  { %1768 = vmatpush1.msra.mxu0 %v5489_v4  ;;  %1839 = vmatpush1.msra.mxu1 %v5492_v0  ;;  %v7152_v4 = vld [vmem:[#allocation32_spill] sm:$0xff]  ;;  %v7153_v0 = vld [vmem:[#allocation33_spill] sm:$0xff] }
 0x69f   :  { %1769 = vmatprep.subr.mxu0 %v5495_v50  ;;  %1840 = vmatprep.subr.mxu1 %v5498_v53  ;;  %v7154_v50 = vld [vmem:[#allocation34_spill] sm:$0xff]  ;;  %v7155_v53 = vld [vmem:[#allocation35_spill] sm:$0xff] }
 0x6a0   :  { %1770 = vmatpush1.msra.mxu0 %v5501_v52  ;;  %1841 = vmatpush1.msra.mxu1 %v5504_v5  ;;  %v7156_v52 = vld [vmem:[#allocation36_spill] sm:$0xff]  ;;  %v7157_v5 = vld [vmem:[#allocation37_spill] sm:$0xff] }
 0x6a1   :  { %1771 = vmatprep.subr.mxu0 %v5507_v6  ;;  %1842 = vmatprep.subr.mxu1 %v5510_v7  ;;  %v7158_v6 = vld [vmem:[#allocation38_spill] sm:$0xff]  ;;  %v7159_v7 = vld [vmem:[#allocation39_spill] sm:$0xff] }
 0x6a2   :  { %1772 = vmatpush1.msra.mxu0 %v5513_v8  ;;  %1843 = vmatpush1.msra.mxu1 %v5516_v9  ;;  %v7160_v8 = vld [vmem:[#allocation40_spill] sm:$0xff]  ;;  %v7161_v9 = vld [vmem:[#allocation41_spill] sm:$0xff] }
 0x6a3   :  { %1773 = vmatprep.subr.mxu0 %v5519_v10  ;;  %1844 = vmatprep.subr.mxu1 %v5522_v11  ;;  %v7162_v10 = vld [vmem:[#allocation42_spill] sm:$0xff]  ;;  %v7163_v11 = vld [vmem:[#allocation43_spill] sm:$0xff] }
 0x6a4   :  { %1774 = vmatpush1.msra.mxu0 %v5525_v12  ;;  %1845 = vmatpush1.msra.mxu1 %v5528_v13  ;;  %v7164_v12 = vld [vmem:[#allocation44_spill] sm:$0xff]  ;;  %v7165_v13 = vld [vmem:[#allocation45_spill] sm:$0xff] }
 0x6a5   :  { %1775 = vmatprep.subr.mxu0 %v5531_v14  ;;  %1846 = vmatprep.subr.mxu1 %v5534_v15  ;;  %v7166_v14 = vld [vmem:[#allocation46_spill] sm:$0xff]  ;;  %v7167_v15 = vld [vmem:[#allocation47_spill] sm:$0xff] }
 0x6a6   :  { %1776 = vmatpush1.msra.mxu0 %v5537_v16  ;;  %1847 = vmatpush1.msra.mxu1 %v5540_v17  ;;  %v7168_v16 = vmov 0.0   ;;  %v2014_v17 = vld [vmem:[#allocation13 + $0x1e8] sm:$0xff] }
 0x6a7   :  { %1777 = vmatprep.subr.mxu0 %v5543_v18  ;;  %1848 = vmatprep.subr.mxu1 %v5546_v19  ;;  %v2016_v18 = vld [vmem:[#allocation13 + $0x1f8] sm:$0xff] }
 0x6a8   :  { %1778 = vmatpush1.msra.mxu0 %v5549_v20  ;;  %1849 = vmatpush1.msra.mxu1 %v5552_v21 }
 0x6a9   :  { %1779 = vmatprep.subr.mxu0 %v5555_v22  ;;  %1850 = vmatprep.subr.mxu1 %v5558_v23 }
 0x6aa   :  { %1780 = vmatpush1.msra.mxu0 %v5561_v25  ;;  %1851 = vmatpush1.msra.mxu1 %v5564_v28 }
 0x6ab   :  { %1781 = vmatprep.subr.mxu0 %v5567_v29  ;;  %1852 = vmatprep.subr.mxu1 %v5570_v30 }
 0x6ac   :  { %1782 = vmatpush1.msra.mxu0 %v5573_v31  ;;  %1853 = vmatpush1.msra.mxu1 %v5576_v32 }
 0x6ad   :  { %1783 = vmatprep.subr.mxu0 %v5579_v33  ;;  %1854 = vmatprep.subr.mxu1 %v5582_v34 }
 0x6ae   :  { %1784 = vmatpush1.msra.mxu0 %v5585_v35  ;;  %1855 = vmatpush1.msra.mxu1 %v5588_v36 }
 0x6af   :  { %1785 = vmatprep.subr.mxu0 %v5591_v37  ;;  %1856 = vmatprep.subr.mxu1 %v5594_v38 }
 0x6b0   :  { %1786 = vmatpush1.msra.mxu0 %v5597_v39  ;;  %1857 = vmatpush1.msra.mxu1 %v5600_v40 }
 0x6b1   :  { %1787 = vmatprep.subr.mxu0 %v7148_v60  ;;  %1858 = vmatprep.subr.mxu1 %v7149_v59  ;;  %v2011_v60 = vld [vmem:[#allocation13 + $0x1d0] sm:$0xff]  ;;  %v2006_v59 = vld [vmem:[#allocation13 + $0x1a8] sm:$0xff] }
 0x6b2   :  { %1788 = vmatpush1.msra.mxu0 %v7150_v46  ;;  %1859 = vmatpush1.msra.mxu1 %v7151_v61  ;;  %v2008_v46 = vld [vmem:[#allocation13 + $0x1b8] sm:$0xff]  ;;  %v2005_v61 = vld [vmem:[#allocation13 + $0x1a0] sm:$0xff] }
 0x6b3   :  { %1789 = vmatprep.subr.mxu0 %v7152_v4  ;;  %1860 = vmatprep.subr.mxu1 %v7153_v0  ;;  %v2007_v4 = vld [vmem:[#allocation13 + $0x1b0] sm:$0xff]  ;;  %v2002_v0 = vld [vmem:[#allocation13 + $0x188] sm:$0xff] }
 0x6b4   :  { %1790 = vmatpush1.msra.mxu0 %v7154_v50  ;;  %1861 = vmatpush1.msra.mxu1 %v7155_v53  ;;  %v2004_v50 = vld [vmem:[#allocation13 + $0x198] sm:$0xff]  ;;  %v2001_v53 = vld [vmem:[#allocation13 + $0x180] sm:$0xff] }
 0x6b5   :  { %1791 = vmatprep.subr.mxu0 %v7156_v52  ;;  %1862 = vmatprep.subr.mxu1 %v7157_v5  ;;  %v2003_v52 = vld [vmem:[#allocation13 + $0x190] sm:$0xff]  ;;  %v1998_v5 = vld [vmem:[#allocation13 + $0x168] sm:$0xff] }
 0x6b6   :  { %1792 = vmatpush1.msra.mxu0 %v7158_v6  ;;  %1863 = vmatpush1.msra.mxu1 %v7159_v7  ;;  %v2000_v6 = vld [vmem:[#allocation13 + $0x178] sm:$0xff]  ;;  %v1997_v7 = vld [vmem:[#allocation13 + $0x160] sm:$0xff] }
 0x6b7   :  { %1793 = vmatprep.subr.mxu0 %v7160_v8  ;;  %1864 = vmatprep.subr.mxu1 %v7161_v9  ;;  %v1999_v8 = vld [vmem:[#allocation13 + $0x170] sm:$0xff]  ;;  %v1994_v9 = vld [vmem:[#allocation13 + $0x148] sm:$0xff] }
 0x6b8   :  { %1794 = vmatpush1.msra.mxu0 %v7162_v10  ;;  %1865 = vmatpush1.msra.mxu1 %v7163_v11  ;;  %v1996_v10 = vld [vmem:[#allocation13 + $0x158] sm:$0xff]  ;;  %v1993_v11 = vld [vmem:[#allocation13 + $0x140] sm:$0xff] }
 0x6b9   :  { %1795 = vmatprep.subr.mxu0 %v7164_v12  ;;  %1866 = vmatprep.subr.mxu1 %v7165_v13  ;;  %v1995_v12 = vld [vmem:[#allocation13 + $0x150] sm:$0xff]  ;;  %v1990_v13 = vld [vmem:[#allocation13 + $0x128] sm:$0xff] }
 0x6ba   :  { %1796 = vmatpush1.msra.mxu0 %v7166_v14  ;;  %1867 = vmatpush1.msra.mxu1 %v7167_v15  ;;  %v1992_v14 = vld [vmem:[#allocation13 + $0x138] sm:$0xff]  ;;  %v1989_v15 = vld [vmem:[#allocation13 + $0x120] sm:$0xff] }
 0x6bb   :  { %1829 = vmatprep.mubr.f32.mxu0 %v7168_v16  ;;  %1900 = vmatprep.mubr.f32.mxu1 %v7168_v16 }
 0x6bc   :  { %2039 = vmatprep.subr.mxu0 %v2014_v17  ;;  %2116 = vmatprep.subr.mxu1 %v2016_v18  ;;  %v1991_v17 = vld [vmem:[#allocation13 + $0x130] sm:$0xff]  ;;  %v1986_v18 = vld [vmem:[#allocation13 + $0x108] sm:$0xff] }
 0x75b   :  { %v1642_v19 = vpop.f32.mrf.mxu0  ;;  %v1713_v23 = vpop.f32.mrf.mxu1 }
 0x75c   :  { %v1722_v20 = vrot.slane %v1642_v19, 4  ;;  %v1724_v34 = vrot.slane %v1713_v23, 4  ;;  %v1988_v19 = vld [vmem:[#allocation13 + $0x118] sm:$0xff] }
 0x75d   :  { %v1644_v21 = vpop.f32.mrf.mxu0  ;;  %v1715_v31 = vpop.f32.mrf.mxu1  ;;  %v1984_v23 = vld [vmem:[#allocation13 + $0xf8] sm:$0xff] }
 0x75e   :  { %v1730_v22 = vadd.f32 %v1722_v20, %v7146_v63  ;;  %v1723_v25 = vrot.slane %v1644_v21, 4  ;;  %v1725_v32 = vrot.slane %v1715_v31, 4  ;;  %v1732_v37 = vadd.f32 %v1724_v34, %v7125_v45  ;;  %v1985_v20 = vld [vmem:[#allocation13 + $0x100] sm:$0xff]  ;;  %v1987_v21 = vld [vmem:[#allocation13 + $0x110] sm:$0xff]  ;;  %v1976_v34 = vld [vmem:[#allocation13 + $0xb8] sm:$0xff] }
 0x75f   :  { %v1977_v31 = vld [vmem:[#allocation13 + $0xc0] sm:$0xff] }
 0x760   :  { %v4050_v28 = vmul.f32 -1.442695, %v1730_v22  ;;  %v1731_v29 = vadd.f32 %v1723_v25, %v7147_v51  ;;  %v1733_v33 = vadd.f32 %v1725_v32, %v7124_v58  ;;  %v1982_v22 = vld [vmem:[#allocation13 + $0xe8] sm:$0xff]  ;;  %v1981_v25 = vld [vmem:[#allocation13 + $0xe0] sm:$0xff]  ;;  %v1979_v32 = vld [vmem:[#allocation13 + $0xd0] sm:$0xff] }
 0x762   :  { %4287 = vpow2.f32 %v4050_v28  ;;  %v4051_v30 = vmul.f32 -1.442695, %v1731_v29  ;;  %v4052_v35 = vmul.f32 -1.442695, %v1733_v33  ;;  %v1983_v28 = vld [vmem:[#allocation13 + $0xf0] sm:$0xff]  ;;  %v1978_v29 = vld [vmem:[#allocation13 + $0xc8] sm:$0xff] }
 0x763   :  { %v1974_v33 = vld [vmem:[#allocation13 + $0xa8] sm:$0xff] }
 0x764   :  { %4289 = vpow2.f32 %v4051_v30  ;;  %v1980_v30 = vld [vmem:[#allocation13 + $0xd8] sm:$0xff] }
 0x765   :  { %4291 = vpow2.f32 %v4052_v35  ;;  %v1973_v35 = vld [vmem:[#allocation13 + $0xa0] sm:$0xff] }
 0x76f   :  { %v4288_v36 = vpop.eup %4287 }
 0x770   :  { %v1737_v38 = vadd.f32 1.0, %v4288_v36  ;;  %v1975_v36 = vld [vmem:[#allocation13 + $0xb0] sm:$0xff] }
 0x771   :  { %v4290_v39 = vpop.eup %4289 }
 0x772   :  { %4293 = vrcp.f32 %v1737_v38  ;;  %v1743_v40 = vadd.f32 1.0, %v4290_v39  ;;  %v4292_v1 = vpop.eup %4291  ;;  %v1972_v38 = vld [vmem:[#allocation13 + $0x98] sm:$0xff]  ;;  %v1969_v39 = vld [vmem:[#allocation13 + $0x80] sm:$0xff] }
 0x773   :  { %4295 = vtanh.f32 %v1732_v37  ;;  %v1750_v49 = vadd.f32 1.0, %v4292_v1  ;;  %v1970_v37 = vld [vmem:[#allocation13 + $0x88] sm:$0xff] }
 0x774   :  { %4297 = vrcp.f32 %v1743_v40  ;;  %v1971_v40 = vld [vmem:[#allocation13 + $0x90] sm:$0xff]  ;;  %v1966_v1 = vld [vmem:[#allocation13 + $0x68] sm:$0xff] }
 0x775   :  { %4299 = vrcp.f32 %v1750_v49  ;;  %v1964_v49 = vld [vmem:[#allocation13 + $0x58] sm:$0xff] }
 0x77f   :  { %v4294_v55 = vpop.eup %4293 }
 0x780   :  { %v4296_v56 = vpop.eup %4295 }
 0x781   :  { %v4298_v3 = vpop.eup %4297  ;;  %v1757_v57 = vmul.f32 %v4296_v56, %v4294_v55  ;;  %v1968_v55 = vld [vmem:[#allocation13 + $0x78] sm:$0xff]  ;;  %v1965_v56 = vld [vmem:[#allocation13 + $0x60] sm:$0xff] }
 0x782   :  { %v1756_v48 = vmul.f32 %v4298_v3, %v1754_v54  ;;  %v4300_v26 = vpop.eup %4299  ;;  %v1967_v54 = vld [vmem:[#allocation13 + $0x70] sm:$0xff]  ;;  %v1962_v3 = vld [vmem:[#allocation13 + $0x48] sm:$0xff] }
 0x784   :  { %v5818_v27 = vadd.f32 %v1757_v57, %v1756_v48  ;;  %v1961_v57 = vld [vmem:[#allocation13 + $0x40] sm:$0xff]  ;;  %v1963_v48 = vld [vmem:[#allocation13 + $0x50] sm:$0xff] }
 0x786   :  { %4301 = vtanh.f32 %v5818_v27 }
 0x793   :  { %v4302_v2 = vpop.eup %4301 }
 0x794   :  { %v1760_v62 = vmul.f32 %v4302_v2, %v4300_v26  ;;  %v1958_v26 = vld [vmem:[#allocation13 + $0x28] sm:$0xff]  ;;  %v1960_v2 = vld [vmem:[#allocation13 + $0x38] sm:$0xff] }
 0x796   :  { %1761 = vst [vmem:[#allocation2 + $0x8] sm:$0x30] %v1760_v62  ;;  %v1763_v24 = vrot.slane %v1760_v62, 4  ;;  %v1957_v62 = vld [vmem:[#allocation13 + $0x20] sm:$0xff] }
 0x798   :  { %1830 = vmatmul.mubr.f32.vlgmr.msra.gmra.mxu0 %v1763_v24  ;;  %1901 = vmatmul.mubr.f32.vlgmr.msra.gmra.mxu1 %v1763_v24  ;;  %v1959_v24 = vld [vmem:[#allocation13 + $0x30] sm:$0xff] }
 0x799   :  { %2040 = vmatpush1.msra.mxu0 %v2013_v44  ;;  %2117 = vmatpush1.msra.mxu1 %v2015_v43  ;;  %v1954_v44 = vld [vmem:[#allocation13 + $0x8] sm:$0xff]  ;;  %v1956_v43 = vld [vmem:[#allocation13 + $0x18] sm:$0xff] }
 0x79a   :  { %2041 = vmatprep.subr.mxu0 %v2010_v42  ;;  %2118 = vmatprep.subr.mxu1 %v2012_v41  ;;  %v1953_v42 = vld [vmem:[#allocation13] sm:$0xff]  ;;  %v1955_v41 = vld [vmem:[#allocation13 + $0x10] sm:$0xff] }
 0x79b   :  { %2042 = vmatpush1.msra.mxu0 %v2009_v47  ;;  %2119 = vmatpush1.msra.mxu1 %v2011_v60  ;;  %v1951_v47 = vld [vmem:[#allocation2] sm:$0xff] }
 0x79c   :  { %2043 = vmatprep.subr.mxu0 %v2006_v59  ;;  %2120 = vmatprep.subr.mxu1 %v2008_v46  ;;  %v5825_v60 = vld [vmem:[#allocation15 + $0x1e8] sm:$0xff]  ;;  %v5827_v59 = vld [vmem:[#allocation15 + $0x1f8] sm:$0xff]  ;;  %v5831_v46 = vld [vmem:[#allocation15 + $0x1e0] sm:$0xff] }
 0x79d   :  { %2044 = vmatpush1.msra.mxu0 %v2005_v61  ;;  %2121 = vmatpush1.msra.mxu1 %v2007_v4  ;;  %7169 = vst [vmem:[#allocation48_spill] sm:$0xff] %v5825_v60  ;;  %7170 = vst [vmem:[#allocation53_spill] sm:$0xff] %v5827_v59  ;;  %v5833_v61 = vld [vmem:[#allocation15 + $0x1f0] sm:$0xff]  ;;  %v5837_v4 = vld [vmem:[#allocation15 + $0x1c8] sm:$0xff] }
 0x79e   :  { %2045 = vmatprep.subr.mxu0 %v2002_v0  ;;  %2122 = vmatprep.subr.mxu1 %v2004_v50  ;;  %v5839_v0 = vld [vmem:[#allocation15 + $0x1d8] sm:$0xff]  ;;  %v5843_v50 = vld [vmem:[#allocation15 + $0x1c0] sm:$0xff] }
 0x79f   :  { %2046 = vmatpush1.msra.mxu0 %v2001_v53  ;;  %2123 = vmatpush1.msra.mxu1 %v2003_v52  ;;  %v5845_v53 = vld [vmem:[#allocation15 + $0x1d0] sm:$0xff]  ;;  %v5849_v52 = vld [vmem:[#allocation15 + $0x1a8] sm:$0xff] }
 0x7a0   :  { %2047 = vmatprep.subr.mxu0 %v1998_v5  ;;  %2124 = vmatprep.subr.mxu1 %v2000_v6  ;;  %v5851_v5 = vld [vmem:[#allocation15 + $0x1b8] sm:$0xff]  ;;  %v5855_v6 = vld [vmem:[#allocation15 + $0x1a0] sm:$0xff] }
 0x7a1   :  { %2048 = vmatpush1.msra.mxu0 %v1997_v7  ;;  %2125 = vmatpush1.msra.mxu1 %v1999_v8  ;;  %v5857_v7 = vld [vmem:[#allocation15 + $0x1b0] sm:$0xff]  ;;  %v5861_v8 = vld [vmem:[#allocation15 + $0x188] sm:$0xff] }
 0x7a2   :  { %2049 = vmatprep.subr.mxu0 %v1994_v9  ;;  %2126 = vmatprep.subr.mxu1 %v1996_v10  ;;  %v5863_v9 = vld [vmem:[#allocation15 + $0x198] sm:$0xff]  ;;  %v5867_v10 = vld [vmem:[#allocation15 + $0x180] sm:$0xff] }
 0x7a3   :  { %2050 = vmatpush1.msra.mxu0 %v1993_v11  ;;  %2127 = vmatpush1.msra.mxu1 %v1995_v12  ;;  %v5869_v11 = vld [vmem:[#allocation15 + $0x190] sm:$0xff]  ;;  %v5873_v12 = vld [vmem:[#allocation15 + $0x168] sm:$0xff] }
 0x7a4   :  { %2051 = vmatprep.subr.mxu0 %v1990_v13  ;;  %2128 = vmatprep.subr.mxu1 %v1992_v14  ;;  %v5875_v13 = vld [vmem:[#allocation15 + $0x178] sm:$0xff]  ;;  %v5879_v14 = vld [vmem:[#allocation15 + $0x160] sm:$0xff] }
 0x7a5   :  { %2052 = vmatpush1.msra.mxu0 %v1989_v15  ;;  %2129 = vmatpush1.msra.mxu1 %v1991_v17  ;;  %v5881_v15 = vld [vmem:[#allocation15 + $0x170] sm:$0xff]  ;;  %v5885_v17 = vld [vmem:[#allocation15 + $0x148] sm:$0xff] }
 0x7a6   :  { %2053 = vmatprep.subr.mxu0 %v1986_v18  ;;  %2130 = vmatprep.subr.mxu1 %v1988_v19  ;;  %v5887_v18 = vld [vmem:[#allocation15 + $0x158] sm:$0xff]  ;;  %v5891_v19 = vld [vmem:[#allocation15 + $0x140] sm:$0xff] }
 0x7a7   :  { %2054 = vmatpush1.msra.mxu0 %v1985_v20  ;;  %2131 = vmatpush1.msra.mxu1 %v1987_v21  ;;  %v5893_v20 = vld [vmem:[#allocation15 + $0x150] sm:$0xff]  ;;  %v5897_v21 = vld [vmem:[#allocation15 + $0x128] sm:$0xff] }
 0x7a8   :  { %2055 = vmatprep.subr.mxu0 %v1982_v22  ;;  %2132 = vmatprep.subr.mxu1 %v1984_v23  ;;  %v5899_v22 = vld [vmem:[#allocation15 + $0x138] sm:$0xff]  ;;  %v5903_v23 = vld [vmem:[#allocation15 + $0x120] sm:$0xff] }
 0x7a9   :  { %2056 = vmatpush1.msra.mxu0 %v1981_v25  ;;  %2133 = vmatpush1.msra.mxu1 %v1983_v28  ;;  %v5905_v25 = vld [vmem:[#allocation15 + $0x130] sm:$0xff]  ;;  %v5909_v28 = vld [vmem:[#allocation15 + $0x108] sm:$0xff] }
 0x7aa   :  { %2057 = vmatprep.subr.mxu0 %v1978_v29  ;;  %2134 = vmatprep.subr.mxu1 %v1980_v30  ;;  %v5911_v29 = vld [vmem:[#allocation15 + $0x118] sm:$0xff]  ;;  %v5915_v30 = vld [vmem:[#allocation15 + $0x100] sm:$0xff] }
 0x7ab   :  { %2058 = vmatpush1.msra.mxu0 %v1977_v31  ;;  %2135 = vmatpush1.msra.mxu1 %v1979_v32  ;;  %v5917_v31 = vld [vmem:[#allocation15 + $0x110] sm:$0xff]  ;;  %v5921_v32 = vld [vmem:[#allocation15 + $0xe8] sm:$0xff] }
 0x7ac   :  { %2059 = vmatprep.subr.mxu0 %v1974_v33  ;;  %2136 = vmatprep.subr.mxu1 %v1976_v34  ;;  %v5923_v33 = vld [vmem:[#allocation15 + $0xf8] sm:$0xff]  ;;  %v5927_v34 = vld [vmem:[#allocation15 + $0xe0] sm:$0xff] }
 0x7ad   :  { %2060 = vmatpush1.msra.mxu0 %v1973_v35  ;;  %2137 = vmatpush1.msra.mxu1 %v1975_v36  ;;  %v5929_v35 = vld [vmem:[#allocation15 + $0xf0] sm:$0xff]  ;;  %v5933_v36 = vld [vmem:[#allocation15 + $0xc8] sm:$0xff] }
 0x7ae   :  { %2061 = vmatprep.subr.mxu0 %v1970_v37  ;;  %2138 = vmatprep.subr.mxu1 %v1972_v38  ;;  %v5935_v37 = vld [vmem:[#allocation15 + $0xd8] sm:$0xff]  ;;  %v5939_v38 = vld [vmem:[#allocation15 + $0xc0] sm:$0xff] }
 0x7af   :  { %2062 = vmatpush1.msra.mxu0 %v1969_v39  ;;  %2139 = vmatpush1.msra.mxu1 %v1971_v40  ;;  %v5941_v39 = vld [vmem:[#allocation15 + $0xd0] sm:$0xff]  ;;  %v5943_v40 = vld [vmem:[#allocation15 + $0xa8] sm:$0xff] }
 0x7b0   :  { %2063 = vmatprep.subr.mxu0 %v1966_v1  ;;  %2140 = vmatprep.subr.mxu1 %v1968_v55  ;;  %v5947_v1 = vld [vmem:[#allocation15 + $0xb8] sm:$0xff]  ;;  %v5949_v55 = vld [vmem:[#allocation15 + $0xa0] sm:$0xff] }
 0x7b1   :  { %2064 = vmatpush1.msra.mxu0 %v1965_v56  ;;  %2141 = vmatpush1.msra.mxu1 %v1967_v54  ;;  %v5951_v56 = vld [vmem:[#allocation15 + $0xb0] sm:$0xff]  ;;  %v5955_v54 = vld [vmem:[#allocation15 + $0x88] sm:$0xff] }
 0x7b2   :  { %2065 = vmatprep.subr.mxu0 %v1962_v3  ;;  %2142 = vmatprep.subr.mxu1 %v1964_v49  ;;  %7171 = vst [vmem:[#allocation52_spill] sm:$0xff] %v5951_v56  ;;  %7172 = vst [vmem:[#allocation28_spill] sm:$0xff] %v5955_v54  ;;  %v5957_v3 = vld [vmem:[#allocation15 + $0x98] sm:$0xff]  ;;  %v5959_v49 = vld [vmem:[#allocation15 + $0x80] sm:$0xff] }
 0x7b3   :  { %2066 = vmatpush1.msra.mxu0 %v1961_v57  ;;  %2143 = vmatpush1.msra.mxu1 %v1963_v48  ;;  %7173 = vst [vmem:[#allocation26_spill] sm:$0xff] %v5957_v3  ;;  %7174 = vst [vmem:[#allocation50_spill] sm:$0xff] %v5959_v49  ;;  %v5963_v57 = vld [vmem:[#allocation15 + $0x90] sm:$0xff]  ;;  %v5965_v48 = vld [vmem:[#allocation15 + $0x68] sm:$0xff] }
 0x7b4   :  { %2067 = vmatprep.subr.mxu0 %v1958_v26  ;;  %2144 = vmatprep.subr.mxu1 %v1960_v2  ;;  %7175 = vst [vmem:[#allocation51_spill] sm:$0xff] %v5963_v57  ;;  %7176 = vst [vmem:[#allocation27_spill] sm:$0xff] %v5965_v48  ;;  %v5967_v26 = vld [vmem:[#allocation15 + $0x78] sm:$0xff]  ;;  %v5971_v2 = vld [vmem:[#allocation15 + $0x60] sm:$0xff] }
 0x7b5   :  { %2068 = vmatpush1.msra.mxu0 %v1957_v62  ;;  %2145 = vmatpush1.msra.mxu1 %v1959_v24  ;;  %7177 = vst [vmem:[#allocation29_spill] sm:$0xff] %v5967_v26  ;;  %7178 = vst [vmem:[#allocation30_spill] sm:$0xff] %v5971_v2  ;;  %v5973_v62 = vld [vmem:[#allocation15 + $0x70] sm:$0xff]  ;;  %v5977_v24 = vld [vmem:[#allocation15 + $0x48] sm:$0xff] }
 0x7b6   :  { %2069 = vmatprep.subr.mxu0 %v1954_v44  ;;  %2146 = vmatprep.subr.mxu1 %v1956_v43  ;;  %7179 = vst [vmem:[#allocation31_spill] sm:$0xff] %v5973_v62  ;;  %7180 = vst [vmem:[#allocation32_spill] sm:$0xff] %v5977_v24  ;;  %v5979_v44 = vld [vmem:[#allocation15 + $0x58] sm:$0xff]  ;;  %v5983_v43 = vld [vmem:[#allocation15 + $0x40] sm:$0xff] }
 0x7b7   :  { %2070 = vmatpush1.msra.mxu0 %v1953_v42  ;;  %2103 = vmatprep.mubr.f32.mxu0 %v7168_v16  ;;  %7181 = vst [vmem:[#allocation33_spill] sm:$0xff] %v5979_v44  ;;  %7182 = vst [vmem:[#allocation34_spill] sm:$0xff] %v5983_v43  ;;  %v5985_v42 = vld [vmem:[#allocation15 + $0x50] sm:$0xff] }
 0x7b8   :  { %2147 = vmatpush1.msra.mxu1 %v1955_v41  ;;  %2180 = vmatprep.mubr.f32.mxu1 %v7168_v16  ;;  %7183 = vst [vmem:[#allocation35_spill] sm:$0xff] %v5985_v42  ;;  %v5991_v41 = vld [vmem:[#allocation15 + $0x28] sm:$0xff] }
 0x7b9   :  { %2104 = vmatmul.mubr.f32.vlgmr.msra.gmra.mxu0 %v1951_v47  ;;  %2181 = vmatmul.mubr.f32.vlgmr.msra.gmra.mxu1 %v1951_v47  ;;  %7184 = vst [vmem:[#allocation36_spill] sm:$0xff] %v5991_v41  ;;  %v5993_v47 = vld [vmem:[#allocation15 + $0x38] sm:$0xff] }
 0x7ba   :  { %2109 = vmatprep.mubr.f32.mxu0 %v7168_v16  ;;  %2186 = vmatprep.mubr.f32.mxu1 %v7168_v16  ;;  %7185 = vst [vmem:[#allocation37_spill] sm:$0xff] %v5993_v47 }
 0x7bb   :  { %2261 = vmatprep.subr.mxu0 %v5825_v60  ;;  %2332 = vmatprep.subr.mxu1 %v5827_v59 }
 0x7bc   :  { %2262 = vmatpush1.msra.mxu0 %v5831_v46  ;;  %2333 = vmatpush1.msra.mxu1 %v5833_v61 }
 0x7bd   :  { %2263 = vmatprep.subr.mxu0 %v5837_v4  ;;  %2334 = vmatprep.subr.mxu1 %v5839_v0 }
 0x7be   :  { %2264 = vmatpush1.msra.mxu0 %v5843_v50  ;;  %2335 = vmatpush1.msra.mxu1 %v5845_v53 }
 0x7bf   :  { %2265 = vmatprep.subr.mxu0 %v5849_v52  ;;  %2336 = vmatprep.subr.mxu1 %v5851_v5 }
 0x7c0   :  { %2266 = vmatpush1.msra.mxu0 %v5855_v6  ;;  %2337 = vmatpush1.msra.mxu1 %v5857_v7 }
 0x7c1   :  { %2267 = vmatprep.subr.mxu0 %v5861_v8  ;;  %2338 = vmatprep.subr.mxu1 %v5863_v9 }
 0x7c2   :  { %2268 = vmatpush1.msra.mxu0 %v5867_v10  ;;  %2339 = vmatpush1.msra.mxu1 %v5869_v11 }
 0x7c3   :  { %2269 = vmatprep.subr.mxu0 %v5873_v12  ;;  %2340 = vmatprep.subr.mxu1 %v5875_v13 }
 0x7c4   :  { %2270 = vmatpush1.msra.mxu0 %v5879_v14  ;;  %2341 = vmatpush1.msra.mxu1 %v5881_v15 }
 0x7c5   :  { %2271 = vmatprep.subr.mxu0 %v5885_v17  ;;  %2342 = vmatprep.subr.mxu1 %v5887_v18 }
 0x7c6   :  { %2272 = vmatpush1.msra.mxu0 %v5891_v19  ;;  %2343 = vmatpush1.msra.mxu1 %v5893_v20 }
 0x7c7   :  { %2273 = vmatprep.subr.mxu0 %v5897_v21  ;;  %2344 = vmatprep.subr.mxu1 %v5899_v22 }
 0x7c8   :  { %2274 = vmatpush1.msra.mxu0 %v5903_v23  ;;  %2345 = vmatpush1.msra.mxu1 %v5905_v25 }
 0x7c9   :  { %2275 = vmatprep.subr.mxu0 %v5909_v28  ;;  %2346 = vmatprep.subr.mxu1 %v5911_v29 }
 0x7ca   :  { %2276 = vmatpush1.msra.mxu0 %v5915_v30  ;;  %2347 = vmatpush1.msra.mxu1 %v5917_v31 }
 0x7cb   :  { %2277 = vmatprep.subr.mxu0 %v5921_v32  ;;  %2348 = vmatprep.subr.mxu1 %v5923_v33 }
 0x7cc   :  { %2278 = vmatpush1.msra.mxu0 %v5927_v34  ;;  %2349 = vmatpush1.msra.mxu1 %v5929_v35 }
 0x7cd   :  { %2279 = vmatprep.subr.mxu0 %v5933_v36  ;;  %2350 = vmatprep.subr.mxu1 %v5935_v37 }
 0x7ce   :  { %2280 = vmatpush1.msra.mxu0 %v5939_v38  ;;  %2351 = vmatpush1.msra.mxu1 %v5941_v39 }
 0x7cf   :  { %2281 = vmatprep.subr.mxu0 %v5943_v40  ;;  %2352 = vmatprep.subr.mxu1 %v5947_v1 }
 0x7d0   :  { %2282 = vmatpush1.msra.mxu0 %v5949_v55  ;;  %2353 = vmatpush1.msra.mxu1 %v5951_v56 }
 0x7d1   :  { %2283 = vmatprep.subr.mxu0 %v5955_v54  ;;  %2354 = vmatprep.subr.mxu1 %v5957_v3 }
 0x7d2   :  { %2284 = vmatpush1.msra.mxu0 %v5959_v49  ;;  %2355 = vmatpush1.msra.mxu1 %v5963_v57  ;;  %v5995_v57 = vld [vmem:[#allocation15 + $0x20] sm:$0xff] }
 0x7d3   :  { %2285 = vmatprep.subr.mxu0 %v5965_v48  ;;  %2356 = vmatprep.subr.mxu1 %v5967_v26  ;;  %7186 = vst [vmem:[#allocation38_spill] sm:$0xff] %v5995_v57  ;;  %v5999_v26 = vld [vmem:[#allocation15 + $0x30] sm:$0xff]  ;;  %v6001_v48 = vld [vmem:[#allocation15 + $0x8] sm:$0xff] }
 0x7d4   :  { %2286 = vmatpush1.msra.mxu0 %v5971_v2  ;;  %2357 = vmatpush1.msra.mxu1 %v5973_v62  ;;  %7187 = vst [vmem:[#allocation39_spill] sm:$0xff] %v5999_v26  ;;  %7188 = vst [vmem:[#allocation40_spill] sm:$0xff] %v6001_v48  ;;  %v6003_v2 = vld [vmem:[#allocation15 + $0x18] sm:$0xff] }
 0x7d5   :  { %2287 = vmatprep.subr.mxu0 %v5977_v24  ;;  %2358 = vmatprep.subr.mxu1 %v5979_v44  ;;  %7189 = vst [vmem:[#allocation41_spill] sm:$0xff] %v6003_v2  ;;  %v6007_v44 = vld [vmem:[#allocation15] sm:$0xff]  ;;  %v6009_v24 = vld [vmem:[#allocation15 + $0x10] sm:$0xff] }
 0x7d6   :  { %2288 = vmatpush1.msra.mxu0 %v5983_v43  ;;  %2359 = vmatpush1.msra.mxu1 %v5985_v42  ;;  %7190 = vst [vmem:[#allocation42_spill] sm:$0xff] %v6007_v44  ;;  %7191 = vst [vmem:[#allocation43_spill] sm:$0xff] %v6009_v24 }
 0x7d7   :  { %2289 = vmatprep.subr.mxu0 %v5991_v41  ;;  %2360 = vmatprep.subr.mxu1 %v5993_v47 }
 0x7d8   :  { %2290 = vmatpush1.msra.mxu0 %v5995_v57  ;;  %2361 = vmatpush1.msra.mxu1 %v5999_v26 }
 0x7d9   :  { %2291 = vmatprep.subr.mxu0 %v6001_v48  ;;  %2362 = vmatprep.subr.mxu1 %v6003_v2 }
 0x7da   :  { %2292 = vmatpush1.msra.mxu0 %v6007_v44  ;;  %2363 = vmatpush1.msra.mxu1 %v6009_v24 }
 0x7db   :  { %2432 = vmatprep.subr.mxu0 %v5825_v60  ;;  %2503 = vmatprep.subr.mxu1 %v5827_v59 }
 0x858   :  { %v1831_v47 = vpop.f32.mrf.mxu0  ;;  %v1902_v57 = vpop.f32.mrf.mxu1 }
 0x859   :  { %v1911_v41 = vrot.slane %v1831_v47, 2  ;;  %v1913_v60 = vrot.slane %v1902_v57, 2 }
 0x85a   :  { %v1833_v42 = vpop.f32.mrf.mxu0  ;;  %v1904_v49 = vpop.f32.mrf.mxu1 }
 0x85b   :  { %v1919_v43 = vadd.f32 %v1911_v41, %v7146_v63  ;;  %v1912_v62 = vrot.slane %v1833_v42, 2  ;;  %v1914_v44 = vrot.slane %v1904_v49, 2  ;;  %v1921_v47 = vadd.f32 %v1913_v60, %v7125_v45  ;;  %v7196_v42 = vld [vmem:[#allocation51_spill] sm:$0xff] }
 0x85c   :  { %v7197_v41 = vld [vmem:[#allocation27_spill] sm:$0xff] }
 0x85d   :  { %v4053_v26 = vmul.f32 -1.442695, %v1919_v43  ;;  %v1920_v48 = vadd.f32 %v1912_v62, %v7147_v51  ;;  %v1922_v24 = vadd.f32 %v1914_v44, %v7124_v58  ;;  %v7194_v44 = vld [vmem:[#allocation26_spill] sm:$0xff] }
 0x85e   :  { %v7195_v43 = vld [vmem:[#allocation50_spill] sm:$0xff] }
 0x85f   :  { %4303 = vpow2.f32 %v4053_v26  ;;  %v4054_v2 = vmul.f32 -1.442695, %v1920_v48  ;;  %v4055_v3 = vmul.f32 -1.442695, %v1922_v24 }
 0x861   :  { %4305 = vpow2.f32 %v4054_v2  ;;  %v1943_v2 = vrot.slane %v5818_v27, 6  ;;  %v7192_v27 = vld [vmem:[#allocation52_spill] sm:$0xff] }
 0x862   :  { %4307 = vpow2.f32 %v4055_v3  ;;  %v7193_v3 = vld [vmem:[#allocation28_spill] sm:$0xff] }
 0x86c   :  { %v4304_v59 = vpop.eup %4303 }
 0x86d   :  { %v1926_v54 = vadd.f32 1.0, %v4304_v59 }
 0x86e   :  { %v4306_v56 = vpop.eup %4305 }
 0x86f   :  { %4309 = vrcp.f32 %v1926_v54  ;;  %v1932_v63 = vadd.f32 1.0, %v4306_v56  ;;  %v4308_v51 = vpop.eup %4307  ;;  %v2258_v56 = vld [vmem:[#allocation9 + $0x2] sm:$0x3] }
 0x870   :  { %4311 = vtanh.f32 %v1921_v47  ;;  %v1939_v62 = vadd.f32 1.0, %v4308_v51  ;;  %v7198_v47 = vld [vmem:[#allocation29_spill] sm:$0xff]  ;;  %v7200_v51 = vld [vmem:[#allocation31_spill] sm:$0xff] }
 0x871   :  { %4313 = vrcp.f32 %v1932_v63  ;;  %v7199_v63 = vld [vmem:[#allocation30_spill] sm:$0xff] }
 0x872   :  { %4315 = vrcp.f32 %v1939_v62  ;;  %v7205_v62 = vld [vmem:[#allocation36_spill] sm:$0xff] }
 0x87c   :  { %v4310_v26 = vpop.eup %4309 }
 0x87d   :  { %v4312_v48 = vpop.eup %4311 }
 0x87e   :  { %v4314_v49 = vpop.eup %4313  ;;  %v1946_v58 = vmul.f32 %v4312_v48, %v4310_v26  ;;  %v7201_v26 = vld [vmem:[#allocation32_spill] sm:$0xff]  ;;  %v7202_v48 = vld [vmem:[#allocation33_spill] sm:$0xff] }
 0x87f   :  { %v1945_v57 = vmul.f32 %v4314_v49, %v1943_v2  ;;  %v4316_v45 = vpop.eup %4315  ;;  %v7203_v2 = vld [vmem:[#allocation34_spill] sm:$0xff]  ;;  %v7204_v49 = vld [vmem:[#allocation35_spill] sm:$0xff] }
 0x881   :  { %v1947_v24 = vadd.f32 %v1946_v58, %v1945_v57  ;;  %v7206_v58 = vld [vmem:[#allocation37_spill] sm:$0xff]  ;;  %v7207_v57 = vld [vmem:[#allocation38_spill] sm:$0xff] }
 0x883   :  { %4317 = vtanh.f32 %v1947_v24  ;;  %v7208_v24 = vld [vmem:[#allocation39_spill] sm:$0xff] }
 0x890   :  { %v4318_v60 = vpop.eup %4317 }
 0x891   :  { %v1949_v59 = vmul.f32 %v4318_v60, %v4316_v45  ;;  %v7209_v45 = vld [vmem:[#allocation40_spill] sm:$0xff]  ;;  %v7210_v60 = vld [vmem:[#allocation41_spill] sm:$0xff] }
 0x893   :  { %1950 = vst [vmem:[#allocation2 + $0x8] sm:$0xc0] %v1949_v59  ;;  %v7211_v59 = vld [vmem:[#allocation42_spill] sm:$0xff] }
 0x89a   :  { %v1952_v54 = vld [vmem:[#allocation2 + $0x8] sm:$0xff] }
 0x89b   :  { %2110 = vmatmul.mubr.f32.gmra.mxu0 %v1952_v54  ;;  %2187 = vmatmul.mubr.f32.gmra.mxu1 %v1952_v54  ;;  %v7212_v54 = vld [vmem:[#allocation43_spill] sm:$0xff] }
 0x89c   :  { %2325 = vmatprep.mubr.f32.mxu0 %v7168_v16  ;;  %2396 = vmatprep.mubr.f32.mxu1 %v7168_v16 }
 0x89f   :  { %2326 = vmatmul.mubr.f32.vlgmr.msra.gmra.mxu0 %v2258_v56  ;;  %2397 = vmatmul.mubr.f32.vlgmr.msra.gmra.mxu1 %v2258_v56  ;;  %v7213_v56 = vld [vmem:[#allocation48_spill] sm:$0xff] }
 0x8a0   :  { %2433 = vmatpush1.msra.mxu0 %v5831_v46  ;;  %2504 = vmatpush1.msra.mxu1 %v5833_v61 }
 0x8a1   :  { %2434 = vmatprep.subr.mxu0 %v5837_v4  ;;  %2505 = vmatprep.subr.mxu1 %v5839_v0 }
 0x8a2   :  { %2435 = vmatpush1.msra.mxu0 %v5843_v50  ;;  %2506 = vmatpush1.msra.mxu1 %v5845_v53 }
 0x8a3   :  { %2436 = vmatprep.subr.mxu0 %v5849_v52  ;;  %2507 = vmatprep.subr.mxu1 %v5851_v5 }
 0x8a4   :  { %2437 = vmatpush1.msra.mxu0 %v5855_v6  ;;  %2508 = vmatpush1.msra.mxu1 %v5857_v7 }
 0x8a5   :  { %2438 = vmatprep.subr.mxu0 %v5861_v8  ;;  %2509 = vmatprep.subr.mxu1 %v5863_v9 }
 0x8a6   :  { %2439 = vmatpush1.msra.mxu0 %v5867_v10  ;;  %2510 = vmatpush1.msra.mxu1 %v5869_v11 }
 0x8a7   :  { %2440 = vmatprep.subr.mxu0 %v5873_v12  ;;  %2511 = vmatprep.subr.mxu1 %v5875_v13 }
 0x8a8   :  { %2441 = vmatpush1.msra.mxu0 %v5879_v14  ;;  %2512 = vmatpush1.msra.mxu1 %v5881_v15 }
 0x8a9   :  { %2442 = vmatprep.subr.mxu0 %v5885_v17  ;;  %2513 = vmatprep.subr.mxu1 %v5887_v18 }
 0x8aa   :  { %2443 = vmatpush1.msra.mxu0 %v5891_v19  ;;  %2514 = vmatpush1.msra.mxu1 %v5893_v20 }
 0x8ab   :  { %2444 = vmatprep.subr.mxu0 %v5897_v21  ;;  %2515 = vmatprep.subr.mxu1 %v5899_v22 }
 0x8ac   :  { %2445 = vmatpush1.msra.mxu0 %v5903_v23  ;;  %2516 = vmatpush1.msra.mxu1 %v5905_v25 }
 0x8ad   :  { %2446 = vmatprep.subr.mxu0 %v5909_v28  ;;  %2517 = vmatprep.subr.mxu1 %v5911_v29 }
 0x8ae   :  { %2447 = vmatpush1.msra.mxu0 %v5915_v30  ;;  %2518 = vmatpush1.msra.mxu1 %v5917_v31 }
 0x8af   :  { %2448 = vmatprep.subr.mxu0 %v5921_v32  ;;  %2519 = vmatprep.subr.mxu1 %v5923_v33 }
 0x8b0   :  { %2449 = vmatpush1.msra.mxu0 %v5927_v34  ;;  %2520 = vmatpush1.msra.mxu1 %v5929_v35 }
 0x8b1   :  { %2450 = vmatprep.subr.mxu0 %v5933_v36  ;;  %2521 = vmatprep.subr.mxu1 %v5935_v37 }
 0x8b2   :  { %2451 = vmatpush1.msra.mxu0 %v5939_v38  ;;  %2522 = vmatpush1.msra.mxu1 %v5941_v39 }
 0x8b3   :  { %2452 = vmatprep.subr.mxu0 %v5943_v40  ;;  %2523 = vmatprep.subr.mxu1 %v5947_v1 }
 0x8b4   :  { %2453 = vmatpush1.msra.mxu0 %v5949_v55  ;;  %2524 = vmatpush1.msra.mxu1 %v7192_v27 }
 0x8b5   :  { %2454 = vmatprep.subr.mxu0 %v7193_v3  ;;  %2525 = vmatprep.subr.mxu1 %v7194_v44 }
 0x8b6   :  { %2455 = vmatpush1.msra.mxu0 %v7195_v43  ;;  %2526 = vmatpush1.msra.mxu1 %v7196_v42 }
 0x8b7   :  { %2456 = vmatprep.subr.mxu0 %v7197_v41  ;;  %2527 = vmatprep.subr.mxu1 %v7198_v47 }
 0x8b8   :  { %2457 = vmatpush1.msra.mxu0 %v7199_v63  ;;  %2528 = vmatpush1.msra.mxu1 %v7200_v51 }
 0x8b9   :  { %2458 = vmatprep.subr.mxu0 %v7201_v26  ;;  %2529 = vmatprep.subr.mxu1 %v7202_v48 }
 0x8ba   :  { %2459 = vmatpush1.msra.mxu0 %v7203_v2  ;;  %2530 = vmatpush1.msra.mxu1 %v7204_v49 }
 0x8bb   :  { %2460 = vmatprep.subr.mxu0 %v7205_v62  ;;  %2531 = vmatprep.subr.mxu1 %v7206_v58  ;;  %v7214_v62 = vld [vmem:[#allocation53_spill] sm:$0xff]  ;;  %v2105_v58 = vpop.f32.mrf.mxu0 }
 0x8bc   :  { %2461 = vmatpush1.msra.mxu0 %v7207_v57  ;;  %2532 = vmatpush1.msra.mxu1 %v7208_v24  ;;  %v2182_v57 = vpop.f32.mrf.mxu1 }
 0x8bd   :  { %2462 = vmatprep.subr.mxu0 %v7209_v45  ;;  %2533 = vmatprep.subr.mxu1 %v7210_v60  ;;  %v2017_v45 = vld [vmem:[%s6791_s9] sm:$0xf]  ;;  %v2107_v24 = vpop.f32.mrf.mxu0 }
 0x8be   :  { %2463 = vmatpush1.msra.mxu0 %v7211_v59  ;;  %2496 = vmatprep.mubr.f32.mxu0 %v7168_v16  ;;  %v7215_v60 = vld [vmem:[#allocation49_spill] sm:$0xff]  ;;  %v2184_v2 = vpop.f32.mrf.mxu1 }
 0x8bf   :  { %2534 = vmatpush1.msra.mxu1 %v7212_v54  ;;  %2567 = vmatprep.mubr.f32.mxu1 %v7168_v16  ;;  %v7216_v49 = vsub.s32 0, %v7215_v60  ;;  %v7219_v54 = vsub.s32 1, %v7215_v60 }
 0x8c0   :  { %2621 = vmatprep.subr.mxu0 %v7213_v56  ;;  %2692 = vmatprep.subr.mxu1 %v7214_v62 }
 0x8c1   :  { %v6097_v59 = vrot.slane %v2017_v45, %v7216_v49  ;;  %v6103_v16 = vrot.slane %v2017_v45, %v7219_v54 }
 0x8c3   :  { %7217 = vst [vmem:[#allocation44_spill] sm:$0xff] %v6097_v59  ;;  %7220 = vst [vmem:[#allocation46_spill] sm:$0xff] %v6103_v16  ;;  %v6110_v26 = vadd.f32 %v2105_v58, %v6097_v59  ;;  %v6113_v63 = vadd.f32 %v2107_v24, %v6103_v16 }
 0x95b   :  { %v6099_v48 = vpop.f32.mrf.mxu0  ;;  %v6105_v56 = vpop.f32.mrf.mxu1 }
 0x95c   :  { %7218 = vst [vmem:[#allocation45_spill] sm:$0xff] %v6099_v48  ;;  %7221 = vst [vmem:[#allocation47_spill] sm:$0xff] %v6105_v56 }
 0x95d   :  { %v6107_v62 = vpop.f32.mrf.mxu0  ;;  %v6115_v49 = vpop.f32.mrf.mxu1 }
 0x95e   :  { %7222 = vst [vmem:[#allocation52_spill] sm:$0xff] %v6107_v62  ;;  %7223 = vst [vmem:[#allocation49_spill] sm:$0xff] %v6115_v49  ;;  %v7224_v62 = vsub.s32 3, %v7215_v60  ;;  %v7226_v49 = vsub.s32 2, %v7215_v60 }
 0x95f   :  { %v2327_v51 = vpop.f32.mrf.mxu0  ;;  %v2398_v42 = vpop.f32.mrf.mxu1 }
 0x960   :  { %v2403_v47 = vadd.f32 %v2327_v51, %v6110_v26  ;;  %v6121_v43 = vrot.slane %v2017_v45, %v7224_v62  ;;  %v6128_v16 = vrot.slane %v2017_v45, %v7226_v49  ;;  %v4056_v45 = vld [vmem:[%s6785_s3 + $0x2] sm:$0x3] }
 0x961   :  { %v2329_v48 = vpop.f32.mrf.mxu0  ;;  %v2400_v58 = vpop.f32.mrf.mxu1 }
 0x962   :  { %v4057_v41 = vmul.f32 -1.442695, %v2403_v47  ;;  %v2404_v54 = vadd.f32 %v2329_v48, %v6113_v63  ;;  %7225 = vst [vmem:[#allocation54_spill] sm:$0xff] %v6121_v43  ;;  %v6124_v24 = vadd.f32 %v2184_v2, %v6121_v43  ;;  %7227 = vst [vmem:[#allocation55_spill] sm:$0xff] %v6128_v16  ;;  %v6132_v51 = vadd.f32 %v2182_v57, %v6128_v16 }
 0x964   :  { %4319 = vpow2.f32 %v4057_v41  ;;  %v4058_v56 = vmul.f32 -1.442695, %v2404_v54  ;;  %v2406_v47 = vadd.f32 %v2400_v58, %v6124_v24  ;;  %v2405_v54 = vadd.f32 %v2398_v42, %v6132_v51 }
 0x966   :  { %4321 = vpow2.f32 %v4058_v56  ;;  %v4059_v41 = vmul.f32 -1.442695, %v2406_v47 }
 0x968   :  { %4323 = vpow2.f32 %v4059_v41 }
 0x971   :  { %v4320_v48 = vpop.eup %4319 }
 0x972   :  { %v2410_v62 = vadd.f32 1.0, %v4320_v48  ;;  %v7229_v48 = vld [vmem:[#allocation51_spill] sm:$0xff] }
 0x973   :  { %v4322_v59 = vpop.eup %4321 }
 0x974   :  { %4325 = vrcp.f32 %v2410_v62  ;;  %v2416_v56 = vadd.f32 1.0, %v4322_v59  ;;  %v7231_v62 = vld [vmem:[#allocation29_spill] sm:$0xff] }
 0x975   :  { %4327 = vtanh.f32 %v2405_v54  ;;  %v4324_v2 = vpop.eup %4323  ;;  %v7230_v54 = vld [vmem:[#allocation27_spill] sm:$0xff] }
 0x976   :  { %4329 = vrcp.f32 %v2416_v56  ;;  %v2423_v58 = vadd.f32 1.0, %v4324_v2  ;;  %v7232_v56 = vld [vmem:[#allocation30_spill] sm:$0xff]  ;;  %v7233_v2 = vld [vmem:[#allocation31_spill] sm:$0xff] }
 0x978   :  { %4331 = vrcp.f32 %v2423_v58  ;;  %v7238_v58 = vld [vmem:[#allocation36_spill] sm:$0xff] }
 0x981   :  { %v4326_v60 = vpop.eup %4325 }
 0x982   :  { %v4328_v49 = vpop.eup %4327 }
 0x983   :  { %v4330_v57 = vpop.eup %4329  ;;  %v2427_v47 = vmul.f32 %v4328_v49, %v4326_v60  ;;  %v7234_v60 = vld [vmem:[#allocation32_spill] sm:$0xff]  ;;  %v7236_v49 = vld [vmem:[#allocation34_spill] sm:$0xff] }
 0x984   :  { %v2426_v16 = vmul.f32 %v4330_v57, %v4056_v45  ;;  %v7235_v45 = vld [vmem:[#allocation33_spill] sm:$0xff]  ;;  %v7237_v57 = vld [vmem:[#allocation35_spill] sm:$0xff] }
 0x985   :  { %v4332_v42 = vpop.eup %4331 }
 0x986   :  { %v6138_v43 = vadd.f32 %v2427_v47, %v2426_v16  ;;  %v7228_v16 = vld [vmem:[#allocation50_spill] sm:$0xff]  ;;  %v7239_v47 = vld [vmem:[#allocation37_spill] sm:$0xff] }
 0x988   :  { %4333 = vtanh.f32 %v6138_v43 }
 0x995   :  { %v4334_v59 = vpop.eup %4333 }
 0x996   :  { %v2430_v41 = vmul.f32 %v4334_v59, %v4332_v42  ;;  %v7240_v42 = vld [vmem:[#allocation38_spill] sm:$0xff]  ;;  %v7241_v59 = vld [vmem:[#allocation39_spill] sm:$0xff] }
 0x998   :  { %2431 = vst [vmem:[#allocation3 + $0x8] sm:$0x3] %v2430_v41  ;;  %2497 = vmatmul.mubr.f32.vlgmr.msra.gmra.mxu0 %v2430_v41  ;;  %2568 = vmatmul.mubr.f32.vlgmr.msra.gmra.mxu1 %v2430_v41  ;;  %v7242_v41 = vld [vmem:[#allocation40_spill] sm:$0xff] }
 0x999   :  { %2622 = vmatpush1.msra.mxu0 %v5831_v46  ;;  %2693 = vmatpush1.msra.mxu1 %v5833_v61 }
 0x99a   :  { %2623 = vmatprep.subr.mxu0 %v5837_v4  ;;  %2694 = vmatprep.subr.mxu1 %v5839_v0 }
 0x99b   :  { %2624 = vmatpush1.msra.mxu0 %v5843_v50  ;;  %2695 = vmatpush1.msra.mxu1 %v5845_v53 }
 0x99c   :  { %2625 = vmatprep.subr.mxu0 %v5849_v52  ;;  %2696 = vmatprep.subr.mxu1 %v5851_v5 }
 0x99d   :  { %2626 = vmatpush1.msra.mxu0 %v5855_v6  ;;  %2697 = vmatpush1.msra.mxu1 %v5857_v7 }
 0x99e   :  { %2627 = vmatprep.subr.mxu0 %v5861_v8  ;;  %2698 = vmatprep.subr.mxu1 %v5863_v9 }
 0x99f   :  { %2628 = vmatpush1.msra.mxu0 %v5867_v10  ;;  %2699 = vmatpush1.msra.mxu1 %v5869_v11 }
 0x9a0   :  { %2629 = vmatprep.subr.mxu0 %v5873_v12  ;;  %2700 = vmatprep.subr.mxu1 %v5875_v13 }
 0x9a1   :  { %2630 = vmatpush1.msra.mxu0 %v5879_v14  ;;  %2701 = vmatpush1.msra.mxu1 %v5881_v15 }
 0x9a2   :  { %2631 = vmatprep.subr.mxu0 %v5885_v17  ;;  %2702 = vmatprep.subr.mxu1 %v5887_v18 }
 0x9a3   :  { %2632 = vmatpush1.msra.mxu0 %v5891_v19  ;;  %2703 = vmatpush1.msra.mxu1 %v5893_v20 }
 0x9a4   :  { %2633 = vmatprep.subr.mxu0 %v5897_v21  ;;  %2704 = vmatprep.subr.mxu1 %v5899_v22 }
 0x9a5   :  { %2634 = vmatpush1.msra.mxu0 %v5903_v23  ;;  %2705 = vmatpush1.msra.mxu1 %v5905_v25 }
 0x9a6   :  { %2635 = vmatprep.subr.mxu0 %v5909_v28  ;;  %2706 = vmatprep.subr.mxu1 %v5911_v29 }
 0x9a7   :  { %2636 = vmatpush1.msra.mxu0 %v5915_v30  ;;  %2707 = vmatpush1.msra.mxu1 %v5917_v31 }
 0x9a8   :  { %2637 = vmatprep.subr.mxu0 %v5921_v32  ;;  %2708 = vmatprep.subr.mxu1 %v5923_v33 }
 0x9a9   :  { %2638 = vmatpush1.msra.mxu0 %v5927_v34  ;;  %2709 = vmatpush1.msra.mxu1 %v5929_v35 }
 0x9aa   :  { %2639 = vmatprep.subr.mxu0 %v5933_v36  ;;  %2710 = vmatprep.subr.mxu1 %v5935_v37 }
 0x9ab   :  { %2640 = vmatpush1.msra.mxu0 %v5939_v38  ;;  %2711 = vmatpush1.msra.mxu1 %v5941_v39 }
 0x9ac   :  { %2641 = vmatprep.subr.mxu0 %v5943_v40  ;;  %2712 = vmatprep.subr.mxu1 %v5947_v1 }
 0x9ad   :  { %2642 = vmatpush1.msra.mxu0 %v5949_v55  ;;  %2713 = vmatpush1.msra.mxu1 %v7192_v27 }
 0x9ae   :  { %2643 = vmatprep.subr.mxu0 %v7193_v3  ;;  %2714 = vmatprep.subr.mxu1 %v7194_v44 }
 0x9af   :  { %2644 = vmatpush1.msra.mxu0 %v7228_v16  ;;  %2715 = vmatpush1.msra.mxu1 %v7229_v48 }
 0x9b0   :  { %2645 = vmatprep.subr.mxu0 %v7230_v54  ;;  %2716 = vmatprep.subr.mxu1 %v7231_v62 }
 0x9b1   :  { %2646 = vmatpush1.msra.mxu0 %v7232_v56  ;;  %2717 = vmatpush1.msra.mxu1 %v7233_v2  ;;  %v7243_v56 = vld [vmem:[#allocation41_spill] sm:$0xff]  ;;  %v7244_v2 = vld [vmem:[#allocation42_spill] sm:$0xff] }
 0x9b2   :  { %2647 = vmatprep.subr.mxu0 %v7234_v60  ;;  %2718 = vmatprep.subr.mxu1 %v7235_v45  ;;  %v7245_v60 = vmov 0.0   ;;  %v7246_v45 = vld [vmem:[#allocation43_spill] sm:$0xff] }
 0x9b3   :  { %2648 = vmatpush1.msra.mxu0 %v7236_v49  ;;  %2719 = vmatpush1.msra.mxu1 %v7237_v57  ;;  %v7247_v57 = vld [vmem:[#allocation48_spill] sm:$0xff] }
 0x9b4   :  { %2649 = vmatprep.subr.mxu0 %v7238_v58  ;;  %2720 = vmatprep.subr.mxu1 %v7239_v47  ;;  %v7248_v58 = vld [vmem:[#allocation53_spill] sm:$0xff] }
 0x9b5   :  { %2650 = vmatpush1.msra.mxu0 %v7240_v42  ;;  %2721 = vmatpush1.msra.mxu1 %v7241_v59 }
 0x9b6   :  { %2651 = vmatprep.subr.mxu0 %v7242_v41  ;;  %2722 = vmatprep.subr.mxu1 %v7243_v56 }
 0x9b7   :  { %2652 = vmatpush1.msra.mxu0 %v7244_v2  ;;  %2685 = vmatprep.mubr.f32.mxu0 %v7245_v60 }
 0x9b8   :  { %2723 = vmatpush1.msra.mxu1 %v7246_v45  ;;  %2756 = vmatprep.mubr.f32.mxu1 %v7245_v60 }
 0x9b9   :  { %2810 = vmatprep.subr.mxu0 %v7247_v57  ;;  %2881 = vmatprep.subr.mxu1 %v7248_v58 }
 0xa58   :  { %v2498_v47 = vpop.f32.mrf.mxu0  ;;  %v2569_v41 = vpop.f32.mrf.mxu1 }
 0xa59   :  { %v2578_v42 = vrot.slane %v2498_v47, 6  ;;  %v2580_v57 = vrot.slane %v2569_v41, 6  ;;  %v7253_v41 = vld [vmem:[#allocation27_spill] sm:$0xff] }
 0xa5a   :  { %v2500_v49 = vpop.f32.mrf.mxu0  ;;  %v2571_v48 = vpop.f32.mrf.mxu1 }
 0xa5b   :  { %v2586_v59 = vadd.f32 %v2578_v42, %v6110_v26  ;;  %v2579_v62 = vrot.slane %v2500_v49, 6  ;;  %v2581_v45 = vrot.slane %v2571_v48, 6  ;;  %v2588_v47 = vadd.f32 %v2580_v57, %v6132_v51 }
 0xa5d   :  { %v4060_v56 = vmul.f32 -1.442695, %v2586_v59  ;;  %v2587_v2 = vadd.f32 %v2579_v62, %v6113_v63  ;;  %v2589_v60 = vadd.f32 %v2581_v45, %v6124_v24 }
 0xa5f   :  { %4335 = vpow2.f32 %v4060_v56  ;;  %v4061_v54 = vmul.f32 -1.442695, %v2587_v2  ;;  %v4062_v16 = vmul.f32 -1.442695, %v2589_v60 }
 0xa61   :  { %4337 = vpow2.f32 %v4061_v54  ;;  %v2610_v54 = vrot.slane %v6138_v43, 6  ;;  %v7251_v43 = vld [vmem:[#allocation50_spill] sm:$0xff] }
 0xa62   :  { %4339 = vpow2.f32 %v4062_v16 }
 0xa6c   :  { %v4336_v58 = vpop.eup %4335 }
 0xa6d   :  { %v2593_v44 = vadd.f32 1.0, %v4336_v58  ;;  %v7252_v58 = vld [vmem:[#allocation51_spill] sm:$0xff] }
 0xa6e   :  { %v4338_v3 = vpop.eup %4337 }
 0xa6f   :  { %4341 = vrcp.f32 %v2593_v44  ;;  %v2599_v49 = vadd.f32 1.0, %v4338_v3  ;;  %v4340_v62 = vpop.eup %4339 }
 0xa70   :  { %4343 = vtanh.f32 %v2588_v47  ;;  %v2606_v42 = vadd.f32 1.0, %v4340_v62  ;;  %v7254_v47 = vld [vmem:[#allocation29_spill] sm:$0xff]  ;;  %v7256_v62 = vld [vmem:[#allocation31_spill] sm:$0xff] }
 0xa71   :  { %4345 = vrcp.f32 %v2599_v49  ;;  %v7255_v49 = vld [vmem:[#allocation30_spill] sm:$0xff] }
 0xa72   :  { %4347 = vrcp.f32 %v2606_v42  ;;  %v7261_v42 = vld [vmem:[#allocation36_spill] sm:$0xff] }
 0xa7c   :  { %v4342_v56 = vpop.eup %4341 }
 0xa7d   :  { %v4344_v2 = vpop.eup %4343 }
 0xa7e   :  { %v4346_v48 = vpop.eup %4345  ;;  %v2613_v45 = vmul.f32 %v4344_v2, %v4342_v56  ;;  %v7257_v56 = vld [vmem:[#allocation32_spill] sm:$0xff]  ;;  %v7258_v2 = vld [vmem:[#allocation33_spill] sm:$0xff] }
 0xa7f   :  { %v2612_v59 = vmul.f32 %v4346_v48, %v2610_v54  ;;  %v4348_v57 = vpop.eup %4347  ;;  %v7259_v54 = vld [vmem:[#allocation34_spill] sm:$0xff]  ;;  %v7260_v48 = vld [vmem:[#allocation35_spill] sm:$0xff] }
 0xa81   :  { %v6212_v60 = vadd.f32 %v2613_v45, %v2612_v59  ;;  %v7262_v45 = vld [vmem:[#allocation37_spill] sm:$0xff]  ;;  %v7263_v59 = vld [vmem:[#allocation38_spill] sm:$0xff] }
 0xa83   :  { %4349 = vtanh.f32 %v6212_v60 }
 0xa90   :  { %v4350_v16 = vpop.eup %4349 }
 0xa91   :  { %v2616_v44 = vmul.f32 %v4350_v16, %v4348_v57  ;;  %v7264_v57 = vld [vmem:[#allocation39_spill] sm:$0xff]  ;;  %v7265_v16 = vld [vmem:[#allocation40_spill] sm:$0xff] }
 0xa93   :  { %2617 = vst [vmem:[#allocation3 + $0x8] sm:$0xc] %v2616_v44  ;;  %v2619_v3 = vrot.slane %v2616_v44, 2  ;;  %v7266_v44 = vld [vmem:[#allocation41_spill] sm:$0xff] }
 0xa95   :  { %2686 = vmatmul.mubr.f32.vlgmr.msra.gmra.mxu0 %v2619_v3  ;;  %2757 = vmatmul.mubr.f32.vlgmr.msra.gmra.mxu1 %v2619_v3  ;;  %v7267_v3 = vld [vmem:[#allocation42_spill] sm:$0xff] }
 0xa96   :  { %2811 = vmatpush1.msra.mxu0 %v5831_v46  ;;  %2882 = vmatpush1.msra.mxu1 %v5833_v61  ;;  %v7249_v46 = vld [vmem:[#allocation28_spill] sm:$0xff]  ;;  %v7250_v61 = vld [vmem:[#allocation26_spill] sm:$0xff] }
 0xa97   :  { %2812 = vmatprep.subr.mxu0 %v5837_v4  ;;  %2883 = vmatprep.subr.mxu1 %v5839_v0 }
 0xa98   :  { %2813 = vmatpush1.msra.mxu0 %v5843_v50  ;;  %2884 = vmatpush1.msra.mxu1 %v5845_v53 }
 0xa99   :  { %2814 = vmatprep.subr.mxu0 %v5849_v52  ;;  %2885 = vmatprep.subr.mxu1 %v5851_v5 }
 0xa9a   :  { %2815 = vmatpush1.msra.mxu0 %v5855_v6  ;;  %2886 = vmatpush1.msra.mxu1 %v5857_v7 }
 0xa9b   :  { %2816 = vmatprep.subr.mxu0 %v5861_v8  ;;  %2887 = vmatprep.subr.mxu1 %v5863_v9 }
 0xa9c   :  { %2817 = vmatpush1.msra.mxu0 %v5867_v10  ;;  %2888 = vmatpush1.msra.mxu1 %v5869_v11 }
 0xa9d   :  { %2818 = vmatprep.subr.mxu0 %v5873_v12  ;;  %2889 = vmatprep.subr.mxu1 %v5875_v13 }
 0xa9e   :  { %2819 = vmatpush1.msra.mxu0 %v5879_v14  ;;  %2890 = vmatpush1.msra.mxu1 %v5881_v15 }
 0xa9f   :  { %2820 = vmatprep.subr.mxu0 %v5885_v17  ;;  %2891 = vmatprep.subr.mxu1 %v5887_v18 }
 0xaa0   :  { %2821 = vmatpush1.msra.mxu0 %v5891_v19  ;;  %2892 = vmatpush1.msra.mxu1 %v5893_v20 }
 0xaa1   :  { %2822 = vmatprep.subr.mxu0 %v5897_v21  ;;  %2893 = vmatprep.subr.mxu1 %v5899_v22 }
 0xaa2   :  { %2823 = vmatpush1.msra.mxu0 %v5903_v23  ;;  %2894 = vmatpush1.msra.mxu1 %v5905_v25 }
 0xaa3   :  { %2824 = vmatprep.subr.mxu0 %v5909_v28  ;;  %2895 = vmatprep.subr.mxu1 %v5911_v29 }
 0xaa4   :  { %2825 = vmatpush1.msra.mxu0 %v5915_v30  ;;  %2896 = vmatpush1.msra.mxu1 %v5917_v31 }
 0xaa5   :  { %2826 = vmatprep.subr.mxu0 %v5921_v32  ;;  %2897 = vmatprep.subr.mxu1 %v5923_v33 }
 0xaa6   :  { %2827 = vmatpush1.msra.mxu0 %v5927_v34  ;;  %2898 = vmatpush1.msra.mxu1 %v5929_v35 }
 0xaa7   :  { %2828 = vmatprep.subr.mxu0 %v5933_v36  ;;  %2899 = vmatprep.subr.mxu1 %v5935_v37 }
 0xaa8   :  { %2829 = vmatpush1.msra.mxu0 %v5939_v38  ;;  %2900 = vmatpush1.msra.mxu1 %v5941_v39 }
 0xaa9   :  { %2830 = vmatprep.subr.mxu0 %v5943_v40  ;;  %2901 = vmatprep.subr.mxu1 %v5947_v1 }
 0xaaa   :  { %2831 = vmatpush1.msra.mxu0 %v5949_v55  ;;  %2902 = vmatpush1.msra.mxu1 %v7192_v27 }
 0xaab   :  { %2832 = vmatprep.subr.mxu0 %v7249_v46  ;;  %2903 = vmatprep.subr.mxu1 %v7250_v61 }
 0xaac   :  { %2833 = vmatpush1.msra.mxu0 %v7251_v43  ;;  %2904 = vmatpush1.msra.mxu1 %v7252_v58 }
 0xaad   :  { %2834 = vmatprep.subr.mxu0 %v7253_v41  ;;  %2905 = vmatprep.subr.mxu1 %v7254_v47 }
 0xaae   :  { %2835 = vmatpush1.msra.mxu0 %v7255_v49  ;;  %2906 = vmatpush1.msra.mxu1 %v7256_v62 }
 0xaaf   :  { %2836 = vmatprep.subr.mxu0 %v7257_v56  ;;  %2907 = vmatprep.subr.mxu1 %v7258_v2  ;;  %v7268_v56 = vmov 0.0   ;;  %v7269_v2 = vld [vmem:[#allocation43_spill] sm:$0xff] }
 0xab0   :  { %2837 = vmatpush1.msra.mxu0 %v7259_v54  ;;  %2908 = vmatpush1.msra.mxu1 %v7260_v48  ;;  %v7270_v48 = vld [vmem:[#allocation48_spill] sm:$0xff] }
 0xab1   :  { %2838 = vmatprep.subr.mxu0 %v7261_v42  ;;  %2909 = vmatprep.subr.mxu1 %v7262_v45  ;;  %v7271_v42 = vld [vmem:[#allocation53_spill] sm:$0xff] }
 0xab2   :  { %2839 = vmatpush1.msra.mxu0 %v7263_v59  ;;  %2910 = vmatpush1.msra.mxu1 %v7264_v57 }
 0xab3   :  { %2840 = vmatprep.subr.mxu0 %v7265_v16  ;;  %2911 = vmatprep.subr.mxu1 %v7266_v44 }
 0xab4   :  { %2841 = vmatpush1.msra.mxu0 %v7267_v3  ;;  %2874 = vmatprep.mubr.f32.mxu0 %v7268_v56 }
 0xab5   :  { %2912 = vmatpush1.msra.mxu1 %v7269_v2  ;;  %2945 = vmatprep.mubr.f32.mxu1 %v7268_v56 }
 0xab6   :  { %2999 = vmatprep.subr.mxu0 %v7270_v48  ;;  %3070 = vmatprep.subr.mxu1 %v7271_v42 }
 0xb55   :  { %v2687_v45 = vpop.f32.mrf.mxu0  ;;  %v2758_v16 = vpop.f32.mrf.mxu1 }
 0xb56   :  { %v2767_v59 = vrot.slane %v2687_v45, 4  ;;  %v2769_v48 = vrot.slane %v2758_v16, 4 }
 0xb57   :  { %v2689_v54 = vpop.f32.mrf.mxu0  ;;  %v2760_v47 = vpop.f32.mrf.mxu1 }
 0xb58   :  { %v2775_v57 = vadd.f32 %v2767_v59, %v6110_v26  ;;  %v2768_v62 = vrot.slane %v2689_v54, 4  ;;  %v2770_v2 = vrot.slane %v2760_v47, 4  ;;  %v2777_v45 = vadd.f32 %v2769_v48, %v6132_v51  ;;  %v6289_v48 = vld [vmem:[#allocation15 + $0x1e0] sm:$0xff] }
 0xb5a   :  { %v4063_v44 = vmul.f32 -1.442695, %v2775_v57  ;;  %v2776_v3 = vadd.f32 %v2768_v62, %v6113_v63  ;;  %v2778_v56 = vadd.f32 %v2770_v2, %v6124_v24 }
 0xb5c   :  { %4351 = vpow2.f32 %v4063_v44  ;;  %v4064_v49 = vmul.f32 -1.442695, %v2776_v3  ;;  %v4065_v41 = vmul.f32 -1.442695, %v2778_v56 }
 0xb5e   :  { %4353 = vpow2.f32 %v4064_v49  ;;  %v2799_v49 = vrot.slane %v6212_v60, 6  ;;  %v6292_v60 = vld [vmem:[#allocation15 + $0x1f0] sm:$0xff] }
 0xb5f   :  { %4355 = vpow2.f32 %v4065_v41 }
 0xb69   :  { %v4352_v42 = vpop.eup %4351 }
 0xb6a   :  { %v2782_v58 = vadd.f32 1.0, %v4352_v42 }
 0xb6b   :  { %v4354_v43 = vpop.eup %4353 }
 0xb6c   :  { %4357 = vrcp.f32 %v2782_v58  ;;  %v2788_v54 = vadd.f32 1.0, %v4354_v43  ;;  %v4356_v62 = vpop.eup %4355 }
 0xb6d   :  { %4359 = vtanh.f32 %v2777_v45  ;;  %v2795_v44 = vadd.f32 1.0, %v4356_v62 }
 0xb6e   :  { %4361 = vrcp.f32 %v2788_v54 }
 0xb6f   :  { %4363 = vrcp.f32 %v2795_v44  ;;  %v6376_v44 = vld [vmem:[#allocation15 + $0x1d8] sm:$0xff] }
 0xb79   :  { %v4358_v59 = vpop.eup %4357 }
 0xb7a   :  { %v4360_v57 = vpop.eup %4359 }
 0xb7b   :  { %v4362_v47 = vpop.eup %4361  ;;  %v2802_v2 = vmul.f32 %v4360_v57, %v4358_v59 }
 0xb7c   :  { %v2801_v16 = vmul.f32 %v4362_v47, %v2799_v49  ;;  %v4364_v3 = vpop.eup %4363  ;;  %v6373_v47 = vld [vmem:[#allocation15 + $0x1c8] sm:$0xff] }
 0xb7e   :  { %v6286_v56 = vadd.f32 %v2802_v2, %v2801_v16  ;;  %v6379_v2 = vld [vmem:[#allocation15 + $0x1c0] sm:$0xff]  ;;  %v6382_v16 = vld [vmem:[#allocation15 + $0x1d0] sm:$0xff] }
 0xb80   :  { %4365 = vtanh.f32 %v6286_v56 }
 0xb8d   :  { %v4366_v41 = vpop.eup %4365 }
 0xb8e   :  { %v2805_v58 = vmul.f32 %v4366_v41, %v4364_v3  ;;  %v6388_v3 = vld [vmem:[#allocation15 + $0x1b8] sm:$0xff]  ;;  %v6391_v41 = vld [vmem:[#allocation15 + $0x1a0] sm:$0xff] }
 0xb90   :  { %2806 = vst [vmem:[#allocation3 + $0x8] sm:$0x30] %v2805_v58  ;;  %v2808_v43 = vrot.slane %v2805_v58, 4  ;;  %v6394_v58 = vld [vmem:[#allocation15 + $0x1b0] sm:$0xff] }
 0xb92   :  { %2875 = vmatmul.mubr.f32.vlgmr.msra.gmra.mxu0 %v2808_v43  ;;  %2946 = vmatmul.mubr.f32.vlgmr.msra.gmra.mxu1 %v2808_v43  ;;  %v6397_v43 = vld [vmem:[#allocation15 + $0x188] sm:$0xff] }
 0xb93   :  { %3000 = vmatpush1.msra.mxu0 %v6289_v48  ;;  %3071 = vmatpush1.msra.mxu1 %v6292_v60 }
 0xb94   :  { %3001 = vmatprep.subr.mxu0 %v5837_v4  ;;  %3072 = vmatprep.subr.mxu1 %v5839_v0  ;;  %v7272_v4 = vld [vmem:[#allocation50_spill] sm:$0xff]  ;;  %v7273_v0 = vld [vmem:[#allocation51_spill] sm:$0xff] }
 0xb95   :  { %3002 = vmatpush1.msra.mxu0 %v5843_v50  ;;  %3073 = vmatpush1.msra.mxu1 %v5845_v53  ;;  %v7274_v50 = vld [vmem:[#allocation27_spill] sm:$0xff]  ;;  %v7275_v53 = vld [vmem:[#allocation29_spill] sm:$0xff] }
 0xb96   :  { %3003 = vmatprep.subr.mxu0 %v5849_v52  ;;  %3074 = vmatprep.subr.mxu1 %v5851_v5  ;;  %v7276_v52 = vld [vmem:[#allocation30_spill] sm:$0xff]  ;;  %v7277_v5 = vld [vmem:[#allocation31_spill] sm:$0xff] }
 0xb97   :  { %3004 = vmatpush1.msra.mxu0 %v5855_v6  ;;  %3075 = vmatpush1.msra.mxu1 %v5857_v7  ;;  %v7278_v6 = vld [vmem:[#allocation32_spill] sm:$0xff]  ;;  %v7279_v7 = vld [vmem:[#allocation33_spill] sm:$0xff] }
 0xb98   :  { %3005 = vmatprep.subr.mxu0 %v5861_v8  ;;  %3076 = vmatprep.subr.mxu1 %v5863_v9  ;;  %v7280_v8 = vld [vmem:[#allocation34_spill] sm:$0xff]  ;;  %v7281_v9 = vld [vmem:[#allocation35_spill] sm:$0xff] }
 0xb99   :  { %3006 = vmatpush1.msra.mxu0 %v5867_v10  ;;  %3077 = vmatpush1.msra.mxu1 %v5869_v11  ;;  %v7282_v10 = vld [vmem:[#allocation36_spill] sm:$0xff]  ;;  %v7283_v11 = vld [vmem:[#allocation37_spill] sm:$0xff] }
 0xb9a   :  { %3007 = vmatprep.subr.mxu0 %v5873_v12  ;;  %3078 = vmatprep.subr.mxu1 %v5875_v13  ;;  %v7284_v12 = vld [vmem:[#allocation38_spill] sm:$0xff]  ;;  %v7285_v13 = vld [vmem:[#allocation39_spill] sm:$0xff] }
 0xb9b   :  { %3008 = vmatpush1.msra.mxu0 %v5879_v14  ;;  %3079 = vmatpush1.msra.mxu1 %v5881_v15  ;;  %v7286_v14 = vld [vmem:[#allocation40_spill] sm:$0xff]  ;;  %v7287_v15 = vld [vmem:[#allocation41_spill] sm:$0xff] }
 0xb9c   :  { %3009 = vmatprep.subr.mxu0 %v5885_v17  ;;  %3080 = vmatprep.subr.mxu1 %v5887_v18  ;;  %v7288_v17 = vld [vmem:[#allocation42_spill] sm:$0xff]  ;;  %v7289_v18 = vmov 0.0  }
 0xb9d   :  { %3010 = vmatpush1.msra.mxu0 %v5891_v19  ;;  %3081 = vmatpush1.msra.mxu1 %v5893_v20  ;;  %v7290_v19 = vld [vmem:[#allocation43_spill] sm:$0xff]  ;;  %v6357_v20 = vld [vmem:[#allocation15 + $0x1e8] sm:$0xff] }
 0xb9e   :  { %3011 = vmatprep.subr.mxu0 %v5897_v21  ;;  %3082 = vmatprep.subr.mxu1 %v5899_v22  ;;  %7291 = vst [vmem:[#allocation28_spill] sm:$0xff] %v6357_v20  ;;  %v6360_v21 = vld [vmem:[#allocation15 + $0x1f8] sm:$0xff] }
 0xb9f   :  { %3012 = vmatpush1.msra.mxu0 %v5903_v23  ;;  %3083 = vmatpush1.msra.mxu1 %v5905_v25  ;;  %7292 = vst [vmem:[#allocation26_spill] sm:$0xff] %v6360_v21 }
 0xba0   :  { %3013 = vmatprep.subr.mxu0 %v5909_v28  ;;  %3084 = vmatprep.subr.mxu1 %v5911_v29 }
 0xba1   :  { %3014 = vmatpush1.msra.mxu0 %v5915_v30  ;;  %3085 = vmatpush1.msra.mxu1 %v5917_v31 }
 0xba2   :  { %3015 = vmatprep.subr.mxu0 %v5921_v32  ;;  %3086 = vmatprep.subr.mxu1 %v5923_v33 }
 0xba3   :  { %3016 = vmatpush1.msra.mxu0 %v5927_v34  ;;  %3087 = vmatpush1.msra.mxu1 %v5929_v35 }
 0xba4   :  { %3017 = vmatprep.subr.mxu0 %v5933_v36  ;;  %3088 = vmatprep.subr.mxu1 %v5935_v37 }
 0xba5   :  { %3018 = vmatpush1.msra.mxu0 %v5939_v38  ;;  %3089 = vmatpush1.msra.mxu1 %v5941_v39 }
 0xba6   :  { %3019 = vmatprep.subr.mxu0 %v5943_v40  ;;  %3090 = vmatprep.subr.mxu1 %v5947_v1 }
 0xba7   :  { %3020 = vmatpush1.msra.mxu0 %v5949_v55  ;;  %3091 = vmatpush1.msra.mxu1 %v7192_v27 }
 0xba8   :  { %3021 = vmatprep.subr.mxu0 %v7249_v46  ;;  %3092 = vmatprep.subr.mxu1 %v7250_v61  ;;  %v2988_v61 = vrot.slane %v6286_v56, 6  ;;  %v6385_v56 = vld [vmem:[#allocation15 + $0x1a8] sm:$0xff] }
 0xba9   :  { %3022 = vmatpush1.msra.mxu0 %v7272_v4  ;;  %3093 = vmatpush1.msra.mxu1 %v7273_v0  ;;  %v6400_v4 = vld [vmem:[#allocation15 + $0x198] sm:$0xff]  ;;  %v6403_v0 = vld [vmem:[#allocation15 + $0x180] sm:$0xff] }
 0xbaa   :  { %3023 = vmatprep.subr.mxu0 %v7274_v50  ;;  %3094 = vmatprep.subr.mxu1 %v7275_v53  ;;  %v6406_v50 = vld [vmem:[#allocation15 + $0x190] sm:$0xff]  ;;  %v6409_v53 = vld [vmem:[#allocation15 + $0x168] sm:$0xff] }
 0xbab   :  { %3024 = vmatpush1.msra.mxu0 %v7276_v52  ;;  %3095 = vmatpush1.msra.mxu1 %v7277_v5  ;;  %v6412_v52 = vld [vmem:[#allocation15 + $0x178] sm:$0xff]  ;;  %v6415_v5 = vld [vmem:[#allocation15 + $0x160] sm:$0xff] }
 0xbac   :  { %3025 = vmatprep.subr.mxu0 %v7278_v6  ;;  %3096 = vmatprep.subr.mxu1 %v7279_v7  ;;  %v6418_v6 = vld [vmem:[#allocation15 + $0x170] sm:$0xff]  ;;  %v6421_v7 = vld [vmem:[#allocation15 + $0x148] sm:$0xff] }
 0xbad   :  { %3026 = vmatpush1.msra.mxu0 %v7280_v8  ;;  %3097 = vmatpush1.msra.mxu1 %v7281_v9  ;;  %v6424_v8 = vld [vmem:[#allocation15 + $0x158] sm:$0xff]  ;;  %v6427_v9 = vld [vmem:[#allocation15 + $0x140] sm:$0xff] }
 0xbae   :  { %3027 = vmatprep.subr.mxu0 %v7282_v10  ;;  %3098 = vmatprep.subr.mxu1 %v7283_v11  ;;  %v6430_v10 = vld [vmem:[#allocation15 + $0x150] sm:$0xff]  ;;  %v6433_v11 = vld [vmem:[#allocation15 + $0x128] sm:$0xff] }
 0xbaf   :  { %3028 = vmatpush1.msra.mxu0 %v7284_v12  ;;  %3099 = vmatpush1.msra.mxu1 %v7285_v13  ;;  %v6436_v12 = vld [vmem:[#allocation15 + $0x138] sm:$0xff]  ;;  %v6439_v13 = vld [vmem:[#allocation15 + $0x120] sm:$0xff] }
 0xbb0   :  { %3029 = vmatprep.subr.mxu0 %v7286_v14  ;;  %3100 = vmatprep.subr.mxu1 %v7287_v15  ;;  %v6442_v14 = vld [vmem:[#allocation15 + $0x130] sm:$0xff]  ;;  %v6445_v15 = vld [vmem:[#allocation15 + $0x108] sm:$0xff] }
 0xbb1   :  { %3030 = vmatpush1.msra.mxu0 %v7288_v17  ;;  %3063 = vmatprep.mubr.f32.mxu0 %v7289_v18  ;;  %v6448_v17 = vld [vmem:[#allocation15 + $0x118] sm:$0xff] }
 0xbb2   :  { %3101 = vmatpush1.msra.mxu1 %v7290_v19  ;;  %3134 = vmatprep.mubr.f32.mxu1 %v7289_v18  ;;  %v6451_v19 = vld [vmem:[#allocation15 + $0x100] sm:$0xff] }
 0xbb3   :  { %3173 = vmatprep.subr.mxu0 %v6357_v20  ;;  %3244 = vmatprep.subr.mxu1 %v6360_v21 }
 0xc52   :  { %v2876_v22 = vpop.f32.mrf.mxu0  ;;  %v2947_v29 = vpop.f32.mrf.mxu1 }
 0xc53   :  { %v2956_v23 = vrot.slane %v2876_v22, 2  ;;  %v2958_v37 = vrot.slane %v2947_v29, 2  ;;  %v6454_v22 = vld [vmem:[#allocation15 + $0x110] sm:$0xff] }
 0xc54   :  { %v2878_v25 = vpop.f32.mrf.mxu0  ;;  %v2949_v34 = vpop.f32.mrf.mxu1  ;;  %v6466_v29 = vld [vmem:[#allocation15 + $0xf0] sm:$0xff] }
 0xc55   :  { %v2964_v28 = vadd.f32 %v2956_v23, %v6110_v26  ;;  %v2957_v30 = vrot.slane %v2878_v25, 2  ;;  %v2959_v35 = vrot.slane %v2949_v34, 2  ;;  %v2966_v40 = vadd.f32 %v2958_v37, %v6132_v51  ;;  %v6457_v23 = vld [vmem:[#allocation15 + $0xe8] sm:$0xff]  ;;  %v6460_v25 = vld [vmem:[#allocation15 + $0xf8] sm:$0xff]  ;;  %v6490_v37 = vld [vmem:[#allocation15 + $0xb0] sm:$0xff] }
 0xc56   :  { %v6481_v34 = vld [vmem:[#allocation15 + $0xa8] sm:$0xff] }
 0xc57   :  { %v4066_v31 = vmul.f32 -1.442695, %v2964_v28  ;;  %v2965_v32 = vadd.f32 %v2957_v30, %v6113_v63  ;;  %v2967_v36 = vadd.f32 %v2959_v35, %v6124_v24  ;;  %v6463_v28 = vld [vmem:[#allocation15 + $0xe0] sm:$0xff]  ;;  %v6469_v30 = vld [vmem:[#allocation15 + $0xc8] sm:$0xff]  ;;  %v6484_v35 = vld [vmem:[#allocation15 + $0xb8] sm:$0xff] }
 0xc59   :  { %4367 = vpow2.f32 %v4066_v31  ;;  %v4067_v33 = vmul.f32 -1.442695, %v2965_v32  ;;  %v4068_v38 = vmul.f32 -1.442695, %v2967_v36  ;;  %v6472_v31 = vld [vmem:[#allocation15 + $0xd8] sm:$0xff]  ;;  %v6475_v32 = vld [vmem:[#allocation15 + $0xc0] sm:$0xff] }
 0xc5a   :  { %v6487_v36 = vld [vmem:[#allocation15 + $0xa0] sm:$0xff] }
 0xc5b   :  { %4369 = vpow2.f32 %v4067_v33  ;;  %v6478_v33 = vld [vmem:[#allocation15 + $0xd0] sm:$0xff] }
 0xc5c   :  { %4371 = vpow2.f32 %v4068_v38  ;;  %v6493_v38 = vld [vmem:[#allocation15 + $0x88] sm:$0xff] }
 0xc5d   :  { %7293 = vst [vmem:[#allocation48_spill] sm:$0xff] %v6493_v38 }
 0xc66   :  { %v4368_v39 = vpop.eup %4367 }
 0xc67   :  { %v2971_v1 = vadd.f32 1.0, %v4368_v39  ;;  %v6496_v39 = vld [vmem:[#allocation15 + $0x98] sm:$0xff] }
 0xc68   :  { %v4370_v55 = vpop.eup %4369  ;;  %7294 = vst [vmem:[#allocation53_spill] sm:$0xff] %v6496_v39 }
 0xc69   :  { %4373 = vrcp.f32 %v2971_v1  ;;  %v2977_v27 = vadd.f32 1.0, %v4370_v55  ;;  %v4372_v63 = vpop.eup %4371  ;;  %v6502_v1 = vld [vmem:[#allocation15 + $0x90] sm:$0xff]  ;;  %v6505_v55 = vld [vmem:[#allocation15 + $0x68] sm:$0xff] }
 0xc6a   :  { %4375 = vtanh.f32 %v2966_v40  ;;  %v2984_v45 = vadd.f32 1.0, %v4372_v63  ;;  %v6499_v40 = vld [vmem:[#allocation15 + $0x80] sm:$0xff]  ;;  %7296 = vst [vmem:[#allocation51_spill] sm:$0xff] %v6502_v1  ;;  %7297 = vst [vmem:[#allocation27_spill] sm:$0xff] %v6505_v55 }
 0xc6b   :  { %4377 = vrcp.f32 %v2977_v27  ;;  %7295 = vst [vmem:[#allocation50_spill] sm:$0xff] %v6499_v40  ;;  %v6508_v27 = vld [vmem:[#allocation15 + $0x78] sm:$0xff]  ;;  %v6511_v63 = vld [vmem:[#allocation15 + $0x60] sm:$0xff] }
 0xc6c   :  { %4379 = vrcp.f32 %v2984_v45  ;;  %7298 = vst [vmem:[#allocation29_spill] sm:$0xff] %v6508_v27  ;;  %7299 = vst [vmem:[#allocation30_spill] sm:$0xff] %v6511_v63  ;;  %v6526_v45 = vld [vmem:[#allocation15 + $0x50] sm:$0xff] }
 0xc6d   :  { %7304 = vst [vmem:[#allocation35_spill] sm:$0xff] %v6526_v45 }
 0xc76   :  { %v4374_v26 = vpop.eup %4373 }
 0xc77   :  { %v4376_v46 = vpop.eup %4375 }
 0xc78   :  { %v4378_v42 = vpop.eup %4377  ;;  %v2991_v24 = vmul.f32 %v4376_v46, %v4374_v26  ;;  %v6514_v26 = vld [vmem:[#allocation15 + $0x70] sm:$0xff]  ;;  %v6517_v46 = vld [vmem:[#allocation15 + $0x48] sm:$0xff] }
 0xc79   :  { %v2990_v54 = vmul.f32 %v4378_v42, %v2988_v61  ;;  %v4380_v51 = vpop.eup %4379  ;;  %7300 = vst [vmem:[#allocation31_spill] sm:$0xff] %v6514_v26  ;;  %7301 = vst [vmem:[#allocation32_spill] sm:$0xff] %v6517_v46  ;;  %v6520_v61 = vld [vmem:[#allocation15 + $0x58] sm:$0xff]  ;;  %v6523_v42 = vld [vmem:[#allocation15 + $0x40] sm:$0xff] }
 0xc7a   :  { %7302 = vst [vmem:[#allocation33_spill] sm:$0xff] %v6520_v61  ;;  %7303 = vst [vmem:[#allocation34_spill] sm:$0xff] %v6523_v42 }
 0xc7b   :  { %v6368_v62 = vadd.f32 %v2991_v24, %v2990_v54  ;;  %v6529_v24 = vld [vmem:[#allocation15 + $0x28] sm:$0xff]  ;;  %v6532_v54 = vld [vmem:[#allocation15 + $0x38] sm:$0xff] }
 0xc7c   :  { %7305 = vst [vmem:[#allocation36_spill] sm:$0xff] %v6529_v24  ;;  %7306 = vst [vmem:[#allocation37_spill] sm:$0xff] %v6532_v54 }
 0xc7d   :  { %4381 = vtanh.f32 %v6368_v62 }
 0xc8a   :  { %v4382_v59 = vpop.eup %4381 }
 0xc8b   :  { %v2994_v57 = vmul.f32 %v4382_v59, %v4380_v51  ;;  %v6535_v51 = vld [vmem:[#allocation15 + $0x20] sm:$0xff]  ;;  %v6538_v59 = vld [vmem:[#allocation15 + $0x30] sm:$0xff] }
 0xc8c   :  { %7307 = vst [vmem:[#allocation38_spill] sm:$0xff] %v6535_v51  ;;  %7308 = vst [vmem:[#allocation39_spill] sm:$0xff] %v6538_v59 }
 0xc8d   :  { %2995 = vst [vmem:[#allocation3 + $0x8] sm:$0xc0] %v2994_v57  ;;  %v2997_v49 = vrot.slane %v2994_v57, 6  ;;  %v6541_v57 = vld [vmem:[#allocation15 + $0x8] sm:$0xff] }
 0xc8e   :  { %7309 = vst [vmem:[#allocation40_spill] sm:$0xff] %v6541_v57 }
 0xc8f   :  { %3064 = vmatmul.mubr.f32.vlgmr.msra.gmra.mxu0 %v2997_v49  ;;  %3135 = vmatmul.mubr.f32.vlgmr.msra.gmra.mxu1 %v2997_v49  ;;  %v6544_v49 = vld [vmem:[#allocation15 + $0x18] sm:$0xff] }
 0xc90   :  { %3174 = vmatpush1.msra.mxu0 %v6289_v48  ;;  %3245 = vmatpush1.msra.mxu1 %v6292_v60  ;;  %7310 = vst [vmem:[#allocation41_spill] sm:$0xff] %v6544_v49 }
 0xc91   :  { %3175 = vmatprep.subr.mxu0 %v6373_v47  ;;  %3246 = vmatprep.subr.mxu1 %v6376_v44 }
 0xc92   :  { %3176 = vmatpush1.msra.mxu0 %v6379_v2  ;;  %3247 = vmatpush1.msra.mxu1 %v6382_v16 }
 0xc93   :  { %3177 = vmatprep.subr.mxu0 %v6385_v56  ;;  %3248 = vmatprep.subr.mxu1 %v6388_v3 }
 0xc94   :  { %3178 = vmatpush1.msra.mxu0 %v6391_v41  ;;  %3249 = vmatpush1.msra.mxu1 %v6394_v58 }
 0xc95   :  { %3179 = vmatprep.subr.mxu0 %v6397_v43  ;;  %3250 = vmatprep.subr.mxu1 %v6400_v4 }
 0xc96   :  { %3180 = vmatpush1.msra.mxu0 %v6403_v0  ;;  %3251 = vmatpush1.msra.mxu1 %v6406_v50 }
 0xc97   :  { %3181 = vmatprep.subr.mxu0 %v6409_v53  ;;  %3252 = vmatprep.subr.mxu1 %v6412_v52 }
 0xc98   :  { %3182 = vmatpush1.msra.mxu0 %v6415_v5  ;;  %3253 = vmatpush1.msra.mxu1 %v6418_v6 }
 0xc99   :  { %3183 = vmatprep.subr.mxu0 %v6421_v7  ;;  %3254 = vmatprep.subr.mxu1 %v6424_v8 }
 0xc9a   :  { %3184 = vmatpush1.msra.mxu0 %v6427_v9  ;;  %3255 = vmatpush1.msra.mxu1 %v6430_v10 }
 0xc9b   :  { %3185 = vmatprep.subr.mxu0 %v6433_v11  ;;  %3256 = vmatprep.subr.mxu1 %v6436_v12 }
 0xc9c   :  { %3186 = vmatpush1.msra.mxu0 %v6439_v13  ;;  %3257 = vmatpush1.msra.mxu1 %v6442_v14 }
 0xc9d   :  { %3187 = vmatprep.subr.mxu0 %v6445_v15  ;;  %3258 = vmatprep.subr.mxu1 %v6448_v17 }
 0xc9e   :  { %3188 = vmatpush1.msra.mxu0 %v6451_v19  ;;  %3259 = vmatpush1.msra.mxu1 %v6454_v22 }
 0xc9f   :  { %3189 = vmatprep.subr.mxu0 %v6457_v23  ;;  %3260 = vmatprep.subr.mxu1 %v6460_v25 }
 0xca0   :  { %3190 = vmatpush1.msra.mxu0 %v6463_v28  ;;  %3261 = vmatpush1.msra.mxu1 %v6466_v29 }
 0xca1   :  { %3191 = vmatprep.subr.mxu0 %v6469_v30  ;;  %3262 = vmatprep.subr.mxu1 %v6472_v31 }
 0xca2   :  { %3192 = vmatpush1.msra.mxu0 %v6475_v32  ;;  %3263 = vmatpush1.msra.mxu1 %v6478_v33 }
 0xca3   :  { %3193 = vmatprep.subr.mxu0 %v6481_v34  ;;  %3264 = vmatprep.subr.mxu1 %v6484_v35 }
 0xca4   :  { %3194 = vmatpush1.msra.mxu0 %v6487_v36  ;;  %3265 = vmatpush1.msra.mxu1 %v6490_v37 }
 0xca5   :  { %3195 = vmatprep.subr.mxu0 %v6493_v38  ;;  %3266 = vmatprep.subr.mxu1 %v6496_v39 }
 0xca6   :  { %3196 = vmatpush1.msra.mxu0 %v6499_v40  ;;  %3267 = vmatpush1.msra.mxu1 %v6502_v1 }
 0xca7   :  { %3197 = vmatprep.subr.mxu0 %v6505_v55  ;;  %3268 = vmatprep.subr.mxu1 %v6508_v27  ;;  %v7320_v27 = vld [vmem:[#allocation49_spill] sm:$0xff]  ;;  %v7322_v55 = vld [vmem:[#allocation55_spill] sm:$0xff] }
 0xca8   :  { %3198 = vmatpush1.msra.mxu0 %v6511_v63  ;;  %3269 = vmatpush1.msra.mxu1 %v6514_v26  ;;  %v7319_v63 = vld [vmem:[#allocation54_spill] sm:$0xff] }
 0xca9   :  { %3199 = vmatprep.subr.mxu0 %v6517_v46  ;;  %3270 = vmatprep.subr.mxu1 %v6520_v61 }
 0xcaa   :  { %3200 = vmatpush1.msra.mxu0 %v6523_v42  ;;  %3271 = vmatpush1.msra.mxu1 %v6526_v45  ;;  %v7316_v45 = vld [vmem:[#allocation46_spill] sm:$0xff]  ;;  %v7317_v42 = vld [vmem:[#allocation52_spill] sm:$0xff] }
 0xcab   :  { %3201 = vmatprep.subr.mxu0 %v6529_v24  ;;  %3272 = vmatprep.subr.mxu1 %v6532_v54  ;;  %v6547_v24 = vld [vmem:[#allocation15] sm:$0xff]  ;;  %v6551_v54 = vld [vmem:[#allocation15 + $0x10] sm:$0xff] }
 0xcac   :  { %3202 = vmatpush1.msra.mxu0 %v6535_v51  ;;  %3273 = vmatpush1.msra.mxu1 %v6538_v59  ;;  %7311 = vst [vmem:[#allocation42_spill] sm:$0xff] %v6547_v24  ;;  %7312 = vst [vmem:[#allocation43_spill] sm:$0xff] %v6551_v54  ;;  %v7314_v59 = vld [vmem:[#allocation45_spill] sm:$0xff] }
 0xcad   :  { %3203 = vmatprep.subr.mxu0 %v6541_v57  ;;  %3274 = vmatprep.subr.mxu1 %v6544_v49  ;;  %v7313_v57 = vld [vmem:[#allocation44_spill] sm:$0xff] }
 0xcae   :  { %3204 = vmatpush1.msra.mxu0 %v6547_v24  ;;  %3237 = vmatprep.mubr.f32.mxu0 %v7289_v18  ;;  %v6559_v51 = vadd.f32 %v7314_v59, %v7313_v57  ;;  %v6563_v24 = vadd.f32 %v7317_v42, %v7316_v45  ;;  %v6569_v59 = vadd.f32 %v7320_v27, %v7319_v63  ;;  %v7323_v42 = vld [vmem:[#allocation47_spill] sm:$0xff] }
 0xcaf   :  { %3275 = vmatpush1.msra.mxu1 %v6551_v54  ;;  %3308 = vmatprep.mubr.f32.mxu1 %v7289_v18  ;;  %v6574_v45 = vadd.f32 %v7323_v42, %v7322_v55 }
 0xcb0   :  { %3362 = vmatprep.subr.mxu0 %v6357_v20  ;;  %3433 = vmatprep.subr.mxu1 %v6360_v21  ;;  %7315 = vst [vmem:[#allocation44_spill] sm:$0xff] %v6559_v51  ;;  %7318 = vst [vmem:[#allocation45_spill] sm:$0xff] %v6563_v24 }
 0xcb1   :  { %7321 = vst [vmem:[#allocation46_spill] sm:$0xff] %v6569_v59 }
 0xd4f   :  { %v3065_v49 = vpop.f32.mrf.mxu0  ;;  %v3136_v18 = vpop.f32.mrf.mxu1 }
 0xd50   :  { %v3141_v61 = vadd.f32 %v3065_v49, %v6559_v51 }
 0xd51   :  { %v3067_v46 = vpop.f32.mrf.mxu0  ;;  %v3138_v21 = vpop.f32.mrf.mxu1 }
 0xd52   :  { %v4069_v26 = vmul.f32 -1.442695, %v3141_v61  ;;  %v3142_v54 = vadd.f32 %v3067_v46, %v6563_v24  ;;  %v3144_v57 = vadd.f32 %v3138_v21, %v6569_v59  ;;  %v3143_v61 = vadd.f32 %v3136_v18, %v6574_v45 }
 0xd53   :  { %v3165_v21 = vrot.slane %v6368_v62, 6  ;;  %v7324_v62 = vld [vmem:[#allocation27_spill] sm:$0xff] }
 0xd54   :  { %4383 = vpow2.f32 %v4069_v26  ;;  %v4070_v20 = vmul.f32 -1.442695, %v3142_v54  ;;  %v4071_v49 = vmul.f32 -1.442695, %v3144_v57 }
 0xd56   :  { %4385 = vpow2.f32 %v4070_v20 }
 0xd57   :  { %4387 = vpow2.f32 %v4071_v49 }
 0xd61   :  { %v4384_v51 = vpop.eup %4383 }
 0xd62   :  { %v3148_v46 = vadd.f32 1.0, %v4384_v51 }
 0xd63   :  { %v4386_v26 = vpop.eup %4385 }
 0xd64   :  { %4389 = vrcp.f32 %v3148_v46  ;;  %v3154_v20 = vadd.f32 1.0, %v4386_v26  ;;  %v4388_v54 = vpop.eup %4387  ;;  %v7328_v46 = vld [vmem:[#allocation32_spill] sm:$0xff]  ;;  %v7329_v26 = vld [vmem:[#allocation33_spill] sm:$0xff] }
 0xd65   :  { %4391 = vtanh.f32 %v3143_v61  ;;  %v3161_v24 = vadd.f32 1.0, %v4388_v54  ;;  %v7327_v61 = vld [vmem:[#allocation31_spill] sm:$0xff] }
 0xd66   :  { %4393 = vrcp.f32 %v3154_v20  ;;  %v7330_v20 = vld [vmem:[#allocation34_spill] sm:$0xff]  ;;  %v7331_v54 = vld [vmem:[#allocation35_spill] sm:$0xff] }
 0xd67   :  { %4395 = vrcp.f32 %v3161_v24  ;;  %v7325_v24 = vld [vmem:[#allocation29_spill] sm:$0xff] }
 0xd71   :  { %v4390_v27 = vpop.eup %4389 }
 0xd72   :  { %v4392_v63 = vpop.eup %4391 }
 0xd73   :  { %v4394_v59 = vpop.eup %4393  ;;  %v3168_v55 = vmul.f32 %v4392_v63, %v4390_v27  ;;  %v7332_v27 = vld [vmem:[#allocation36_spill] sm:$0xff]  ;;  %v7333_v63 = vld [vmem:[#allocation37_spill] sm:$0xff] }
 0xd74   :  { %v3167_v42 = vmul.f32 %v4394_v59, %v3165_v21  ;;  %v4396_v18 = vpop.eup %4395  ;;  %v7326_v59 = vld [vmem:[#allocation30_spill] sm:$0xff] }
 0xd75   :  { %v7334_v21 = vld [vmem:[#allocation38_spill] sm:$0xff] }
 0xd76   :  { %v6578_v57 = vadd.f32 %v3168_v55, %v3167_v42  ;;  %v7335_v55 = vld [vmem:[#allocation39_spill] sm:$0xff]  ;;  %v7336_v42 = vld [vmem:[#allocation40_spill] sm:$0xff] }
 0xd78   :  { %4397 = vtanh.f32 %v6578_v57 }
 0xd85   :  { %v4398_v51 = vpop.eup %4397 }
 0xd86   :  { %v3171_v49 = vmul.f32 %v4398_v51, %v4396_v18  ;;  %v7337_v18 = vld [vmem:[#allocation41_spill] sm:$0xff]  ;;  %v7338_v51 = vld [vmem:[#allocation42_spill] sm:$0xff] }
 0xd88   :  { %3172 = vst [vmem:[#allocation3] sm:$0x3] %v3171_v49  ;;  %3238 = vmatmul.mubr.f32.vlgmr.msra.gmra.mxu0 %v3171_v49  ;;  %3309 = vmatmul.mubr.f32.vlgmr.msra.gmra.mxu1 %v3171_v49  ;;  %v7339_v49 = vmov 0.0  }
 0xd89   :  { %3363 = vmatpush1.msra.mxu0 %v6289_v48  ;;  %3434 = vmatpush1.msra.mxu1 %v6292_v60 }
 0xd8a   :  { %3364 = vmatprep.subr.mxu0 %v6373_v47  ;;  %3435 = vmatprep.subr.mxu1 %v6376_v44 }
 0xd8b   :  { %3365 = vmatpush1.msra.mxu0 %v6379_v2  ;;  %3436 = vmatpush1.msra.mxu1 %v6382_v16 }
 0xd8c   :  { %3366 = vmatprep.subr.mxu0 %v6385_v56  ;;  %3437 = vmatprep.subr.mxu1 %v6388_v3 }
 0xd8d   :  { %3367 = vmatpush1.msra.mxu0 %v6391_v41  ;;  %3438 = vmatpush1.msra.mxu1 %v6394_v58 }
 0xd8e   :  { %3368 = vmatprep.subr.mxu0 %v6397_v43  ;;  %3439 = vmatprep.subr.mxu1 %v6400_v4 }
 0xd8f   :  { %3369 = vmatpush1.msra.mxu0 %v6403_v0  ;;  %3440 = vmatpush1.msra.mxu1 %v6406_v50 }
 0xd90   :  { %3370 = vmatprep.subr.mxu0 %v6409_v53  ;;  %3441 = vmatprep.subr.mxu1 %v6412_v52 }
 0xd91   :  { %3371 = vmatpush1.msra.mxu0 %v6415_v5  ;;  %3442 = vmatpush1.msra.mxu1 %v6418_v6 }
 0xd92   :  { %3372 = vmatprep.subr.mxu0 %v6421_v7  ;;  %3443 = vmatprep.subr.mxu1 %v6424_v8 }
 0xd93   :  { %3373 = vmatpush1.msra.mxu0 %v6427_v9  ;;  %3444 = vmatpush1.msra.mxu1 %v6430_v10 }
 0xd94   :  { %3374 = vmatprep.subr.mxu0 %v6433_v11  ;;  %3445 = vmatprep.subr.mxu1 %v6436_v12 }
 0xd95   :  { %3375 = vmatpush1.msra.mxu0 %v6439_v13  ;;  %3446 = vmatpush1.msra.mxu1 %v6442_v14 }
 0xd96   :  { %3376 = vmatprep.subr.mxu0 %v6445_v15  ;;  %3447 = vmatprep.subr.mxu1 %v6448_v17 }
 0xd97   :  { %3377 = vmatpush1.msra.mxu0 %v6451_v19  ;;  %3448 = vmatpush1.msra.mxu1 %v6454_v22 }
 0xd98   :  { %3378 = vmatprep.subr.mxu0 %v6457_v23  ;;  %3449 = vmatprep.subr.mxu1 %v6460_v25 }
 0xd99   :  { %3379 = vmatpush1.msra.mxu0 %v6463_v28  ;;  %3450 = vmatpush1.msra.mxu1 %v6466_v29 }
 0xd9a   :  { %3380 = vmatprep.subr.mxu0 %v6469_v30  ;;  %3451 = vmatprep.subr.mxu1 %v6472_v31 }
 0xd9b   :  { %3381 = vmatpush1.msra.mxu0 %v6475_v32  ;;  %3452 = vmatpush1.msra.mxu1 %v6478_v33 }
 0xd9c   :  { %3382 = vmatprep.subr.mxu0 %v6481_v34  ;;  %3453 = vmatprep.subr.mxu1 %v6484_v35 }
 0xd9d   :  { %3383 = vmatpush1.msra.mxu0 %v6487_v36  ;;  %3454 = vmatpush1.msra.mxu1 %v6490_v37 }
 0xd9e   :  { %3384 = vmatprep.subr.mxu0 %v6493_v38  ;;  %3455 = vmatprep.subr.mxu1 %v6496_v39 }
 0xd9f   :  { %3385 = vmatpush1.msra.mxu0 %v6499_v40  ;;  %3456 = vmatpush1.msra.mxu1 %v6502_v1 }
 0xda0   :  { %3386 = vmatprep.subr.mxu0 %v7324_v62  ;;  %3457 = vmatprep.subr.mxu1 %v7325_v24 }
 0xda1   :  { %3387 = vmatpush1.msra.mxu0 %v7326_v59  ;;  %3458 = vmatpush1.msra.mxu1 %v7327_v61  ;;  %v7344_v59 = vld [vmem:[#allocation45_spill] sm:$0xff] }
 0xda2   :  { %3388 = vmatprep.subr.mxu0 %v7328_v46  ;;  %3459 = vmatprep.subr.mxu1 %v7329_v26  ;;  %v7340_v26 = vld [vmem:[#allocation43_spill] sm:$0xff] }
 0xda3   :  { %3389 = vmatpush1.msra.mxu0 %v7330_v20  ;;  %3460 = vmatpush1.msra.mxu1 %v7331_v54  ;;  %v7341_v54 = vld [vmem:[#allocation28_spill] sm:$0xff] }
 0xda4   :  { %3390 = vmatprep.subr.mxu0 %v7332_v27  ;;  %3461 = vmatprep.subr.mxu1 %v7333_v63  ;;  %v7342_v27 = vld [vmem:[#allocation26_spill] sm:$0xff] }
 0xda5   :  { %3391 = vmatpush1.msra.mxu0 %v7334_v21  ;;  %3462 = vmatpush1.msra.mxu1 %v7335_v55  ;;  %v7343_v55 = vld [vmem:[#allocation44_spill] sm:$0xff] }
 0xda6   :  { %3392 = vmatprep.subr.mxu0 %v7336_v42  ;;  %3463 = vmatprep.subr.mxu1 %v7337_v18 }
 0xda7   :  { %3393 = vmatpush1.msra.mxu0 %v7338_v51  ;;  %3426 = vmatprep.mubr.f32.mxu0 %v7339_v49 }
 0xda8   :  { %3464 = vmatpush1.msra.mxu1 %v7340_v26  ;;  %3497 = vmatprep.mubr.f32.mxu1 %v7339_v49  ;;  %v7345_v49 = vld [vmem:[#allocation46_spill] sm:$0xff] }
 0xda9   :  { %3551 = vmatprep.subr.mxu0 %v7341_v54  ;;  %3622 = vmatprep.subr.mxu1 %v7342_v27 }
 0xe48   :  { %v3239_v63 = vpop.f32.mrf.mxu0  ;;  %v3310_v42 = vpop.f32.mrf.mxu1 }
 0xe49   :  { %v3319_v21 = vrot.slane %v3239_v63, 6  ;;  %v3321_v54 = vrot.slane %v3310_v42, 6 }
 0xe4a   :  { %v3241_v20 = vpop.f32.mrf.mxu0  ;;  %v3312_v62 = vpop.f32.mrf.mxu1 }
 0xe4b   :  { %v3327_v46 = vadd.f32 %v3319_v21, %v7343_v55  ;;  %v3320_v61 = vrot.slane %v3241_v20, 6  ;;  %v3322_v26 = vrot.slane %v3312_v62, 6  ;;  %v3329_v63 = vadd.f32 %v3321_v54, %v6574_v45 }
 0xe4d   :  { %v4072_v18 = vmul.f32 -1.442695, %v3327_v46  ;;  %v3328_v51 = vadd.f32 %v3320_v61, %v7344_v59  ;;  %v3330_v1 = vadd.f32 %v3322_v26, %v7345_v49 }
 0xe4f   :  { %4399 = vpow2.f32 %v4072_v18  ;;  %v4073_v24 = vmul.f32 -1.442695, %v3328_v51  ;;  %v4074_v40 = vmul.f32 -1.442695, %v3330_v1 }
 0xe51   :  { %4401 = vpow2.f32 %v4073_v24  ;;  %v3351_v24 = vrot.slane %v6578_v57, 6 }
 0xe52   :  { %4403 = vpow2.f32 %v4074_v40 }
 0xe5c   :  { %v4400_v27 = vpop.eup %4399 }
 0xe5d   :  { %v3334_v39 = vadd.f32 1.0, %v4400_v27 }
 0xe5e   :  { %v4402_v38 = vpop.eup %4401 }
 0xe5f   :  { %4405 = vrcp.f32 %v3334_v39  ;;  %v3340_v20 = vadd.f32 1.0, %v4402_v38  ;;  %v4404_v61 = vpop.eup %4403 }
 0xe60   :  { %4407 = vtanh.f32 %v3329_v63  ;;  %v3347_v18 = vadd.f32 1.0, %v4404_v61 }
 0xe61   :  { %4409 = vrcp.f32 %v3340_v20 }
 0xe62   :  { %4411 = vrcp.f32 %v3347_v18 }
 0xe6c   :  { %v4406_v46 = vpop.eup %4405 }
 0xe6d   :  { %v4408_v21 = vpop.eup %4407 }
 0xe6e   :  { %v4410_v62 = vpop.eup %4409  ;;  %v3354_v26 = vmul.f32 %v4408_v21, %v4406_v46 }
 0xe6f   :  { %v3353_v42 = vmul.f32 %v4410_v62, %v3351_v24  ;;  %v4412_v51 = vpop.eup %4411 }
 0xe71   :  { %v6652_v1 = vadd.f32 %v3354_v26, %v3353_v42  ;;  %v3737_v26 = vld [vmem:[#allocation3 + $0x8] sm:$0xff]  ;;  %v3790_v42 = vld [vmem:[#allocation18 + $0xf8] sm:$0xff] }
 0xe73   :  { %4413 = vtanh.f32 %v6652_v1  ;;  %v3540_v54 = vrot.slane %v6652_v1, 6  ;;  %v3774_v1 = vld [vmem:[#allocation18 + $0x78] sm:$0xff] }
 0xe80   :  { %v4414_v40 = vpop.eup %4413 }
 0xe81   :  { %v3357_v39 = vmul.f32 %v4414_v40, %v4412_v51  ;;  %v3789_v51 = vld [vmem:[#allocation18 + $0xf0] sm:$0xff] }
 0xe82   :  { %v3773_v40 = vld [vmem:[#allocation18 + $0x70] sm:$0xff] }
 0xe83   :  { %3358 = vst [vmem:[#allocation3] sm:$0xc] %v3357_v39  ;;  %v3360_v38 = vrot.slane %v3357_v39, 2  ;;  %v3788_v39 = vld [vmem:[#allocation18 + $0xe8] sm:$0xff] }
 0xe85   :  { %3427 = vmatmul.mubr.f32.vlgmr.msra.gmra.mxu0 %v3360_v38  ;;  %3498 = vmatmul.mubr.f32.vlgmr.msra.gmra.mxu1 %v3360_v38  ;;  %v3772_v38 = vld [vmem:[#allocation18 + $0x68] sm:$0xff] }
 0xe86   :  { %3552 = vmatpush1.msra.mxu0 %v6289_v48  ;;  %3623 = vmatpush1.msra.mxu1 %v6292_v60  ;;  %v7346_v48 = vld [vmem:[#allocation48_spill] sm:$0xff]  ;;  %v7347_v60 = vld [vmem:[#allocation53_spill] sm:$0xff] }
 0xe87   :  { %3553 = vmatprep.subr.mxu0 %v6373_v47  ;;  %3624 = vmatprep.subr.mxu1 %v6376_v44  ;;  %v7348_v47 = vld [vmem:[#allocation50_spill] sm:$0xff]  ;;  %v7349_v44 = vld [vmem:[#allocation51_spill] sm:$0xff] }
 0xe88   :  { %3554 = vmatpush1.msra.mxu0 %v6379_v2  ;;  %3625 = vmatpush1.msra.mxu1 %v6382_v16  ;;  %v7350_v2 = vld [vmem:[#allocation27_spill] sm:$0xff]  ;;  %v7351_v16 = vld [vmem:[#allocation29_spill] sm:$0xff] }
 0xe89   :  { %3555 = vmatprep.subr.mxu0 %v6385_v56  ;;  %3626 = vmatprep.subr.mxu1 %v6388_v3  ;;  %v7352_v56 = vld [vmem:[#allocation30_spill] sm:$0xff]  ;;  %v7353_v3 = vld [vmem:[#allocation31_spill] sm:$0xff] }
 0xe8a   :  { %3556 = vmatpush1.msra.mxu0 %v6391_v41  ;;  %3627 = vmatpush1.msra.mxu1 %v6394_v58  ;;  %v7354_v41 = vld [vmem:[#allocation32_spill] sm:$0xff]  ;;  %v7355_v58 = vld [vmem:[#allocation33_spill] sm:$0xff] }
 0xe8b   :  { %3557 = vmatprep.subr.mxu0 %v6397_v43  ;;  %3628 = vmatprep.subr.mxu1 %v6400_v4  ;;  %v7356_v43 = vld [vmem:[#allocation34_spill] sm:$0xff]  ;;  %v7357_v4 = vld [vmem:[#allocation35_spill] sm:$0xff] }
 0xe8c   :  { %3558 = vmatpush1.msra.mxu0 %v6403_v0  ;;  %3629 = vmatpush1.msra.mxu1 %v6406_v50  ;;  %v7358_v0 = vld [vmem:[#allocation36_spill] sm:$0xff]  ;;  %v7359_v50 = vld [vmem:[#allocation37_spill] sm:$0xff] }
 0xe8d   :  { %3559 = vmatprep.subr.mxu0 %v6409_v53  ;;  %3630 = vmatprep.subr.mxu1 %v6412_v52  ;;  %v7360_v53 = vld [vmem:[#allocation38_spill] sm:$0xff]  ;;  %v7361_v52 = vld [vmem:[#allocation39_spill] sm:$0xff] }
 0xe8e   :  { %3560 = vmatpush1.msra.mxu0 %v6415_v5  ;;  %3631 = vmatpush1.msra.mxu1 %v6418_v6  ;;  %v7362_v5 = vld [vmem:[#allocation40_spill] sm:$0xff]  ;;  %v7363_v6 = vld [vmem:[#allocation41_spill] sm:$0xff] }
 0xe8f   :  { %3561 = vmatprep.subr.mxu0 %v6421_v7  ;;  %3632 = vmatprep.subr.mxu1 %v6424_v8  ;;  %v7364_v7 = vld [vmem:[#allocation42_spill] sm:$0xff]  ;;  %v7365_v8 = vmov 0.0  }
 0xe90   :  { %3562 = vmatpush1.msra.mxu0 %v6427_v9  ;;  %3633 = vmatpush1.msra.mxu1 %v6430_v10  ;;  %v7366_v9 = vld [vmem:[#allocation43_spill] sm:$0xff] }
 0xe91   :  { %3563 = vmatprep.subr.mxu0 %v6433_v11  ;;  %3634 = vmatprep.subr.mxu1 %v6436_v12 }
 0xe92   :  { %3564 = vmatpush1.msra.mxu0 %v6439_v13  ;;  %3635 = vmatpush1.msra.mxu1 %v6442_v14 }
 0xe93   :  { %3565 = vmatprep.subr.mxu0 %v6445_v15  ;;  %3636 = vmatprep.subr.mxu1 %v6448_v17 }
 0xe94   :  { %3566 = vmatpush1.msra.mxu0 %v6451_v19  ;;  %3637 = vmatpush1.msra.mxu1 %v6454_v22 }
 0xe95   :  { %3567 = vmatprep.subr.mxu0 %v6457_v23  ;;  %3638 = vmatprep.subr.mxu1 %v6460_v25 }
 0xe96   :  { %3568 = vmatpush1.msra.mxu0 %v6463_v28  ;;  %3639 = vmatpush1.msra.mxu1 %v6466_v29 }
 0xe97   :  { %3569 = vmatprep.subr.mxu0 %v6469_v30  ;;  %3640 = vmatprep.subr.mxu1 %v6472_v31 }
 0xe98   :  { %3570 = vmatpush1.msra.mxu0 %v6475_v32  ;;  %3641 = vmatpush1.msra.mxu1 %v6478_v33 }
 0xe99   :  { %3571 = vmatprep.subr.mxu0 %v6481_v34  ;;  %3642 = vmatprep.subr.mxu1 %v6484_v35 }
 0xe9a   :  { %3572 = vmatpush1.msra.mxu0 %v6487_v36  ;;  %3643 = vmatpush1.msra.mxu1 %v6490_v37 }
 0xe9b   :  { %3573 = vmatprep.subr.mxu0 %v7346_v48  ;;  %3644 = vmatprep.subr.mxu1 %v7347_v60  ;;  %v3787_v48 = vld [vmem:[#allocation18 + $0xe0] sm:$0xff] }
 0xe9c   :  { %3574 = vmatpush1.msra.mxu0 %v7348_v47  ;;  %3645 = vmatpush1.msra.mxu1 %v7349_v44  ;;  %v3771_v60 = vld [vmem:[#allocation18 + $0x60] sm:$0xff]  ;;  %v3786_v47 = vld [vmem:[#allocation18 + $0xd8] sm:$0xff] }
 0xe9d   :  { %3575 = vmatprep.subr.mxu0 %v7350_v2  ;;  %3646 = vmatprep.subr.mxu1 %v7351_v16  ;;  %v3754_v44 = vld [vmem:[#allocation16 + $0x78] sm:$0xff]  ;;  %v3785_v16 = vld [vmem:[#allocation18 + $0xd0] sm:$0xff] }
 0xe9e   :  { %3576 = vmatpush1.msra.mxu0 %v7352_v56  ;;  %3647 = vmatpush1.msra.mxu1 %v7353_v3  ;;  %v3770_v2 = vld [vmem:[#allocation18 + $0x58] sm:$0xff]  ;;  %v3753_v56 = vld [vmem:[#allocation16 + $0x70] sm:$0xff] }
 0xe9f   :  { %3577 = vmatprep.subr.mxu0 %v7354_v41  ;;  %3648 = vmatprep.subr.mxu1 %v7355_v58  ;;  %v3769_v3 = vld [vmem:[#allocation18 + $0x50] sm:$0xff]  ;;  %v3784_v41 = vld [vmem:[#allocation18 + $0xc8] sm:$0xff] }
 0xea0   :  { %3578 = vmatpush1.msra.mxu0 %v7356_v43  ;;  %3649 = vmatpush1.msra.mxu1 %v7357_v4  ;;  %v3752_v58 = vld [vmem:[#allocation16 + $0x68] sm:$0xff]  ;;  %v3783_v4 = vld [vmem:[#allocation18 + $0xc0] sm:$0xff] }
 0xea1   :  { %3579 = vmatprep.subr.mxu0 %v7358_v0  ;;  %3650 = vmatprep.subr.mxu1 %v7359_v50  ;;  %v3768_v43 = vld [vmem:[#allocation18 + $0x48] sm:$0xff]  ;;  %v3751_v0 = vld [vmem:[#allocation16 + $0x60] sm:$0xff] }
 0xea2   :  { %3580 = vmatpush1.msra.mxu0 %v7360_v53  ;;  %3651 = vmatpush1.msra.mxu1 %v7361_v52  ;;  %v3767_v50 = vld [vmem:[#allocation18 + $0x40] sm:$0xff]  ;;  %v3782_v53 = vld [vmem:[#allocation18 + $0xb8] sm:$0xff] }
 0xea3   :  { %3581 = vmatprep.subr.mxu0 %v7362_v5  ;;  %3652 = vmatprep.subr.mxu1 %v7363_v6  ;;  %v3750_v52 = vld [vmem:[#allocation16 + $0x58] sm:$0xff]  ;;  %v3781_v6 = vld [vmem:[#allocation18 + $0xb0] sm:$0xff] }
 0xea4   :  { %3582 = vmatpush1.msra.mxu0 %v7364_v7  ;;  %3615 = vmatprep.mubr.f32.mxu0 %v7365_v8  ;;  %v3766_v5 = vld [vmem:[#allocation18 + $0x38] sm:$0xff]  ;;  %v3749_v7 = vld [vmem:[#allocation16 + $0x50] sm:$0xff] }
 0xea5   :  { %3653 = vmatpush1.msra.mxu1 %v7366_v9  ;;  %3686 = vmatprep.mubr.f32.mxu1 %v7365_v8  ;;  %v3765_v8 = vld [vmem:[#allocation18 + $0x30] sm:$0xff]  ;;  %v3780_v9 = vld [vmem:[#allocation18 + $0xa8] sm:$0xff] }
 0xea6   :  { %4082 = vmatprep.subr.mxu0 %v3790_v42  ;;  %4138 = vmatprep.subr.mxu1 %v3754_v44 }
 0xf45   :  { %v3428_v10 = vpop.f32.mrf.mxu0  ;;  %v3499_v14 = vpop.f32.mrf.mxu1 }
 0xf46   :  { %v3508_v11 = vrot.slane %v3428_v10, 4  ;;  %v3510_v29 = vrot.slane %v3499_v14, 4  ;;  %v3748_v10 = vld [vmem:[#allocation16 + $0x48] sm:$0xff]  ;;  %v3763_v14 = vld [vmem:[#allocation18 + $0x20] sm:$0xff] }
 0xf47   :  { %v3430_v12 = vpop.f32.mrf.mxu0  ;;  %v3501_v23 = vpop.f32.mrf.mxu1 }
 0xf48   :  { %v3516_v13 = vadd.f32 %v3508_v11, %v7343_v55  ;;  %v3509_v15 = vrot.slane %v3430_v12, 4  ;;  %v3511_v25 = vrot.slane %v3501_v23, 4  ;;  %v3518_v32 = vadd.f32 %v3510_v29, %v6574_v45  ;;  %v3764_v11 = vld [vmem:[#allocation18 + $0x28] sm:$0xff]  ;;  %v3779_v12 = vld [vmem:[#allocation18 + $0xa0] sm:$0xff]  ;;  %v3745_v23 = vld [vmem:[#allocation16 + $0x30] sm:$0xff] }
 0xf49   :  { %v3744_v29 = vld [vmem:[#allocation16 + $0x28] sm:$0xff] }
 0xf4a   :  { %v4075_v17 = vmul.f32 -1.442695, %v3516_v13  ;;  %v3517_v19 = vadd.f32 %v3509_v15, %v7344_v59  ;;  %v3519_v28 = vadd.f32 %v3511_v25, %v7345_v49  ;;  %v3747_v13 = vld [vmem:[#allocation16 + $0x40] sm:$0xff]  ;;  %v3778_v15 = vld [vmem:[#allocation18 + $0x98] sm:$0xff]  ;;  %v3761_v25 = vld [vmem:[#allocation18 + $0x10] sm:$0xff] }
 0xf4c   :  { %4415 = vpow2.f32 %v4075_v17  ;;  %v4076_v22 = vmul.f32 -1.442695, %v3517_v19  ;;  %v4077_v30 = vmul.f32 -1.442695, %v3519_v28  ;;  %v3746_v17 = vld [vmem:[#allocation16 + $0x38] sm:$0xff]  ;;  %v3776_v28 = vld [vmem:[#allocation18 + $0x88] sm:$0xff] }
 0xf4d   :  { %v3762_v19 = vld [vmem:[#allocation18 + $0x18] sm:$0xff] }
 0xf4e   :  { %4417 = vpow2.f32 %v4076_v22  ;;  %v3777_v22 = vld [vmem:[#allocation18 + $0x90] sm:$0xff] }
 0xf4f   :  { %4419 = vpow2.f32 %v4077_v30  ;;  %v3760_v30 = vld [vmem:[#allocation18 + $0x8] sm:$0xff] }
 0xf59   :  { %v4416_v31 = vpop.eup %4415 }
 0xf5a   :  { %v3523_v33 = vadd.f32 1.0, %v4416_v31  ;;  %v3775_v31 = vld [vmem:[#allocation18 + $0x80] sm:$0xff] }
 0xf5b   :  { %v4418_v34 = vpop.eup %4417 }
 0xf5c   :  { %4421 = vrcp.f32 %v3523_v33  ;;  %v3529_v35 = vadd.f32 1.0, %v4418_v34  ;;  %v4420_v36 = vpop.eup %4419  ;;  %v3759_v33 = vld [vmem:[#allocation18] sm:$0xff] }
 0xf5d   :  { %4423 = vtanh.f32 %v3518_v32  ;;  %v3536_v63 = vadd.f32 1.0, %v4420_v36  ;;  %v3743_v32 = vld [vmem:[#allocation16 + $0x20] sm:$0xff]  ;;  %v3742_v36 = vld [vmem:[#allocation16 + $0x18] sm:$0xff] }
 0xf5e   :  { %4425 = vrcp.f32 %v3529_v35  ;;  %v3756_v34 = vld [vmem:[#allocation7 + $0x8] sm:$0xff]  ;;  %v3755_v35 = vld [vmem:[#allocation7] sm:$0xff] }
 0xf5f   :  { %4427 = vrcp.f32 %v3536_v63  ;;  %v3739_v63 = vld [vmem:[#allocation16] sm:$0xff] }
 0xf69   :  { %v4422_v37 = vpop.eup %4421 }
 0xf6a   :  { %v4424_v57 = vpop.eup %4423 }
 0xf6b   :  { %v4426_v27 = vpop.eup %4425  ;;  %v3543_v20 = vmul.f32 %v4424_v57, %v4422_v37  ;;  %v3758_v37 = vld [vmem:[#allocation7 + $0x18] sm:$0xff] }
 0xf6c   :  { %v3542_v61 = vmul.f32 %v4426_v27, %v3540_v54  ;;  %v4428_v21 = vpop.eup %4427  ;;  %v3741_v57 = vld [vmem:[#allocation16 + $0x10] sm:$0xff]  ;;  %v3740_v27 = vld [vmem:[#allocation16 + $0x8] sm:$0xff] }
 0xf6d   :  { %v3757_v54 = vld [vmem:[#allocation7 + $0x10] sm:$0xff] }
 0xf6e   :  { %v6724_v46 = vadd.f32 %v3543_v20, %v3542_v61 }
 0xf70   :  { %4429 = vtanh.f32 %v6724_v46 }
 0xf7d   :  { %v4430_v24 = vpop.eup %4429 }
 0xf7e   :  { %v3546_v62 = vmul.f32 %v4430_v24, %v4428_v21 }
 0xf80   :  { %3547 = vst [vmem:[#allocation3] sm:$0x30] %v3546_v62  ;;  %v3549_v18 = vrot.slane %v3546_v62, 4 }
 0xf82   :  { %3616 = vmatmul.mubr.f32.vlgmr.msra.gmra.mxu0 %v3549_v18  ;;  %3687 = vmatmul.mubr.f32.vlgmr.msra.gmra.mxu1 %v3549_v18 }
 0xf83   :  { %4170 = vmatprep.mubr.f32.mxu1 %v3737_v26  ;;  %4083 = vmatpush3.msra.mxu0 %v3774_v1 }
 0xf84   :  { %4084 = vmatprep.subr.mxu0 %v3789_v51  ;;  %4139 = vmatpush3.msra.mxu1 %v3754_v44 }
 0xf85   :  { %4085 = vmatpush3.msra.mxu0 %v3773_v40  ;;  %4140 = vmatprep.subr.mxu1 %v3753_v56 }
 0xf86   :  { %4086 = vmatprep.subr.mxu0 %v3788_v39  ;;  %4141 = vmatpush3.msra.mxu1 %v3753_v56 }
 0xf87   :  { %4087 = vmatpush3.msra.mxu0 %v3772_v38  ;;  %4142 = vmatprep.subr.mxu1 %v3752_v58 }
 0xf88   :  { %4088 = vmatprep.subr.mxu0 %v3787_v48  ;;  %4143 = vmatpush3.msra.mxu1 %v3752_v58 }
 0xf89   :  { %4089 = vmatpush3.msra.mxu0 %v3771_v60  ;;  %4144 = vmatprep.subr.mxu1 %v3751_v0 }
 0xf8a   :  { %4090 = vmatprep.subr.mxu0 %v3786_v47  ;;  %4145 = vmatpush3.msra.mxu1 %v3751_v0 }
 0xf8b   :  { %4091 = vmatpush3.msra.mxu0 %v3770_v2  ;;  %4146 = vmatprep.subr.mxu1 %v3750_v52 }
 0xf8c   :  { %4092 = vmatprep.subr.mxu0 %v3785_v16  ;;  %4147 = vmatpush3.msra.mxu1 %v3750_v52 }
 0xf8d   :  { %4093 = vmatpush3.msra.mxu0 %v3769_v3  ;;  %4148 = vmatprep.subr.mxu1 %v3749_v7  ;;  %v3729_v3 = vrot.slane %v6724_v46, 6 }
 0xf8e   :  { %4094 = vmatprep.subr.mxu0 %v3784_v41  ;;  %4149 = vmatpush3.msra.mxu1 %v3749_v7 }
 0xf8f   :  { %4095 = vmatpush3.msra.mxu0 %v3768_v43  ;;  %4150 = vmatprep.subr.mxu1 %v3748_v10 }
 0xf90   :  { %4096 = vmatprep.subr.mxu0 %v3783_v4  ;;  %4151 = vmatpush3.msra.mxu1 %v3748_v10 }
 0xf91   :  { %4097 = vmatpush3.msra.mxu0 %v3767_v50  ;;  %4152 = vmatprep.subr.mxu1 %v3747_v13 }
 0xf92   :  { %4098 = vmatprep.subr.mxu0 %v3782_v53  ;;  %4153 = vmatpush3.msra.mxu1 %v3747_v13 }
 0xf93   :  { %4099 = vmatpush3.msra.mxu0 %v3766_v5  ;;  %4154 = vmatprep.subr.mxu1 %v3746_v17 }
 0xf94   :  { %4100 = vmatprep.subr.mxu0 %v3781_v6  ;;  %4155 = vmatpush3.msra.mxu1 %v3746_v17 }
 0xf95   :  { %4101 = vmatpush3.msra.mxu0 %v3765_v8  ;;  %4156 = vmatprep.subr.mxu1 %v3745_v23  ;;  %v7367_v8 = vlaneseq }
 0xf96   :  { %4102 = vmatprep.subr.mxu0 %v3780_v9  ;;  %4157 = vmatpush3.msra.mxu1 %v3745_v23 }
 0xf97   :  { %4103 = vmatpush3.msra.mxu0 %v3764_v11  ;;  %4158 = vmatprep.subr.mxu1 %v3744_v29  ;;  %v6733_v9 = vand.u32 127, %v7367_v8 }
 0xf98   :  { %4104 = vmatprep.subr.mxu0 %v3779_v12  ;;  %4159 = vmatpush3.msra.mxu1 %v3744_v29 }
 0xf99   :  { %4105 = vmatpush3.msra.mxu0 %v3763_v14  ;;  %4160 = vmatprep.subr.mxu1 %v3743_v32  ;;  %vm3953_vm0 = vcmp.ge.s32.totalorder %v6733_v9, 80  ;;  %vm3954_vm1 = vcmp.lt.s32.totalorder %v6733_v9, 120  ;;  %vm3956_vm3 = vcmp.ge.s32.totalorder %v6733_v9, 120  ;;  %vm3957_vm4 = vcmp.lt.s32.totalorder %v6733_v9, 122 }
 0xf9a   :  { %4106 = vmatprep.subr.mxu0 %v3778_v15  ;;  %3855 = vmatprep.mubr.f32.mxu0 %v3756_v34  ;;  %v4081_v15 = vld [vmem:[%s6794_s12] ss:$0 sm:$0xff]  ;;  %vm6740_vm2 = vmand %vm3953_vm0, %vm3954_vm1  ;;  %vm3952_vm6 = vcmp.lt.s32.totalorder %v6733_v9, 80  ;;  %s4820_s12 = smov [#allocation19]  }
 0xf9b   :  { %4107 = vmatpush3.msra.mxu0 %v3762_v19  ;;  %4161 = vmatpush3.msra.mxu1 %v3743_v32  ;;  %vm6758_vm5 = vmand %vm3956_vm3, %vm3957_vm4  ;;  %s4016_s1 = sshll.u32 %s4820_s12, 4  ;;  %s4017_s1 = int_to_ptr.vmem [resolvable:$true] %s4016_s1 }
 0xf9c   :  { %4108 = vmatprep.subr.mxu0 %v3777_v22  ;;  %4162 = vmatprep.subr.mxu1 %v3742_v36  ;;  %s4771_s24 = scalar_lea.vmem %s4017_s1, 256  ;;  %p4776_p4 = scmp.lt.s32.totalorder %s4017_s1, %s4017_s1 }
 0xf9d   :  { %4109 = vmatpush3.msra.mxu0 %v3761_v25  ;;  %4163 = vmatpush3.msra.mxu1 %v3742_v36  ;;  %p4772_p3 = scmp.ne.s32.totalorder %s4017_s1, %s4771_s24  ;;  %p4777_p5 = scmp.lt.s32.totalorder %s4771_s24, %s4771_s24 }
 0xf9e   :  { %4110 = vmatprep.subr.mxu0 %v3776_v28  ;;  %4164 = vmatprep.subr.mxu1 %v3741_v57 }
 0xf9f   :  { %4111 = vmatpush3.msra.mxu0 %v3760_v30  ;;  %4165 = vmatpush3.msra.mxu1 %v3741_v57  ;;  %p4778_p6 = por %p4777_p5, %p4776_p4 }
 0xfa0   :  { %4112 = vmatprep.subr.mxu0 %v3775_v31  ;;  %4166 = vmatprep.subr.mxu1 %v3740_v27 }
 0xfa1   :  { %4113 = vmatpush3.msra.mxu0 %v3759_v33  ;;  %4167 = vmatpush3.msra.mxu1 %v3740_v27  ;;  %p4779_p7 = pnand %p4778_p6, %p4772_p3 }
 0xfa2   :  { %3856 = vmatmul.mubr.f32.vlgmr.msra.gmra.mxu0 %v3755_v35  ;;  %4168 = vmatprep.subr.mxu1 %v3739_v63 }
 0xfa3   :  { %3860 = vmatprep.mubr.f32.mxu0 %v3758_v37  ;;  %4169 = vmatpush3.msra.mxu1 %v3739_v63 }
 0xfa6   :  { %3861 = vmatmul.mubr.f32.gmra.mxu0 %v3757_v54 }
0x1042   :  { %v3617_v20 = vpop.f32.mrf.mxu0  ;;  %v3688_v62 = vpop.f32.mrf.mxu1 }
0x1043   :  { %v3697_v61 = vrot.slane %v3617_v20, 2  ;;  %v3699_v38 = vrot.slane %v3688_v62, 2 }
0x1044   :  { %v3619_v21 = vpop.f32.mrf.mxu0  ;;  %v3690_v51 = vpop.f32.mrf.mxu1 }
0x1045   :  { %v3705_v24 = vadd.f32 %v3697_v61, %v7343_v55  ;;  %v3698_v18 = vrot.slane %v3619_v21, 2  ;;  %v3700_v40 = vrot.slane %v3690_v51, 2  ;;  %v3707_v47 = vadd.f32 %v3699_v38, %v6574_v45 }
0x1047   :  { %v4078_v26 = vmul.f32 -1.442695, %v3705_v24  ;;  %v3706_v42 = vadd.f32 %v3698_v18, %v7344_v59  ;;  %v3708_v39 = vadd.f32 %v3700_v40, %v7345_v49 }
0x1049   :  { %4431 = vpow2.f32 %v4078_v26  ;;  %v4079_v1 = vmul.f32 -1.442695, %v3706_v42  ;;  %v4080_v48 = vmul.f32 -1.442695, %v3708_v39 }
0x104b   :  { %4433 = vpow2.f32 %v4079_v1 }
0x104c   :  { %4435 = vpow2.f32 %v4080_v48 }
0x1056   :  { %v4432_v60 = vpop.eup %4431 }
0x1057   :  { %v3712_v44 = vadd.f32 1.0, %v4432_v60 }
0x1058   :  { %v4434_v2 = vpop.eup %4433 }
0x1059   :  { %4437 = vrcp.f32 %v3712_v44  ;;  %v3718_v55 = vadd.f32 1.0, %v4434_v2  ;;  %v4436_v59 = vpop.eup %4435 }
0x105a   :  { %4439 = vtanh.f32 %v3707_v47  ;;  %v3725_v58 = vadd.f32 1.0, %v4436_v59 }
0x105b   :  { %4441 = vrcp.f32 %v3718_v55 }
0x105c   :  { %4443 = vrcp.f32 %v3725_v58 }
0x1062   :  { %v4114_v52 = vpop.f32.mrf.mxu0 }
0x1064   :  { %v4115_v5 = vpop.f32.mrf.mxu0 }
0x1065   :  { %v4116_v11 = vadd.f32 %v4115_v5, %v4114_v52 }
0x1066   :  { %v4438_v16 = vpop.eup %4437  ;;  %v4117_v6 = vpop.f32.mrf.mxu0 }
0x1067   :  { %v4440_v56 = vpop.eup %4439 }
0x1068   :  { %v4442_v41 = vpop.eup %4441  ;;  %v3732_v49 = vmul.f32 %v4440_v56, %v4438_v16  ;;  %v4118_v7 = vpop.f32.mrf.mxu0 }
0x1069   :  { %v3731_v43 = vmul.f32 %v4442_v41, %v3729_v3  ;;  %v4444_v45 = vpop.eup %4443  ;;  %v4119_v46 = vadd.f32 %v4118_v7, %v4117_v6 }
0x106b   :  { %v3733_v4 = vadd.f32 %v3732_v49, %v3731_v43 }
0x106d   :  { %4445 = vtanh.f32 %v3733_v4 }
0x107a   :  { %v4446_v0 = vpop.eup %4445 }
0x107b   :  { %v3735_v50 = vmul.f32 %v4446_v0, %v4444_v45 }
0x107d   :  { %3736 = vst [vmem:[#allocation3] sm:$0xc0] %v3735_v50 }
0x1084   :  { %v3738_v53 = vld [vmem:[#allocation3] sm:$0xff] }
0x1085   :  { %4171 = vmatmul.mubr.f32.vlgmr.msra.gmra.mxu1 %v3738_v53 }
0x1145   :  { %v4172_v10 = vpop.f32.mrf.mxu1 }
0x1146   :  { %v3938_v14 = vadd.f32 %v4172_v10, %v4119_v46 }
0x1147   :  { %v3932_v12 = vpop.f32.mrf.mxu1 }
0x1148   :  { %v3933_v13 = vadd.f32 %v4116_v11, %v3932_v12  ;;  %v6744_v22 = vadd.f32 %v4081_v15, %v3938_v14 }
0x114a   :  { %v3948_v17 = vadd.f32 %v4081_v15, %v3933_v13  ;;  %v3982_v25 = vsel %vm6740_vm2, %v6744_v22, -1e+30  ;;  %v3960_v54 = vmul.f32 0.999, %v6744_v22  ;;  %v4004_v4 = vsel %vm6758_vm5, %v6744_v22, 0.0 }
0x114c   :  { %v3981_v23 = vsel %vm6740_vm2, %v3948_v17, -1e+30  ;;  %v3959_v57 = vmul.f32 0.999, %v3948_v17  ;;  %v3964_v63 = vand.u32 2147483647, %v3960_v54 }
0x114d   :  { %3983 = vmax.xlane.f32.xlu0 %v3981_v23  ;;  %v3962_v2 = vmax.f32 %v3960_v54, 0.0  ;;  %v4003_v16 = vsel %vm6758_vm5, %v3948_v17, 0.0 }
0x114e   :  { %v3963_v27 = vand.u32 2147483647, %v3959_v57  ;;  %v3966_v61 = vsub.f32 0.0, %v3964_v63  ;;  %v3961_v48 = vmax.f32 %v3959_v57, 0.0 }
0x1150   :  { %v3965_v20 = vsub.f32 0.0, %v3963_v27  ;;  %v3969_v24 = vmul.f32 1.442695, %v3966_v61 }
0x1151   :  { %3985 = vmax.xlane.f32.xlu0 %v3982_v25 }
0x1152   :  { %v3967_v21 = vmul.f32 1.442695, %v3965_v20 }
0x11d6   :  { %v3984_v28 = vpop.xlane.xlu0 %3983 }
0x11d7   :  { %v3987_v29 = vsub.f32 %v3981_v23, %v3984_v28 }
0x11d9   :  { %v3989_v30 = vmul.f32 1.442695, %v3987_v29 }
0x11da   :  { %v3986_v31 = vpop.xlane.xlu0 %3985 }
0x11db   :  { %4447 = vpow2.f32 %v3989_v30  ;;  %v3988_v32 = vsub.f32 %v3982_v25, %v3986_v31 }
0x11dd   :  { %v3991_v33 = vmul.f32 1.442695, %v3988_v32 }
0x11df   :  { %4449 = vpow2.f32 %v3991_v33 }
0x11e0   :  { %4451 = vpow2.f32 %v3967_v21 }
0x11e1   :  { %4453 = vpow2.f32 %v3969_v24 }
0x11e8   :  { %v4448_v34 = vpop.eup %4447 }
0x11e9   :  { %v3993_v35 = vsel %vm6740_vm2, %v4448_v34, 0.0 }
0x11ea   :  { %3995 = vadd.xlane.f32.xlu1 %v3993_v35 }
0x11ec   :  { %v4450_v36 = vpop.eup %4449 }
0x11ed   :  { %v3994_v37 = vsel %vm6740_vm2, %v4450_v36, 0.0  ;;  %v4452_v62 = vpop.eup %4451 }
0x11ee   :  { %3997 = vadd.xlane.f32.xlu1 %v3994_v37  ;;  %v3971_v18 = vadd.f32 1.0, %v4452_v62  ;;  %v4454_v26 = vpop.eup %4453 }
0x11ef   :  { %v3972_v42 = vadd.f32 1.0, %v4454_v26 }
0x11f0   :  { %4455 = vlog2.f32 %v3971_v18 }
0x11f1   :  { %4457 = vlog2.f32 %v3972_v42 }
0x11fd   :  { %v4456_v40 = vpop.eup %4455 }
0x11fe   :  { %v3974_v39 = vmul.f32 0.6931472, %v4456_v40  ;;  %v4458_v38 = vpop.eup %4457 }
0x11ff   :  { %v3976_v60 = vmul.f32 0.6931472, %v4458_v38 }
0x1200   :  { %v3977_v47 = vadd.f32 %v3974_v39, %v3961_v48 }
0x1201   :  { %v3978_v56 = vadd.f32 %v3976_v60, %v3962_v2 }
0x1202   :  { %v3979_v3 = vmul.f32 1.001001, %v3977_v47 }
0x1203   :  { %v3980_v45 = vmul.f32 1.001001, %v3978_v56 }
0x1273   :  { %v3996_v1 = vpop.xlane.xlu1 %3995 }
0x1274   :  { %4459 = vrcp.f32 %v3996_v1 }
0x1277   :  { %v3998_v51 = vpop.xlane.xlu1 %3997 }
0x1278   :  { %4461 = vrcp.f32 %v3998_v51 }
0x1281   :  { %v4460_v44 = vpop.eup %4459 }
0x1282   :  { %v4000_v59 = vmul.f32 %v4460_v44, %v3993_v35 }
0x1284   :  { %v4005_v41 = vsel %vm6740_vm2, %v4000_v59, %v4003_v16 }
0x1285   :  { %v4462_v58 = vpop.eup %4461  ;;  %v4007_v49 = vsel %vm3952_vm6, %v3979_v3, %v4005_v41 }
0x1286   :  { %v4002_v43 = vmul.f32 %v4462_v58, %v3994_v37  ;;  %4009 = vst [vmem:[#allocation19] sm:$0xff] %v4007_v49 }
0x1288   :  { %v4006_v0 = vsel %vm6740_vm2, %v4002_v43, %v4004_v4 }
0x1289   :  { %v4008_v50 = vsel %vm3952_vm6, %v3980_v45, %v4006_v0 }
0x128a   :  { %4010 = vst [vmem:[#allocation19 + $0x8] sm:$0xff] %v4008_v50 }
0x128b   :  { %4782 = shalt.err (!%p4779_p7)
}
0x128c   :  { %4022 = dma.vmem_to_hbm [thread:$0]  %s4017_s1, 256, %s6795_s13, [#allocation6], %s4812_s30, %s4812_s30, %s4813_s14  }
0x128d   :  { %4801 = dma.done.wait [#allocation6], 256  }
0x128e   :  { %4802 = vsyncadd [#allocation6], 4294967040 }
0x128f   :  { %4026 = vsyncpa [#allocation5], 1 }
0x1290   :  { %4027 = vsyncpa [#allocation8], 1 }
0x1291   :  { %4028 = vsyncpa [#allocation11], 1 }
0x1292   :  { %4029 = vsyncpa [#allocation14], 1 }
0x1293   :  { %4030 = vsyncpa [#allocation17], 1 }
0x1294   :  { %4031 = vsyncpa [#allocation6], 1 }

</bundles_post_ra>
